<compile_context>
chip_gen: v7x
topology: tpu7x:2x2x1
jax: 0.10.0
libtpu: 0.0.40
codegen_flags: <defaults>
</compile_context>

<pallas_src>
import functools

import numpy as np
import jax
import jax.numpy as jnp
from jax.experimental import pallas as pl
from jax.experimental.pallas import tpu as pltpu

C, H, W, K = 4, 16, 16, 3      # channels, rows, cols, conv kernel size


# ----------------------------------------------------------------------------
# Host-side helpers (weight / mask layout for the kernel).
# ----------------------------------------------------------------------------
def _shift_masks(h, w, k):
  """(k*k, h*w) 0/1 masks: valid input positions for each conv tap ('same')."""
  r = k // 2
  hh, ww = np.meshgrid(np.arange(h), np.arange(w), indexing="ij")
  ms = []
  for kh in range(k):
    for kw in range(k):
      dh, dw = kh - r, kw - r
      valid = ((hh + dh >= 0) & (hh + dh < h) & (ww + dw >= 0) & (ww + dw < w))
      ms.append(valid.astype(np.float32).reshape(-1))
  return jnp.asarray(np.stack(ms, axis=0))


# ----------------------------------------------------------------------------
# Kernel: processes a (b, C, H*W) batch tile of both inputs; all three
# Cal_Att branches are evaluated together on sublane-stacked rows.
# ----------------------------------------------------------------------------
def _att_module_kernel(x1_ref, x2_ref, a_ref, mask_ref,
                       wmax_ref, wavg_ref, bmax_ref, bavg_ref,
                       w1c0_ref, w1c1_ref, bc1_ref, w2c_ref, bc2_ref,
                       y1_ref, y2_ref, *, w, k):
  b, c, hw = x1_ref.shape
  r = b * c          # data rows per branch, row order = (sample, channel)
  g = 3 * b          # (branch, sample) groups

  x1 = x1_ref[...].reshape(r, hw)
  x2 = x2_ref[...].reshape(r, hw)
  a = a_ref[...]                                   # (4, hw)
  a11, a12, a21, a22 = a[0:1], a[1:2], a[2:3], a[3:4]
  masks = mask_ref[...]                            # (k*k, hw)

  xs = x1 * a11 + x2 * a12
  x_all = jnp.concatenate([xs, x1, x2], axis=0)    # (3r, hw), rows = (br, n, c)
  xg = x_all.reshape(g, c, hw)                     # (3b, c, hw)

  # ---- channel attention: tiny matvecs kept on the VPU (no MXU pass) -------
  ch_max = jnp.max(x_all, axis=1).reshape(3, b, c)
  ch_avg = (jnp.sum(x_all, axis=1) * (1.0 / hw)).reshape(3, b, c)
  pre = (jnp.sum(wmax_ref[...][:, None] * ch_max[:, :, None, :], axis=-1)
         + jnp.sum(wavg_ref[...][:, None] * ch_avg[:, :, None, :], axis=-1)
         + bmax_ref[...] + bavg_ref[...])          # (3, b, c)
  ch_att = jnp.tanh(pre).reshape(g, c)             # (3b, c)

  # ---- spatial attention input (shared across branches / out channels) -----
  sp_max = jnp.max(xg, axis=1)                     # (3b, hw)
  sp_avg = jnp.sum(xg, axis=1) * (1.0 / c)
  # expand ONCE (outside the tap loops) to conv row order (br, n, out_ch)
  sp_max_e = jnp.broadcast_to(sp_max[:, None, :], (g, c, hw)).reshape(3 * r, hw)
  sp_avg_e = jnp.broadcast_to(sp_avg[:, None, :], (g, c, hw)).reshape(3 * r, hw)

  w1c0 = w1c0_ref[...]                             # (3r, k*k) per-row weights
  w1c1 = w1c1_ref[...]
  w2c = w2c_ref[...]

  # ---- conv1: 2 -> c, 3x3 'same', as lane shifts + edge masks --------------
  acc1 = jnp.zeros((3 * r, hw), jnp.float32)
  for kh in range(k):
    for kw in range(k):
      t = kh * k + kw
      s = (kh - k // 2) * w + (kw - k // 2)
      if s == 0:
        contrib = w1c0[:, t:t + 1] * sp_max_e + w1c1[:, t:t + 1] * sp_avg_e
      else:
        contrib = (w1c0[:, t:t + 1] * jnp.roll(sp_max_e, -s, axis=1)
                   + w1c1[:, t:t + 1] * jnp.roll(sp_avg_e, -s, axis=1))
        contrib = contrib * masks[t:t + 1, :]
      acc1 = acc1 + contrib
  acc1 = acc1 + bc1_ref[...]                       # bias added once, at the end

  # ---- conv2: c -> 1, 3x3 'same' (zero-pads the *biased* conv1 output) -----
  acc2 = jnp.zeros((3 * r, hw), jnp.float32)
  for kh in range(k):
    for kw in range(k):
      t = kh * k + kw
      s = (kh - k // 2) * w + (kw - k // 2)
      if s == 0:
        contrib = w2c[:, t:t + 1] * acc1
      else:
        contrib = w2c[:, t:t + 1] * jnp.roll(acc1, -s, axis=1) * masks[t:t + 1, :]
      acc2 = acc2 + contrib
  sp_att = jnp.tanh(acc2.reshape(g, c, hw).sum(axis=1) + bc2_ref[...])  # (3b, hw)

  # ---- gate + residual mix --------------------------------------------------
  x_att = xg * ch_att[:, :, None] * sp_att[:, None, :]   # (3b, c, hw)
  xs_att, x1_att, x2_att = x_att[:b], x_att[b:2 * b], x_att[2 * b:]
  y1_ref[...] = x1_ref[...] + (x1_att + xs_att) * a21
  y2_ref[...] = x2_ref[...] + (x2_att + xs_att) * a22


# ----------------------------------------------------------------------------
# Wrapper: lane-dense reshape, weight-column layout, grid over batch tiles.
# ----------------------------------------------------------------------------
def att_module_forward(x1, x2, params):
  n, c, h, w = x1.shape
  hw = h * w
  k = K
  kk = k * k

  # keep >=2 parallel grid steps when possible (feeds both v7x TensorCores);
  # v5e/v6e: still fine, each step just handles half the batch.
  nb = 2 if (n >= 2 and n % 2 == 0) else 1
  b = n // nb
  r = b * c

  x1v = x1.reshape(n, c, hw)
  x2v = x2.reshape(n, c, hw)
  a_mix = jnp.stack([params["a11"].reshape(hw), params["a12"].reshape(hw),
                     params["a21"].reshape(hw), params["a22"].reshape(hw)])
  masks = _shift_masks(h, w, k)                              # (k*k, hw)

  br = params["branches"]                                    # [share, att1, att2]
  wmax = jnp.stack([p["wmax"] for p in br])                  # (3, c, c)
  wavg = jnp.stack([p["wavg"] for p in br])
  bmax = jnp.stack([p["bmax"] for p in br])[:, None, :]      # (3, 1, c)
  bavg = jnp.stack([p["bavg"] for p in br])[:, None, :]
  wc1 = jnp.stack([p["wc1"] for p in br]).reshape(3, c, 2, kk)
  bc1 = jnp.stack([p["bc1"] for p in br])                    # (3, c)
  wc2 = jnp.stack([p["wc2"] for p in br]).reshape(3, c, kk)  # (out=1 collapsed)
  bc2 = jnp.stack([p["bc2"] for p in br])                    # (3, 1)

  # per-row weight columns, rows ordered (branch, sample, out_channel)
  w1c0 = jnp.broadcast_to(wc1[:, None, :, 0, :], (3, b, c, kk)).reshape(3 * r, kk)
  w1c1 = jnp.broadcast_to(wc1[:, None, :, 1, :], (3, b, c, kk)).reshape(3 * r, kk)
  bc1col = jnp.broadcast_to(bc1[:, None, :], (3, b, c)).reshape(3 * r, 1)
  w2c = jnp.broadcast_to(wc2[:, None, :, :], (3, b, c, kk)).reshape(3 * r, kk)
  bc2col = jnp.broadcast_to(bc2, (3, b)).reshape(3 * b, 1)

  xspec = pl.BlockSpec((b, c, hw), lambda i: (i, 0, 0))

  def _full(shape):
    zeros = (0,) * len(shape)
    return pl.BlockSpec(shape, lambda i, _z=zeros: _z)

  in_specs = [
      xspec, xspec,                       # x1, x2  (lane-dense: last dim = hw)
      _full((4, hw)),                     # a11/a12/a21/a22 stacked
      _full((kk, hw)),                    # conv edge masks
      _full((3, c, c)), _full((3, c, c)),  # W_max, W_avg
      _full((3, 1, c)), _full((3, 1, c)),  # b_max, b_avg
      _full((3 * r, kk)), _full((3 * r, kk)), _full((3 * r, 1)),  # conv1 w/b
      _full((3 * r, kk)), _full((3 * b, 1)),                      # conv2 w/b
  ]
  out_specs = (xspec, xspec)
  out_shape = (jax.ShapeDtypeStruct((n, c, hw), jnp.float32),
               jax.ShapeDtypeStruct((n, c, hw), jnp.float32))

  fn = pl.pallas_call(
      functools.partial(_att_module_kernel, w=w, k=k),
      grid=(nb,),
      in_specs=in_specs,
      out_specs=out_specs,
      out_shape=out_shape,
      compiler_params=pltpu.CompilerParams(
          dimension_semantics=("parallel",)),
  )
  y1, y2 = fn(x1v, x2v, a_mix, masks, wmax, wavg, bmax, bavg,
              w1c0, w1c1, bc1col, w2c, bc2col)
  return y1.reshape(n, c, h, w), y2.reshape(n, c, h, w)


# ----------------------------------------------------------------------------
# Deterministic parameter construction (shapes from the PyTorch __init__).
# ----------------------------------------------------------------------------
def init_params(key, c=C, h=H, w=W, k=K, wmix=0.5):
  keys = jax.random.split(key, 26)
  ki = iter(keys)
  u = lambda shape, s: jax.random.uniform(next(ki), shape, jnp.float32, -s, s)

  branches = []                     # order: att_share, att1, att2
  for _ in range(3):
    branches.append(dict(
        wmax=u((c, c), 0.5), bmax=u((c,), 0.5),
        wavg=u((c, c), 0.5), bavg=u((c,), 0.5),
        wc1=u((c, 2, k, k), 0.3), bc1=u((c,), 0.1),
        wc2=u((1, c, k, k), 0.3), bc2=u((1,), 0.1),
    ))

  return dict(
      a11=jnp.full((h, w), wmix, jnp.float32),
      a12=jnp.full((h, w), wmix, jnp.float32),
      # torch inits a21/a22 to zeros; use small nonzero values here so the
      # attention path actually contributes (otherwise out == in trivially).
      a21=u((h, w), 0.5),
      a22=u((h, w), 0.5),
      branches=branches,
  )


# ----------------------------------------------------------------------------
# Pure-JAX reference (mirrors the PyTorch forward) for verification.
# ----------------------------------------------------------------------------
def _cal_att_ref(x, bp):
  hp = jax.lax.Precision.HIGHEST
  ch_max = jnp.max(x, axis=(2, 3))
  ch_avg = jnp.mean(x, axis=(2, 3))
  ch_att = jnp.tanh(jnp.dot(ch_max, bp["wmax"].T, precision=hp) + bp["bmax"]
                    + jnp.dot(ch_avg, bp["wavg"].T, precision=hp) + bp["bavg"])
  ch_att = ch_att[:, :, None, None]
  sp_in = jnp.concatenate([jnp.max(x, axis=1, keepdims=True),
                           jnp.mean(x, axis=1, keepdims=True)], axis=1)
  dn = ("NCHW", "OIHW", "NCHW")
  y = jax.lax.conv_general_dilated(sp_in, bp["wc1"], (1, 1), "SAME",
                                   dimension_numbers=dn, precision=hp)
  y = y + bp["bc1"][None, :, None, None]
  y = jax.lax.conv_general_dilated(y, bp["wc2"], (1, 1), "SAME",
                                   dimension_numbers=dn, precision=hp)
  y = y + bp["bc2"][None, :, None, None]
  sp_att = jnp.tanh(y)
  return x * ch_att * sp_att


def att_module_ref(x1, x2, params):
  br = params["branches"]
  xs = x1 * params["a11"] + x2 * params["a12"]
  xs_att = _cal_att_ref(xs, br[0])
  x1_att = _cal_att_ref(x1, br[1])
  x2_att = _cal_att_ref(x2, br[2])
  y1 = x1 + (x1_att + xs_att) * params["a21"]
  y2 = x2 + (x2_att + xs_att) * params["a22"]
  return y1, y2


if __name__ == "__main__":
  key = jax.random.PRNGKey(0)
  kx1, kx2, kp = jax.random.split(key, 3)
  n = 2
  x1 = jax.random.normal(kx1, (n, C, H, W), jnp.float32)
  x2 = jax.random.normal(kx2, (n, C, H, W), jnp.float32)
  params = init_params(kp)

  y1, y2 = att_module_forward(x1, x2, params)
  jax.block_until_ready((y1, y2))

  r1, r2 = att_module_ref(x1, x2, params)
  assert y1.shape == (n, C, H, W) and y2.shape == (n, C, H, W)
  assert jnp.allclose(y1, r1, rtol=1e-3, atol=1e-4), float(jnp.max(jnp.abs(y1 - r1)))
  assert jnp.allclose(y2, r2, rtol=1e-3, atol=1e-4), float(jnp.max(jnp.abs(y2 - r2)))
  print("KERNEL_OK")
</pallas_src>

<mosaic_0001>
module attributes {stable_mosaic.version = 11 : i64} {
  func.func @_att_module_kernel(%arg0: i32, %arg1: memref<1x4x256xf32, #tpu.memory_space<vmem>>, %arg2: memref<1x4x256xf32, #tpu.memory_space<vmem>>, %arg3: memref<4x256xf32, #tpu.memory_space<vmem>>, %arg4: memref<9x256xf32, #tpu.memory_space<vmem>>, %arg5: memref<3x4x4xf32, #tpu.memory_space<vmem>>, %arg6: memref<3x4x4xf32, #tpu.memory_space<vmem>>, %arg7: memref<3x1x4xf32, #tpu.memory_space<vmem>>, %arg8: memref<3x1x4xf32, #tpu.memory_space<vmem>>, %arg9: memref<12x9xf32, #tpu.memory_space<vmem>>, %arg10: memref<12x9xf32, #tpu.memory_space<vmem>>, %arg11: memref<12x1xf32, #tpu.memory_space<vmem>>, %arg12: memref<12x9xf32, #tpu.memory_space<vmem>>, %arg13: memref<3x1xf32, #tpu.memory_space<vmem>>, %arg14: memref<1x4x256xf32, #tpu.memory_space<vmem>>, %arg15: memref<1x4x256xf32, #tpu.memory_space<vmem>>) attributes {dimension_semantics = [#tpu.dimension_semantics<parallel>], iteration_bounds = array<i64: 2>, scalar_prefetch = 0 : i64, scratch_operands = 0 : i64, tpu.core_type = #tpu.core_type<tc>, window_params = [{transform_indices = @transform_0, window_bounds = array<i64: 1, 4, 256>}, {transform_indices = @transform_1, window_bounds = array<i64: 1, 4, 256>}, {pipeline_mode = #tpu.pipeline_mode<synchronous>, transform_indices = @transform_2, window_bounds = array<i64: 4, 256>}, {pipeline_mode = #tpu.pipeline_mode<synchronous>, transform_indices = @transform_3, window_bounds = array<i64: 9, 256>}, {pipeline_mode = #tpu.pipeline_mode<synchronous>, transform_indices = @transform_4, window_bounds = array<i64: 3, 4, 4>}, {pipeline_mode = #tpu.pipeline_mode<synchronous>, transform_indices = @transform_5, window_bounds = array<i64: 3, 4, 4>}, {pipeline_mode = #tpu.pipeline_mode<synchronous>, transform_indices = @transform_6, window_bounds = array<i64: 3, 1, 4>}, {pipeline_mode = #tpu.pipeline_mode<synchronous>, transform_indices = @transform_7, window_bounds = array<i64: 3, 1, 4>}, {pipeline_mode = #tpu.pipeline_mode<synchronous>, transform_indices = @transform_8, window_bounds = array<i64: 12, 9>}, {pipeline_mode = #tpu.pipeline_mode<synchronous>, transform_indices = @transform_9, window_bounds = array<i64: 12, 9>}, {pipeline_mode = #tpu.pipeline_mode<synchronous>, transform_indices = @transform_10, window_bounds = array<i64: 12, 1>}, {pipeline_mode = #tpu.pipeline_mode<synchronous>, transform_indices = @transform_11, window_bounds = array<i64: 12, 9>}, {pipeline_mode = #tpu.pipeline_mode<synchronous>, transform_indices = @transform_12, window_bounds = array<i64: 3, 1>}, {transform_indices = @transform_13, window_bounds = array<i64: 1, 4, 256>}, {transform_indices = @transform_14, window_bounds = array<i64: 1, 4, 256>}]} {
    %c0 = arith.constant 0 : index
    %c0_0 = arith.constant 0 : index
    %c0_1 = arith.constant 0 : index
    %0 = vector.load %arg1[%c0, %c0_0, %c0_1] : memref<1x4x256xf32, #tpu.memory_space<vmem>>, vector<1x4x256xf32>
    %1 = vector.shape_cast %0 : vector<1x4x256xf32> to vector<4x256xf32>
    %c0_2 = arith.constant 0 : index
    %c0_3 = arith.constant 0 : index
    %c0_4 = arith.constant 0 : index
    %2 = vector.load %arg2[%c0_2, %c0_3, %c0_4] : memref<1x4x256xf32, #tpu.memory_space<vmem>>, vector<1x4x256xf32>
    %3 = vector.shape_cast %2 : vector<1x4x256xf32> to vector<4x256xf32>
    %c0_5 = arith.constant 0 : index
    %c0_6 = arith.constant 0 : index
    %4 = vector.load %arg3[%c0_5, %c0_6] : memref<4x256xf32, #tpu.memory_space<vmem>>, vector<4x256xf32>
    %5 = vector.extract_strided_slice %4 {offsets = [0, 0], sizes = [1, 256], strides = [1, 1]} : vector<4x256xf32> to vector<1x256xf32>
    %6 = vector.extract_strided_slice %4 {offsets = [1, 0], sizes = [1, 256], strides = [1, 1]} : vector<4x256xf32> to vector<1x256xf32>
    %7 = vector.extract_strided_slice %4 {offsets = [2, 0], sizes = [1, 256], strides = [1, 1]} : vector<4x256xf32> to vector<1x256xf32>
    %8 = vector.extract_strided_slice %4 {offsets = [3, 0], sizes = [1, 256], strides = [1, 1]} : vector<4x256xf32> to vector<1x256xf32>
    %c0_7 = arith.constant 0 : index
    %c0_8 = arith.constant 0 : index
    %9 = vector.load %arg4[%c0_7, %c0_8] : memref<9x256xf32, #tpu.memory_space<vmem>>, vector<9x256xf32>
    %10 = vector.broadcast %5 : vector<1x256xf32> to vector<4x256xf32>
    %11 = arith.mulf %1, %10 : vector<4x256xf32>
    %12 = vector.broadcast %6 : vector<1x256xf32> to vector<4x256xf32>
    %13 = arith.mulf %3, %12 : vector<4x256xf32>
    %14 = arith.addf %11, %13 : vector<4x256xf32>
    %15 = tpu.concatenate %14, %1, %3 in 0 : vector<4x256xf32>, vector<4x256xf32>, vector<4x256xf32> -> vector<12x256xf32>
    %16 = vector.shape_cast %15 : vector<12x256xf32> to vector<3x4x256xf32>
    %cst = arith.constant dense<0xFF800000> : vector<12xf32>
    %17 = vector.multi_reduction <maximumf>, %15, %cst [1] : vector<12x256xf32> to vector<12xf32>
    %18 = vector.shape_cast %17 : vector<12xf32> to vector<3x1x4xf32>
    %cst_9 = arith.constant dense<0.000000e+00> : vector<12xf32>
    %19 = vector.multi_reduction <add>, %15, %cst_9 [1] : vector<12x256xf32> to vector<12xf32>
    %cst_10 = arith.constant 3.906250e-03 : f32
    %20 = vector.broadcast %cst_10 : f32 to vector<12xf32>
    %21 = arith.mulf %19, %20 : vector<12xf32>
    %22 = vector.shape_cast %21 : vector<12xf32> to vector<3x1x4xf32>
    %c0_11 = arith.constant 0 : index
    %c0_12 = arith.constant 0 : index
    %c0_13 = arith.constant 0 : index
    %23 = vector.load %arg5[%c0_11, %c0_12, %c0_13] : memref<3x4x4xf32, #tpu.memory_space<vmem>>, vector<3x4x4xf32>
    %24 = vector.shape_cast %23 : vector<3x4x4xf32> to vector<3x1x4x4xf32>
    %25 = vector.shape_cast %18 : vector<3x1x4xf32> to vector<3x1x1x4xf32>
    %26 = vector.broadcast %25 : vector<3x1x1x4xf32> to vector<3x1x4x4xf32>
    %27 = arith.mulf %24, %26 : vector<3x1x4x4xf32>
    %cst_14 = arith.constant dense<0.000000e+00> : vector<3x1x4xf32>
    %28 = vector.multi_reduction <add>, %27, %cst_14 [3] : vector<3x1x4x4xf32> to vector<3x1x4xf32>
    %c0_15 = arith.constant 0 : index
    %c0_16 = arith.constant 0 : index
    %c0_17 = arith.constant 0 : index
    %29 = vector.load %arg6[%c0_15, %c0_16, %c0_17] : memref<3x4x4xf32, #tpu.memory_space<vmem>>, vector<3x4x4xf32>
    %30 = vector.shape_cast %29 : vector<3x4x4xf32> to vector<3x1x4x4xf32>
    %31 = vector.shape_cast %22 : vector<3x1x4xf32> to vector<3x1x1x4xf32>
    %32 = vector.broadcast %31 : vector<3x1x1x4xf32> to vector<3x1x4x4xf32>
    %33 = arith.mulf %30, %32 : vector<3x1x4x4xf32>
    %cst_18 = arith.constant dense<0.000000e+00> : vector<3x1x4xf32>
    %34 = vector.multi_reduction <add>, %33, %cst_18 [3] : vector<3x1x4x4xf32> to vector<3x1x4xf32>
    %35 = arith.addf %28, %34 : vector<3x1x4xf32>
    %c0_19 = arith.constant 0 : index
    %c0_20 = arith.constant 0 : index
    %c0_21 = arith.constant 0 : index
    %36 = vector.load %arg7[%c0_19, %c0_20, %c0_21] : memref<3x1x4xf32, #tpu.memory_space<vmem>>, vector<3x1x4xf32>
    %37 = arith.addf %35, %36 : vector<3x1x4xf32>
    %c0_22 = arith.constant 0 : index
    %c0_23 = arith.constant 0 : index
    %c0_24 = arith.constant 0 : index
    %38 = vector.load %arg8[%c0_22, %c0_23, %c0_24] : memref<3x1x4xf32, #tpu.memory_space<vmem>>, vector<3x1x4xf32>
    %39 = arith.addf %37, %38 : vector<3x1x4xf32>
    %40 = math.tanh %39 : vector<3x1x4xf32>
    %41 = vector.shape_cast %40 : vector<3x1x4xf32> to vector<3x4xf32>
    %cst_25 = arith.constant dense<0xFF800000> : vector<3x256xf32>
    %42 = vector.multi_reduction <maximumf>, %16, %cst_25 [1] : vector<3x4x256xf32> to vector<3x256xf32>
    %cst_26 = arith.constant dense<0.000000e+00> : vector<3x256xf32>
    %43 = vector.multi_reduction <add>, %16, %cst_26 [1] : vector<3x4x256xf32> to vector<3x256xf32>
    %cst_27 = arith.constant 2.500000e-01 : f32
    %44 = vector.broadcast %cst_27 : f32 to vector<3x256xf32>
    %45 = arith.mulf %43, %44 : vector<3x256xf32>
    %46 = vector.shape_cast %42 : vector<3x256xf32> to vector<3x1x256xf32>
    %47 = vector.shape_cast %46 : vector<3x1x256xf32> to vector<3x1x256xf32>
    %48 = vector.broadcast %47 : vector<3x1x256xf32> to vector<3x4x256xf32>
    %49 = vector.shape_cast %48 : vector<3x4x256xf32> to vector<12x256xf32>
    %50 = vector.shape_cast %45 : vector<3x256xf32> to vector<3x1x256xf32>
    %51 = vector.shape_cast %50 : vector<3x1x256xf32> to vector<3x1x256xf32>
    %52 = vector.broadcast %51 : vector<3x1x256xf32> to vector<3x4x256xf32>
    %53 = vector.shape_cast %52 : vector<3x4x256xf32> to vector<12x256xf32>
    %c0_28 = arith.constant 0 : index
    %c0_29 = arith.constant 0 : index
    %54 = vector.load %arg9[%c0_28, %c0_29] : memref<12x9xf32, #tpu.memory_space<vmem>>, vector<12x9xf32>
    %c0_30 = arith.constant 0 : index
    %c0_31 = arith.constant 0 : index
    %55 = vector.load %arg10[%c0_30, %c0_31] : memref<12x9xf32, #tpu.memory_space<vmem>>, vector<12x9xf32>
    %c0_32 = arith.constant 0 : index
    %c0_33 = arith.constant 0 : index
    %56 = vector.load %arg12[%c0_32, %c0_33] : memref<12x9xf32, #tpu.memory_space<vmem>>, vector<12x9xf32>
    %cst_34 = arith.constant 0.000000e+00 : f32
    %57 = vector.broadcast %cst_34 : f32 to vector<12x256xf32>
    %58 = vector.extract_strided_slice %54 {offsets = [0, 0], sizes = [12, 1], strides = [1, 1]} : vector<12x9xf32> to vector<12x1xf32>
    %59 = vector.extract_strided_slice %49 {offsets = [0, 239], sizes = [12, 17], strides = [1, 1]} : vector<12x256xf32> to vector<12x17xf32>
    %60 = vector.extract_strided_slice %49 {offsets = [0, 0], sizes = [12, 239], strides = [1, 1]} : vector<12x256xf32> to vector<12x239xf32>
    %61 = tpu.concatenate %59, %60 in 1 : vector<12x17xf32>, vector<12x239xf32> -> vector<12x256xf32>
    %62 = vector.broadcast %58 : vector<12x1xf32> to vector<12x256xf32>
    %63 = arith.mulf %62, %61 : vector<12x256xf32>
    %64 = vector.extract_strided_slice %55 {offsets = [0, 0], sizes = [12, 1], strides = [1, 1]} : vector<12x9xf32> to vector<12x1xf32>
    %65 = vector.extract_strided_slice %53 {offsets = [0, 239], sizes = [12, 17], strides = [1, 1]} : vector<12x256xf32> to vector<12x17xf32>
    %66 = vector.extract_strided_slice %53 {offsets = [0, 0], sizes = [12, 239], strides = [1, 1]} : vector<12x256xf32> to vector<12x239xf32>
    %67 = tpu.concatenate %65, %66 in 1 : vector<12x17xf32>, vector<12x239xf32> -> vector<12x256xf32>
    %68 = vector.broadcast %64 : vector<12x1xf32> to vector<12x256xf32>
    %69 = arith.mulf %68, %67 : vector<12x256xf32>
    %70 = arith.addf %63, %69 : vector<12x256xf32>
    %71 = vector.extract_strided_slice %9 {offsets = [0, 0], sizes = [1, 256], strides = [1, 1]} : vector<9x256xf32> to vector<1x256xf32>
    %72 = vector.broadcast %71 : vector<1x256xf32> to vector<12x256xf32>
    %73 = arith.mulf %70, %72 : vector<12x256xf32>
    %74 = arith.addf %57, %73 : vector<12x256xf32>
    %75 = vector.extract_strided_slice %54 {offsets = [0, 1], sizes = [12, 1], strides = [1, 1]} : vector<12x9xf32> to vector<12x1xf32>
    %76 = vector.extract_strided_slice %49 {offsets = [0, 240], sizes = [12, 16], strides = [1, 1]} : vector<12x256xf32> to vector<12x16xf32>
    %77 = vector.extract_strided_slice %49 {offsets = [0, 0], sizes = [12, 240], strides = [1, 1]} : vector<12x256xf32> to vector<12x240xf32>
    %78 = tpu.concatenate %76, %77 in 1 : vector<12x16xf32>, vector<12x240xf32> -> vector<12x256xf32>
    %79 = vector.broadcast %75 : vector<12x1xf32> to vector<12x256xf32>
    %80 = arith.mulf %79, %78 : vector<12x256xf32>
    %81 = vector.extract_strided_slice %55 {offsets = [0, 1], sizes = [12, 1], strides = [1, 1]} : vector<12x9xf32> to vector<12x1xf32>
    %82 = vector.extract_strided_slice %53 {offsets = [0, 240], sizes = [12, 16], strides = [1, 1]} : vector<12x256xf32> to vector<12x16xf32>
    %83 = vector.extract_strided_slice %53 {offsets = [0, 0], sizes = [12, 240], strides = [1, 1]} : vector<12x256xf32> to vector<12x240xf32>
    %84 = tpu.concatenate %82, %83 in 1 : vector<12x16xf32>, vector<12x240xf32> -> vector<12x256xf32>
    %85 = vector.broadcast %81 : vector<12x1xf32> to vector<12x256xf32>
    %86 = arith.mulf %85, %84 : vector<12x256xf32>
    %87 = arith.addf %80, %86 : vector<12x256xf32>
    %88 = vector.extract_strided_slice %9 {offsets = [1, 0], sizes = [1, 256], strides = [1, 1]} : vector<9x256xf32> to vector<1x256xf32>
    %89 = vector.broadcast %88 : vector<1x256xf32> to vector<12x256xf32>
    %90 = arith.mulf %87, %89 : vector<12x256xf32>
    %91 = arith.addf %74, %90 : vector<12x256xf32>
    %92 = vector.extract_strided_slice %54 {offsets = [0, 2], sizes = [12, 1], strides = [1, 1]} : vector<12x9xf32> to vector<12x1xf32>
    %93 = vector.extract_strided_slice %49 {offsets = [0, 241], sizes = [12, 15], strides = [1, 1]} : vector<12x256xf32> to vector<12x15xf32>
    %94 = vector.extract_strided_slice %49 {offsets = [0, 0], sizes = [12, 241], strides = [1, 1]} : vector<12x256xf32> to vector<12x241xf32>
    %95 = tpu.concatenate %93, %94 in 1 : vector<12x15xf32>, vector<12x241xf32> -> vector<12x256xf32>
    %96 = vector.broadcast %92 : vector<12x1xf32> to vector<12x256xf32>
    %97 = arith.mulf %96, %95 : vector<12x256xf32>
    %98 = vector.extract_strided_slice %55 {offsets = [0, 2], sizes = [12, 1], strides = [1, 1]} : vector<12x9xf32> to vector<12x1xf32>
    %99 = vector.extract_strided_slice %53 {offsets = [0, 241], sizes = [12, 15], strides = [1, 1]} : vector<12x256xf32> to vector<12x15xf32>
    %100 = vector.extract_strided_slice %53 {offsets = [0, 0], sizes = [12, 241], strides = [1, 1]} : vector<12x256xf32> to vector<12x241xf32>
    %101 = tpu.concatenate %99, %100 in 1 : vector<12x15xf32>, vector<12x241xf32> -> vector<12x256xf32>
    %102 = vector.broadcast %98 : vector<12x1xf32> to vector<12x256xf32>
    %103 = arith.mulf %102, %101 : vector<12x256xf32>
    %104 = arith.addf %97, %103 : vector<12x256xf32>
    %105 = vector.extract_strided_slice %9 {offsets = [2, 0], sizes = [1, 256], strides = [1, 1]} : vector<9x256xf32> to vector<1x256xf32>
    %106 = vector.broadcast %105 : vector<1x256xf32> to vector<12x256xf32>
    %107 = arith.mulf %104, %106 : vector<12x256xf32>
    %108 = arith.addf %91, %107 : vector<12x256xf32>
    %109 = vector.extract_strided_slice %54 {offsets = [0, 3], sizes = [12, 1], strides = [1, 1]} : vector<12x9xf32> to vector<12x1xf32>
    %110 = vector.extract_strided_slice %49 {offsets = [0, 255], sizes = [12, 1], strides = [1, 1]} : vector<12x256xf32> to vector<12x1xf32>
    %111 = vector.extract_strided_slice %49 {offsets = [0, 0], sizes = [12, 255], strides = [1, 1]} : vector<12x256xf32> to vector<12x255xf32>
    %112 = tpu.concatenate %110, %111 in 1 : vector<12x1xf32>, vector<12x255xf32> -> vector<12x256xf32>
    %113 = vector.broadcast %109 : vector<12x1xf32> to vector<12x256xf32>
    %114 = arith.mulf %113, %112 : vector<12x256xf32>
    %115 = vector.extract_strided_slice %55 {offsets = [0, 3], sizes = [12, 1], strides = [1, 1]} : vector<12x9xf32> to vector<12x1xf32>
    %116 = vector.extract_strided_slice %53 {offsets = [0, 255], sizes = [12, 1], strides = [1, 1]} : vector<12x256xf32> to vector<12x1xf32>
    %117 = vector.extract_strided_slice %53 {offsets = [0, 0], sizes = [12, 255], strides = [1, 1]} : vector<12x256xf32> to vector<12x255xf32>
    %118 = tpu.concatenate %116, %117 in 1 : vector<12x1xf32>, vector<12x255xf32> -> vector<12x256xf32>
    %119 = vector.broadcast %115 : vector<12x1xf32> to vector<12x256xf32>
    %120 = arith.mulf %119, %118 : vector<12x256xf32>
    %121 = arith.addf %114, %120 : vector<12x256xf32>
    %122 = vector.extract_strided_slice %9 {offsets = [3, 0], sizes = [1, 256], strides = [1, 1]} : vector<9x256xf32> to vector<1x256xf32>
    %123 = vector.broadcast %122 : vector<1x256xf32> to vector<12x256xf32>
    %124 = arith.mulf %121, %123 : vector<12x256xf32>
    %125 = arith.addf %108, %124 : vector<12x256xf32>
    %126 = vector.extract_strided_slice %54 {offsets = [0, 4], sizes = [12, 1], strides = [1, 1]} : vector<12x9xf32> to vector<12x1xf32>
    %127 = vector.broadcast %126 : vector<12x1xf32> to vector<12x256xf32>
    %128 = arith.mulf %127, %49 : vector<12x256xf32>
    %129 = vector.extract_strided_slice %55 {offsets = [0, 4], sizes = [12, 1], strides = [1, 1]} : vector<12x9xf32> to vector<12x1xf32>
    %130 = vector.broadcast %129 : vector<12x1xf32> to vector<12x256xf32>
    %131 = arith.mulf %130, %53 : vector<12x256xf32>
    %132 = arith.addf %128, %131 : vector<12x256xf32>
    %133 = arith.addf %125, %132 : vector<12x256xf32>
    %134 = vector.extract_strided_slice %54 {offsets = [0, 5], sizes = [12, 1], strides = [1, 1]} : vector<12x9xf32> to vector<12x1xf32>
    %135 = vector.extract_strided_slice %49 {offsets = [0, 1], sizes = [12, 255], strides = [1, 1]} : vector<12x256xf32> to vector<12x255xf32>
    %136 = vector.extract_strided_slice %49 {offsets = [0, 0], sizes = [12, 1], strides = [1, 1]} : vector<12x256xf32> to vector<12x1xf32>
    %137 = tpu.concatenate %135, %136 in 1 : vector<12x255xf32>, vector<12x1xf32> -> vector<12x256xf32>
    %138 = vector.broadcast %134 : vector<12x1xf32> to vector<12x256xf32>
    %139 = arith.mulf %138, %137 : vector<12x256xf32>
    %140 = vector.extract_strided_slice %55 {offsets = [0, 5], sizes = [12, 1], strides = [1, 1]} : vector<12x9xf32> to vector<12x1xf32>
    %141 = vector.extract_strided_slice %53 {offsets = [0, 1], sizes = [12, 255], strides = [1, 1]} : vector<12x256xf32> to vector<12x255xf32>
    %142 = vector.extract_strided_slice %53 {offsets = [0, 0], sizes = [12, 1], strides = [1, 1]} : vector<12x256xf32> to vector<12x1xf32>
    %143 = tpu.concatenate %141, %142 in 1 : vector<12x255xf32>, vector<12x1xf32> -> vector<12x256xf32>
    %144 = vector.broadcast %140 : vector<12x1xf32> to vector<12x256xf32>
    %145 = arith.mulf %144, %143 : vector<12x256xf32>
    %146 = arith.addf %139, %145 : vector<12x256xf32>
    %147 = vector.extract_strided_slice %9 {offsets = [5, 0], sizes = [1, 256], strides = [1, 1]} : vector<9x256xf32> to vector<1x256xf32>
    %148 = vector.broadcast %147 : vector<1x256xf32> to vector<12x256xf32>
    %149 = arith.mulf %146, %148 : vector<12x256xf32>
    %150 = arith.addf %133, %149 : vector<12x256xf32>
    %151 = vector.extract_strided_slice %54 {offsets = [0, 6], sizes = [12, 1], strides = [1, 1]} : vector<12x9xf32> to vector<12x1xf32>
    %152 = vector.extract_strided_slice %49 {offsets = [0, 15], sizes = [12, 241], strides = [1, 1]} : vector<12x256xf32> to vector<12x241xf32>
    %153 = vector.extract_strided_slice %49 {offsets = [0, 0], sizes = [12, 15], strides = [1, 1]} : vector<12x256xf32> to vector<12x15xf32>
    %154 = tpu.concatenate %152, %153 in 1 : vector<12x241xf32>, vector<12x15xf32> -> vector<12x256xf32>
    %155 = vector.broadcast %151 : vector<12x1xf32> to vector<12x256xf32>
    %156 = arith.mulf %155, %154 : vector<12x256xf32>
    %157 = vector.extract_strided_slice %55 {offsets = [0, 6], sizes = [12, 1], strides = [1, 1]} : vector<12x9xf32> to vector<12x1xf32>
    %158 = vector.extract_strided_slice %53 {offsets = [0, 15], sizes = [12, 241], strides = [1, 1]} : vector<12x256xf32> to vector<12x241xf32>
    %159 = vector.extract_strided_slice %53 {offsets = [0, 0], sizes = [12, 15], strides = [1, 1]} : vector<12x256xf32> to vector<12x15xf32>
    %160 = tpu.concatenate %158, %159 in 1 : vector<12x241xf32>, vector<12x15xf32> -> vector<12x256xf32>
    %161 = vector.broadcast %157 : vector<12x1xf32> to vector<12x256xf32>
    %162 = arith.mulf %161, %160 : vector<12x256xf32>
    %163 = arith.addf %156, %162 : vector<12x256xf32>
    %164 = vector.extract_strided_slice %9 {offsets = [6, 0], sizes = [1, 256], strides = [1, 1]} : vector<9x256xf32> to vector<1x256xf32>
    %165 = vector.broadcast %164 : vector<1x256xf32> to vector<12x256xf32>
    %166 = arith.mulf %163, %165 : vector<12x256xf32>
    %167 = arith.addf %150, %166 : vector<12x256xf32>
    %168 = vector.extract_strided_slice %54 {offsets = [0, 7], sizes = [12, 1], strides = [1, 1]} : vector<12x9xf32> to vector<12x1xf32>
    %169 = vector.extract_strided_slice %49 {offsets = [0, 16], sizes = [12, 240], strides = [1, 1]} : vector<12x256xf32> to vector<12x240xf32>
    %170 = vector.extract_strided_slice %49 {offsets = [0, 0], sizes = [12, 16], strides = [1, 1]} : vector<12x256xf32> to vector<12x16xf32>
    %171 = tpu.concatenate %169, %170 in 1 : vector<12x240xf32>, vector<12x16xf32> -> vector<12x256xf32>
    %172 = vector.broadcast %168 : vector<12x1xf32> to vector<12x256xf32>
    %173 = arith.mulf %172, %171 : vector<12x256xf32>
    %174 = vector.extract_strided_slice %55 {offsets = [0, 7], sizes = [12, 1], strides = [1, 1]} : vector<12x9xf32> to vector<12x1xf32>
    %175 = vector.extract_strided_slice %53 {offsets = [0, 16], sizes = [12, 240], strides = [1, 1]} : vector<12x256xf32> to vector<12x240xf32>
    %176 = vector.extract_strided_slice %53 {offsets = [0, 0], sizes = [12, 16], strides = [1, 1]} : vector<12x256xf32> to vector<12x16xf32>
    %177 = tpu.concatenate %175, %176 in 1 : vector<12x240xf32>, vector<12x16xf32> -> vector<12x256xf32>
    %178 = vector.broadcast %174 : vector<12x1xf32> to vector<12x256xf32>
    %179 = arith.mulf %178, %177 : vector<12x256xf32>
    %180 = arith.addf %173, %179 : vector<12x256xf32>
    %181 = vector.extract_strided_slice %9 {offsets = [7, 0], sizes = [1, 256], strides = [1, 1]} : vector<9x256xf32> to vector<1x256xf32>
    %182 = vector.broadcast %181 : vector<1x256xf32> to vector<12x256xf32>
    %183 = arith.mulf %180, %182 : vector<12x256xf32>
    %184 = arith.addf %167, %183 : vector<12x256xf32>
    %185 = vector.extract_strided_slice %54 {offsets = [0, 8], sizes = [12, 1], strides = [1, 1]} : vector<12x9xf32> to vector<12x1xf32>
    %186 = vector.extract_strided_slice %49 {offsets = [0, 17], sizes = [12, 239], strides = [1, 1]} : vector<12x256xf32> to vector<12x239xf32>
    %187 = vector.extract_strided_slice %49 {offsets = [0, 0], sizes = [12, 17], strides = [1, 1]} : vector<12x256xf32> to vector<12x17xf32>
    %188 = tpu.concatenate %186, %187 in 1 : vector<12x239xf32>, vector<12x17xf32> -> vector<12x256xf32>
    %189 = vector.broadcast %185 : vector<12x1xf32> to vector<12x256xf32>
    %190 = arith.mulf %189, %188 : vector<12x256xf32>
    %191 = vector.extract_strided_slice %55 {offsets = [0, 8], sizes = [12, 1], strides = [1, 1]} : vector<12x9xf32> to vector<12x1xf32>
    %192 = vector.extract_strided_slice %53 {offsets = [0, 17], sizes = [12, 239], strides = [1, 1]} : vector<12x256xf32> to vector<12x239xf32>
    %193 = vector.extract_strided_slice %53 {offsets = [0, 0], sizes = [12, 17], strides = [1, 1]} : vector<12x256xf32> to vector<12x17xf32>
    %194 = tpu.concatenate %192, %193 in 1 : vector<12x239xf32>, vector<12x17xf32> -> vector<12x256xf32>
    %195 = vector.broadcast %191 : vector<12x1xf32> to vector<12x256xf32>
    %196 = arith.mulf %195, %194 : vector<12x256xf32>
    %197 = arith.addf %190, %196 : vector<12x256xf32>
    %198 = vector.extract_strided_slice %9 {offsets = [8, 0], sizes = [1, 256], strides = [1, 1]} : vector<9x256xf32> to vector<1x256xf32>
    %199 = vector.broadcast %198 : vector<1x256xf32> to vector<12x256xf32>
    %200 = arith.mulf %197, %199 : vector<12x256xf32>
    %201 = arith.addf %184, %200 : vector<12x256xf32>
    %c0_35 = arith.constant 0 : index
    %c0_36 = arith.constant 0 : index
    %202 = vector.load %arg11[%c0_35, %c0_36] : memref<12x1xf32, #tpu.memory_space<vmem>>, vector<12x1xf32>
    %203 = vector.broadcast %202 : vector<12x1xf32> to vector<12x256xf32>
    %204 = arith.addf %201, %203 : vector<12x256xf32>
    %cst_37 = arith.constant 0.000000e+00 : f32
    %205 = vector.broadcast %cst_37 : f32 to vector<12x256xf32>
    %206 = vector.extract_strided_slice %56 {offsets = [0, 0], sizes = [12, 1], strides = [1, 1]} : vector<12x9xf32> to vector<12x1xf32>
    %207 = vector.extract_strided_slice %204 {offsets = [0, 239], sizes = [12, 17], strides = [1, 1]} : vector<12x256xf32> to vector<12x17xf32>
    %208 = vector.extract_strided_slice %204 {offsets = [0, 0], sizes = [12, 239], strides = [1, 1]} : vector<12x256xf32> to vector<12x239xf32>
    %209 = tpu.concatenate %207, %208 in 1 : vector<12x17xf32>, vector<12x239xf32> -> vector<12x256xf32>
    %210 = vector.broadcast %206 : vector<12x1xf32> to vector<12x256xf32>
    %211 = arith.mulf %210, %209 : vector<12x256xf32>
    %212 = vector.extract_strided_slice %9 {offsets = [0, 0], sizes = [1, 256], strides = [1, 1]} : vector<9x256xf32> to vector<1x256xf32>
    %213 = vector.broadcast %212 : vector<1x256xf32> to vector<12x256xf32>
    %214 = arith.mulf %211, %213 : vector<12x256xf32>
    %215 = arith.addf %205, %214 : vector<12x256xf32>
    %216 = vector.extract_strided_slice %56 {offsets = [0, 1], sizes = [12, 1], strides = [1, 1]} : vector<12x9xf32> to vector<12x1xf32>
    %217 = vector.extract_strided_slice %204 {offsets = [0, 240], sizes = [12, 16], strides = [1, 1]} : vector<12x256xf32> to vector<12x16xf32>
    %218 = vector.extract_strided_slice %204 {offsets = [0, 0], sizes = [12, 240], strides = [1, 1]} : vector<12x256xf32> to vector<12x240xf32>
    %219 = tpu.concatenate %217, %218 in 1 : vector<12x16xf32>, vector<12x240xf32> -> vector<12x256xf32>
    %220 = vector.broadcast %216 : vector<12x1xf32> to vector<12x256xf32>
    %221 = arith.mulf %220, %219 : vector<12x256xf32>
    %222 = vector.extract_strided_slice %9 {offsets = [1, 0], sizes = [1, 256], strides = [1, 1]} : vector<9x256xf32> to vector<1x256xf32>
    %223 = vector.broadcast %222 : vector<1x256xf32> to vector<12x256xf32>
    %224 = arith.mulf %221, %223 : vector<12x256xf32>
    %225 = arith.addf %215, %224 : vector<12x256xf32>
    %226 = vector.extract_strided_slice %56 {offsets = [0, 2], sizes = [12, 1], strides = [1, 1]} : vector<12x9xf32> to vector<12x1xf32>
    %227 = vector.extract_strided_slice %204 {offsets = [0, 241], sizes = [12, 15], strides = [1, 1]} : vector<12x256xf32> to vector<12x15xf32>
    %228 = vector.extract_strided_slice %204 {offsets = [0, 0], sizes = [12, 241], strides = [1, 1]} : vector<12x256xf32> to vector<12x241xf32>
    %229 = tpu.concatenate %227, %228 in 1 : vector<12x15xf32>, vector<12x241xf32> -> vector<12x256xf32>
    %230 = vector.broadcast %226 : vector<12x1xf32> to vector<12x256xf32>
    %231 = arith.mulf %230, %229 : vector<12x256xf32>
    %232 = vector.extract_strided_slice %9 {offsets = [2, 0], sizes = [1, 256], strides = [1, 1]} : vector<9x256xf32> to vector<1x256xf32>
    %233 = vector.broadcast %232 : vector<1x256xf32> to vector<12x256xf32>
    %234 = arith.mulf %231, %233 : vector<12x256xf32>
    %235 = arith.addf %225, %234 : vector<12x256xf32>
    %236 = vector.extract_strided_slice %56 {offsets = [0, 3], sizes = [12, 1], strides = [1, 1]} : vector<12x9xf32> to vector<12x1xf32>
    %237 = vector.extract_strided_slice %204 {offsets = [0, 255], sizes = [12, 1], strides = [1, 1]} : vector<12x256xf32> to vector<12x1xf32>
    %238 = vector.extract_strided_slice %204 {offsets = [0, 0], sizes = [12, 255], strides = [1, 1]} : vector<12x256xf32> to vector<12x255xf32>
    %239 = tpu.concatenate %237, %238 in 1 : vector<12x1xf32>, vector<12x255xf32> -> vector<12x256xf32>
    %240 = vector.broadcast %236 : vector<12x1xf32> to vector<12x256xf32>
    %241 = arith.mulf %240, %239 : vector<12x256xf32>
    %242 = vector.extract_strided_slice %9 {offsets = [3, 0], sizes = [1, 256], strides = [1, 1]} : vector<9x256xf32> to vector<1x256xf32>
    %243 = vector.broadcast %242 : vector<1x256xf32> to vector<12x256xf32>
    %244 = arith.mulf %241, %243 : vector<12x256xf32>
    %245 = arith.addf %235, %244 : vector<12x256xf32>
    %246 = vector.extract_strided_slice %56 {offsets = [0, 4], sizes = [12, 1], strides = [1, 1]} : vector<12x9xf32> to vector<12x1xf32>
    %247 = vector.broadcast %246 : vector<12x1xf32> to vector<12x256xf32>
    %248 = arith.mulf %247, %204 : vector<12x256xf32>
    %249 = arith.addf %245, %248 : vector<12x256xf32>
    %250 = vector.extract_strided_slice %56 {offsets = [0, 5], sizes = [12, 1], strides = [1, 1]} : vector<12x9xf32> to vector<12x1xf32>
    %251 = vector.extract_strided_slice %204 {offsets = [0, 1], sizes = [12, 255], strides = [1, 1]} : vector<12x256xf32> to vector<12x255xf32>
    %252 = vector.extract_strided_slice %204 {offsets = [0, 0], sizes = [12, 1], strides = [1, 1]} : vector<12x256xf32> to vector<12x1xf32>
    %253 = tpu.concatenate %251, %252 in 1 : vector<12x255xf32>, vector<12x1xf32> -> vector<12x256xf32>
    %254 = vector.broadcast %250 : vector<12x1xf32> to vector<12x256xf32>
    %255 = arith.mulf %254, %253 : vector<12x256xf32>
    %256 = vector.extract_strided_slice %9 {offsets = [5, 0], sizes = [1, 256], strides = [1, 1]} : vector<9x256xf32> to vector<1x256xf32>
    %257 = vector.broadcast %256 : vector<1x256xf32> to vector<12x256xf32>
    %258 = arith.mulf %255, %257 : vector<12x256xf32>
    %259 = arith.addf %249, %258 : vector<12x256xf32>
    %260 = vector.extract_strided_slice %56 {offsets = [0, 6], sizes = [12, 1], strides = [1, 1]} : vector<12x9xf32> to vector<12x1xf32>
    %261 = vector.extract_strided_slice %204 {offsets = [0, 15], sizes = [12, 241], strides = [1, 1]} : vector<12x256xf32> to vector<12x241xf32>
    %262 = vector.extract_strided_slice %204 {offsets = [0, 0], sizes = [12, 15], strides = [1, 1]} : vector<12x256xf32> to vector<12x15xf32>
    %263 = tpu.concatenate %261, %262 in 1 : vector<12x241xf32>, vector<12x15xf32> -> vector<12x256xf32>
    %264 = vector.broadcast %260 : vector<12x1xf32> to vector<12x256xf32>
    %265 = arith.mulf %264, %263 : vector<12x256xf32>
    %266 = vector.extract_strided_slice %9 {offsets = [6, 0], sizes = [1, 256], strides = [1, 1]} : vector<9x256xf32> to vector<1x256xf32>
    %267 = vector.broadcast %266 : vector<1x256xf32> to vector<12x256xf32>
    %268 = arith.mulf %265, %267 : vector<12x256xf32>
    %269 = arith.addf %259, %268 : vector<12x256xf32>
    %270 = vector.extract_strided_slice %56 {offsets = [0, 7], sizes = [12, 1], strides = [1, 1]} : vector<12x9xf32> to vector<12x1xf32>
    %271 = vector.extract_strided_slice %204 {offsets = [0, 16], sizes = [12, 240], strides = [1, 1]} : vector<12x256xf32> to vector<12x240xf32>
    %272 = vector.extract_strided_slice %204 {offsets = [0, 0], sizes = [12, 16], strides = [1, 1]} : vector<12x256xf32> to vector<12x16xf32>
    %273 = tpu.concatenate %271, %272 in 1 : vector<12x240xf32>, vector<12x16xf32> -> vector<12x256xf32>
    %274 = vector.broadcast %270 : vector<12x1xf32> to vector<12x256xf32>
    %275 = arith.mulf %274, %273 : vector<12x256xf32>
    %276 = vector.extract_strided_slice %9 {offsets = [7, 0], sizes = [1, 256], strides = [1, 1]} : vector<9x256xf32> to vector<1x256xf32>
    %277 = vector.broadcast %276 : vector<1x256xf32> to vector<12x256xf32>
    %278 = arith.mulf %275, %277 : vector<12x256xf32>
    %279 = arith.addf %269, %278 : vector<12x256xf32>
    %280 = vector.extract_strided_slice %56 {offsets = [0, 8], sizes = [12, 1], strides = [1, 1]} : vector<12x9xf32> to vector<12x1xf32>
    %281 = vector.extract_strided_slice %204 {offsets = [0, 17], sizes = [12, 239], strides = [1, 1]} : vector<12x256xf32> to vector<12x239xf32>
    %282 = vector.extract_strided_slice %204 {offsets = [0, 0], sizes = [12, 17], strides = [1, 1]} : vector<12x256xf32> to vector<12x17xf32>
    %283 = tpu.concatenate %281, %282 in 1 : vector<12x239xf32>, vector<12x17xf32> -> vector<12x256xf32>
    %284 = vector.broadcast %280 : vector<12x1xf32> to vector<12x256xf32>
    %285 = arith.mulf %284, %283 : vector<12x256xf32>
    %286 = vector.extract_strided_slice %9 {offsets = [8, 0], sizes = [1, 256], strides = [1, 1]} : vector<9x256xf32> to vector<1x256xf32>
    %287 = vector.broadcast %286 : vector<1x256xf32> to vector<12x256xf32>
    %288 = arith.mulf %285, %287 : vector<12x256xf32>
    %289 = arith.addf %279, %288 : vector<12x256xf32>
    %290 = vector.shape_cast %289 : vector<12x256xf32> to vector<3x4x256xf32>
    %cst_38 = arith.constant dense<0.000000e+00> : vector<3x256xf32>
    %291 = vector.multi_reduction <add>, %290, %cst_38 [1] : vector<3x4x256xf32> to vector<3x256xf32>
    %c0_39 = arith.constant 0 : index
    %c0_40 = arith.constant 0 : index
    %292 = vector.load %arg13[%c0_39, %c0_40] : memref<3x1xf32, #tpu.memory_space<vmem>>, vector<3x1xf32>
    %293 = vector.broadcast %292 : vector<3x1xf32> to vector<3x256xf32>
    %294 = arith.addf %291, %293 : vector<3x256xf32>
    %295 = math.tanh %294 : vector<3x256xf32>
    %296 = vector.shape_cast %41 : vector<3x4xf32> to vector<3x4x1xf32>
    %297 = vector.broadcast %296 : vector<3x4x1xf32> to vector<3x4x256xf32>
    %298 = arith.mulf %16, %297 : vector<3x4x256xf32>
    %299 = vector.shape_cast %295 : vector<3x256xf32> to vector<3x1x256xf32>
    %300 = vector.broadcast %299 : vector<3x1x256xf32> to vector<3x4x256xf32>
    %301 = arith.mulf %298, %300 : vector<3x4x256xf32>
    %302 = vector.extract_strided_slice %301 {offsets = [0, 0, 0], sizes = [1, 4, 256], strides = [1, 1, 1]} : vector<3x4x256xf32> to vector<1x4x256xf32>
    %303 = vector.extract_strided_slice %301 {offsets = [1, 0, 0], sizes = [1, 4, 256], strides = [1, 1, 1]} : vector<3x4x256xf32> to vector<1x4x256xf32>
    %304 = vector.extract_strided_slice %301 {offsets = [2, 0, 0], sizes = [1, 4, 256], strides = [1, 1, 1]} : vector<3x4x256xf32> to vector<1x4x256xf32>
    %c0_41 = arith.constant 0 : index
    %c0_42 = arith.constant 0 : index
    %c0_43 = arith.constant 0 : index
    %305 = vector.load %arg1[%c0_41, %c0_42, %c0_43] : memref<1x4x256xf32, #tpu.memory_space<vmem>>, vector<1x4x256xf32>
    %306 = arith.addf %303, %302 : vector<1x4x256xf32>
    %307 = vector.shape_cast %7 : vector<1x256xf32> to vector<1x1x256xf32>
    %308 = vector.broadcast %307 : vector<1x1x256xf32> to vector<1x4x256xf32>
    %309 = arith.mulf %306, %308 : vector<1x4x256xf32>
    %310 = arith.addf %305, %309 : vector<1x4x256xf32>
    %c0_44 = arith.constant 0 : index
    %c0_45 = arith.constant 0 : index
    %c0_46 = arith.constant 0 : index
    %311 = vector.load %arg14[%c0_44, %c0_45, %c0_46] : memref<1x4x256xf32, #tpu.memory_space<vmem>>, vector<1x4x256xf32>
    tpu.vector_store %arg14[%c0_44, %c0_45, %c0_46], %310 {strides = array<i32>} : memref<1x4x256xf32, #tpu.memory_space<vmem>>, vector<1x4x256xf32>,
    %c0_47 = arith.constant 0 : index
    %c0_48 = arith.constant 0 : index
    %c0_49 = arith.constant 0 : index
    %312 = vector.load %arg2[%c0_47, %c0_48, %c0_49] : memref<1x4x256xf32, #tpu.memory_space<vmem>>, vector<1x4x256xf32>
    %313 = arith.addf %304, %302 : vector<1x4x256xf32>
    %314 = vector.shape_cast %8 : vector<1x256xf32> to vector<1x1x256xf32>
    %315 = vector.broadcast %314 : vector<1x1x256xf32> to vector<1x4x256xf32>
    %316 = arith.mulf %313, %315 : vector<1x4x256xf32>
    %317 = arith.addf %312, %316 : vector<1x4x256xf32>
    %c0_50 = arith.constant 0 : index
    %c0_51 = arith.constant 0 : index
    %c0_52 = arith.constant 0 : index
    %318 = vector.load %arg15[%c0_50, %c0_51, %c0_52] : memref<1x4x256xf32, #tpu.memory_space<vmem>>, vector<1x4x256xf32>
    tpu.vector_store %arg15[%c0_50, %c0_51, %c0_52], %317 {strides = array<i32>} : memref<1x4x256xf32, #tpu.memory_space<vmem>>, vector<1x4x256xf32>,
    return
  }
  func.func @transform_0(%arg0: i32) -> (i32, i32, i32) {
    %c0_i32 = arith.constant 0 : i32
    %c0_i32_0 = arith.constant 0 : i32
    %c0_i32_1 = arith.constant 0 : i32
    return %arg0, %c0_i32, %c0_i32_0 : i32, i32, i32
  }
  func.func @transform_1(%arg0: i32) -> (i32, i32, i32) {
    %c0_i32 = arith.constant 0 : i32
    %c0_i32_0 = arith.constant 0 : i32
    %c0_i32_1 = arith.constant 0 : i32
    return %arg0, %c0_i32, %c0_i32_0 : i32, i32, i32
  }
  func.func @transform_2(%arg0: i32) -> (i32, i32) {
    %c0_i32 = arith.constant 0 : i32
    %c0_i32_0 = arith.constant 0 : i32
    %c0_i32_1 = arith.constant 0 : i32
    return %c0_i32, %c0_i32_0 : i32, i32
  }
  func.func @transform_3(%arg0: i32) -> (i32, i32) {
    %c0_i32 = arith.constant 0 : i32
    %c0_i32_0 = arith.constant 0 : i32
    %c0_i32_1 = arith.constant 0 : i32
    return %c0_i32, %c0_i32_0 : i32, i32
  }
  func.func @transform_4(%arg0: i32) -> (i32, i32, i32) {
    %c0_i32 = arith.constant 0 : i32
    %c0_i32_0 = arith.constant 0 : i32
    %c0_i32_1 = arith.constant 0 : i32
    %c0_i32_2 = arith.constant 0 : i32
    return %c0_i32, %c0_i32_0, %c0_i32_1 : i32, i32, i32
  }
  func.func @transform_5(%arg0: i32) -> (i32, i32, i32) {
    %c0_i32 = arith.constant 0 : i32
    %c0_i32_0 = arith.constant 0 : i32
    %c0_i32_1 = arith.constant 0 : i32
    %c0_i32_2 = arith.constant 0 : i32
    return %c0_i32, %c0_i32_0, %c0_i32_1 : i32, i32, i32
  }
  func.func @transform_6(%arg0: i32) -> (i32, i32, i32) {
    %c0_i32 = arith.constant 0 : i32
    %c0_i32_0 = arith.constant 0 : i32
    %c0_i32_1 = arith.constant 0 : i32
    %c0_i32_2 = arith.constant 0 : i32
    return %c0_i32, %c0_i32_0, %c0_i32_1 : i32, i32, i32
  }
  func.func @transform_7(%arg0: i32) -> (i32, i32, i32) {
    %c0_i32 = arith.constant 0 : i32
    %c0_i32_0 = arith.constant 0 : i32
    %c0_i32_1 = arith.constant 0 : i32
    %c0_i32_2 = arith.constant 0 : i32
    return %c0_i32, %c0_i32_0, %c0_i32_1 : i32, i32, i32
  }
  func.func @transform_8(%arg0: i32) -> (i32, i32) {
    %c0_i32 = arith.constant 0 : i32
    %c0_i32_0 = arith.constant 0 : i32
    %c0_i32_1 = arith.constant 0 : i32
    return %c0_i32, %c0_i32_0 : i32, i32
  }
  func.func @transform_9(%arg0: i32) -> (i32, i32) {
    %c0_i32 = arith.constant 0 : i32
    %c0_i32_0 = arith.constant 0 : i32
    %c0_i32_1 = arith.constant 0 : i32
    return %c0_i32, %c0_i32_0 : i32, i32
  }
  func.func @transform_10(%arg0: i32) -> (i32, i32) {
    %c0_i32 = arith.constant 0 : i32
    %c0_i32_0 = arith.constant 0 : i32
    %c0_i32_1 = arith.constant 0 : i32
    return %c0_i32, %c0_i32_0 : i32, i32
  }
  func.func @transform_11(%arg0: i32) -> (i32, i32) {
    %c0_i32 = arith.constant 0 : i32
    %c0_i32_0 = arith.constant 0 : i32
    %c0_i32_1 = arith.constant 0 : i32
    return %c0_i32, %c0_i32_0 : i32, i32
  }
  func.func @transform_12(%arg0: i32) -> (i32, i32) {
    %c0_i32 = arith.constant 0 : i32
    %c0_i32_0 = arith.constant 0 : i32
    %c0_i32_1 = arith.constant 0 : i32
    return %c0_i32, %c0_i32_0 : i32, i32
  }
  func.func @transform_13(%arg0: i32) -> (i32, i32, i32) {
    %c0_i32 = arith.constant 0 : i32
    %c0_i32_0 = arith.constant 0 : i32
    %c0_i32_1 = arith.constant 0 : i32
    return %arg0, %c0_i32, %c0_i32_0 : i32, i32, i32
  }
  func.func @transform_14(%arg0: i32) -> (i32, i32, i32) {
    %c0_i32 = arith.constant 0 : i32
    %c0_i32_0 = arith.constant 0 : i32
    %c0_i32_1 = arith.constant 0 : i32
    return %arg0, %c0_i32, %c0_i32_0 : i32, i32, i32
  }
}

</mosaic_0001>

<bundles_post_ra>
// kernel: tpu_custom_call.1
= control target key start
LH: loop header
LB: loop body
LE: loop exit
PB: predicated region body
PF: predicated region fallthrough
CT: control target
= control target key end

     0   :  { %s4901_s0 = inlined_call_operand.hbm [shape: f32[2,4,256], index: 0, kind: input, shape index: {}]   ;;  %s4902_s1 = inlined_call_operand.hbm [shape: f32[2,4,256], index: 1, kind: input, shape index: {}]   ;;  %s4903_s2 = inlined_call_operand.hbm [shape: f32[4,256], index: 2, kind: input, shape index: {}]   ;;  %s4904_s3 = inlined_call_operand.vmem [shape: f32[9,256], index: 3, kind: input, shape index: {}]   ;;  %s4905_s4 = inlined_call_operand.hbm [shape: f32[3,4,4], index: 4, kind: input, shape index: {}]   ;;  %s4906_s5 = inlined_call_operand.hbm [shape: f32[3,4,4], index: 5, kind: input, shape index: {}]   ;;  %s4907_s6 = inlined_call_operand.hbm [shape: f32[3,1,4], index: 6, kind: input, shape index: {}]   ;;  %s4908_s7 = inlined_call_operand.hbm [shape: f32[3,1,4], index: 7, kind: input, shape index: {}]   ;;  %s4909_s8 = inlined_call_operand.vmem [shape: f32[12,9], index: 8, kind: input, shape index: {}]   ;;  %s4910_s9 = inlined_call_operand.hbm [shape: f32[12,9], index: 9, kind: input, shape index: {}]   ;;  %s4911_s10 = inlined_call_operand.vmem [shape: f32[12,1], index: 10, kind: input, shape index: {}]   ;;  %s4912_s11 = inlined_call_operand.hbm [shape: f32[12,9], index: 11, kind: input, shape index: {}]   ;;  %s4913_s12 = inlined_call_operand.vmem [shape: f32[3,1], index: 12, kind: input, shape index: {}]   ;;  %s4914_s13 = inlined_call_operand.hbm [shape: f32[2,4,256], index: 13, kind: output, shape index: {0}]   ;;  %s4915_s14 = inlined_call_operand.hbm [shape: f32[2,4,256], index: 14, kind: output, shape index: {1}]  }
   0x1   :  { %5005 = sst [smem:[#allocation94_spill]] %s4903_s2 }
   0x2   :  { %5006 = sst [smem:[#allocation95_spill]] %s4904_s3 }
   0x3   :  { %5007 = sst [smem:[#allocation96_spill]] %s4905_s4 }
   0x4   :  { %5008 = sst [smem:[#allocation97_spill]] %s4906_s5 }
   0x5   :  { %5009 = sst [smem:[#allocation98_spill]] %s4907_s6 }
   0x6   :  { %5010 = sst [smem:[#allocation99_spill]] %s4908_s7 }
   0x7   :  { %5011 = sst [smem:[#allocation100_spill]] %s4910_s9 }
   0x8   :  { %5012 = sst [smem:[#allocation101_spill]] %s4912_s11 }
   0x9   :  { %5013 = sst [smem:[#allocation102_spill]] %s4913_s12 }
   0xa   :  { %5014 = sst [smem:[#allocation103_spill]] %s4914_s13 }
   0xb   :  { %5015 = sst [smem:[#allocation104_spill]] %s4915_s14 }
   0xc   :  { %20 = vsyncpa [#allocation3], 0 }
   0xd   :  { %22 = vsyncpa [#allocation3 + $0x1], 0 }
   0xe   :  { %23 = vsyncpa [#allocation6], 0 }
   0xf   :  { %25 = vsyncpa [#allocation6 + $0x1], 0 }
  0x10   :  { %26 = vsyncpa [#allocation9], 0 }
  0x11   :  { %27 = vsyncpa [#allocation12], 0 }
  0x12   :  { %28 = vsyncpa [#allocation15], 0 }
  0x13   :  { %29 = vsyncpa [#allocation4], 0 }
  0x14   :  { %31 = vsyncpa [#allocation4 + $0x1], 0 }
  0x15   :  { %32 = vsyncpa [#allocation19], 0 }
  0x16   :  { %34 = vsyncpa [#allocation19 + $0x1], 0  ;;  %s3294_s29 = smov 0   ;;  %s3296_s30 = smov 0  }
  0x17   :  { %s3298_s15 = smov 0   ;;  %s3300_s16 = smov 0  }
  0x18 LB: > { %s3183_s17 = smov [#allocation7]   ;;  %s3315_s19 = sadd.s32 4294967295, %s3181_s16   ;;  %s3181_s16 = sphi %s3300_s16, %s5215_s16   ;;  %s3177_s15 = sphi %s3298_s15, %s5214_s15   ;;  %s3173_s30 = sphi %s3296_s30, %s5213_s30   ;;  %s3169_s29 = sphi %s3294_s29, %s5212_s29  }
  0x19   : > { %s393_s18 = sshll.u32 %s3183_s17, 4  ;;  %p2535_p0 = scmp.ge.s32.totalorder %s3181_s16, 1  ;;  %s394_s18 = int_to_ptr.vmem [resolvable:$true] %s393_s18 }
  0x1a   : > { %p4918_p1 = scmp.eq.s32.totalorder %s3315_s19, 0  ;;  %p380_p2 = scmp.lt.s32.totalorder %s3181_s16, 3 }
  0x1b   : > { %s3184_s21 = smov [#allocation8]   ;;  %s3185_s24 = smov [#allocation11]  }
  0x1c   : > { %p3320_p3 = pnand %p2535_p0, %p380_p2  ;;  %s406_s22 = sshll.u32 %s3184_s21, 4  ;;  %s3327_s22 = int_to_ptr.vmem [resolvable:$true] %s406_s22 }
  0x1d   : > { %s432_s25 = sshll.u32 %s3185_s24, 4  ;;  %s5018_s2 = sld [smem:[#allocation94_spill]]  ;;  %s3335_s25 = int_to_ptr.vmem [resolvable:$true] %s432_s25 }
  0x1e   : > { %s5016_s20 = scalar_select %p3320_p3, 1, 0 }
  0x1f   : > { %p2630_p5 = pneg %p3320_p3 }
  0x21   : > { %p3331_p6 = pnand %p2630_p5, %p4918_p1 }
  0x23   : > { %s2807_s28 = scalar_lea.hbm %s5018_s2, 128  ;;  %p3345_p8 = pneg %p3331_p6 }
  0x24   : > { %p2808_p7 = scmp.ne.s32.totalorder %s5018_s2, %s2807_s28  ;;  %p2814_p11 = scmp.lt.u32.totalorder %s2807_s28, %s5018_s2 }
  0x26   : > { %p2810_p9 = pnand %p3345_p8, %p2808_p7 }
  0x28   : > { %p2811_p10 = pneg %p2810_p9 }
  0x2a   : > { %p2816_p12 = pnand %p2814_p11, %p2811_p10 }
  0x2c   : > { %2819 = shalt.err (!%p2816_p12)
}
  0x2d   : > { %s2820_s26 = scalar_lea.vmem %s394_s18, 128  ;;  %p2828_p5 = scmp.lt.s32.totalorder %s394_s18, %s394_s18 }
  0x2e   : > { %p2821_p13 = scmp.ne.s32.totalorder %s394_s18, %s2820_s26  ;;  %p2829_p4 = scmp.lt.s32.totalorder %s2820_s26, %s2820_s26 }
  0x30   : > { %p2823_p0 = pnand %p2821_p13, %p3345_p8  ;;  %p2830_p1 = por %p2829_p4, %p2828_p5 }
  0x32   : > { %p2824_p2 = pneg %p2823_p0 }
  0x34   : > { %p2831_p3 = pnand %p2830_p1, %p2824_p2 }
  0x36   : > { %2834 = shalt.err (!%p2831_p3)
}
  0x37   : > { %2633 = dma.hbm_to_vmem [thread:$0]  (!%p3331_p6), %s5018_s2, 128, %s394_s18, [#allocation6]  }
  0x38   : > { %s5020_s4 = sld [smem:[#allocation96_spill]] }
  0x3e   : > { %s2835_s17 = scalar_lea.hbm %s5020_s4, 192 }
  0x3f   : > { %p2836_p7 = scmp.ne.s32.totalorder %s5020_s4, %s2835_s17  ;;  %p2842_p1 = scmp.lt.u32.totalorder %s2835_s17, %s5020_s4 }
  0x41   : > { %p2838_p9 = pnand %p2836_p7, %p3345_p8 }
  0x43   : > { %p2839_p4 = pneg %p2838_p9 }
  0x45   : > { %p2844_p3 = pnand %p2842_p1, %p2839_p4 }
  0x47   : > { %2847 = shalt.err (!%p2844_p3)
}
  0x48   : > { %s2848_s18 = scalar_lea.vmem %s3327_s22, 192  ;;  %p2856_p13 = scmp.lt.s32.totalorder %s3327_s22, %s3327_s22 }
  0x49   : > { %p2849_p10 = scmp.ne.s32.totalorder %s3327_s22, %s2848_s18  ;;  %p2857_p0 = scmp.lt.s32.totalorder %s2848_s18, %s2848_s18 }
  0x4b   : > { %p2851_p11 = pnand %p2849_p10, %p3345_p8  ;;  %p2858_p2 = por %p2857_p0, %p2856_p13 }
  0x4d   : > { %p2852_p12 = pneg %p2851_p11 }
  0x4f   : > { %p2859_p5 = pnand %p2858_p2, %p2852_p12 }
  0x51   : > { %2862 = shalt.err (!%p2859_p5)
}
  0x52   : > { %s4921_s12 = smov 64   ;;  %s4922_s3 = smov 4  }
  0x53   : > { %2636 = dma.hbm_to_vmem [thread:$0]  (!%p3331_p6), %s5020_s4, 192, %s3327_s22, [#allocation9], %s4921_s12, %s4921_s12, %s4922_s3  }
  0x54   : > { %s5021_s6 = sld [smem:[#allocation98_spill]] }
  0x5a   : > { %s2863_s17 = scalar_lea.hbm %s5021_s6, 48 }
  0x5b   : > { %p2864_p7 = scmp.ne.s32.totalorder %s5021_s6, %s2863_s17  ;;  %p2870_p1 = scmp.lt.u32.totalorder %s2863_s17, %s5021_s6 }
  0x5d   : > { %p2866_p9 = pnand %p2864_p7, %p3345_p8 }
  0x5f   : > { %p2867_p4 = pneg %p2866_p9 }
  0x61   : > { %p2872_p3 = pnand %p2870_p1, %p2867_p4 }
  0x63   : > { %2875 = shalt.err (!%p2872_p3)
}
  0x64   : > { %s2876_s22 = scalar_lea.vmem %s3335_s25, 48  ;;  %s2883_s14 = scalar_lea.vmem %s3335_s25, 64 }
  0x65   : > { %p2877_p10 = scmp.ne.s32.totalorder %s3335_s25, %s2876_s22  ;;  %p2884_p13 = scmp.lt.s32.totalorder %s3335_s25, %s3335_s25 }
  0x66   : > { %p2885_p0 = scmp.lt.s32.totalorder %s2883_s14, %s2876_s22 }
  0x67   : > { %p2879_p11 = pnand %p2877_p10, %p3345_p8 }
  0x68   : > { %p2886_p2 = por %p2885_p0, %p2884_p13 }
  0x69   : > { %p2880_p12 = pneg %p2879_p11 }
  0x6b   : > { %p2887_p5 = pnand %p2886_p2, %p2880_p12 }
  0x6d   : > { %2890 = shalt.err (!%p2887_p5)
}
  0x6e   : > { %s4923_s2 = smov 16   ;;  %s4924_s27 = smov 1  }
  0x6f   : > { %2642 = dma.hbm_to_vmem [thread:$0]  (!%p3331_p6), %s5021_s6, 48, %s3335_s25, [#allocation12], %s4923_s2, %s4923_s2, %s4924_s27  }
  0x70   : > { %s3190_s17 = smov [#allocation14]   ;;  %s5022_s9 = sld [smem:[#allocation100_spill]] }
  0x71   : > { %s461_s24 = sshll.u32 %s3190_s17, 4  ;;  %s462_s24 = int_to_ptr.vmem [resolvable:$true] %s461_s24 }
  0x76   : > { %s2891_s22 = scalar_lea.hbm %s5022_s9, 256 }
  0x77   : > { %p2892_p7 = scmp.ne.s32.totalorder %s5022_s9, %s2891_s22  ;;  %p2898_p1 = scmp.lt.u32.totalorder %s2891_s22, %s5022_s9 }
  0x79   : > { %p2894_p9 = pnand %p2892_p7, %p3345_p8 }
  0x7b   : > { %p2895_p4 = pneg %p2894_p9 }
  0x7d   : > { %p2900_p3 = pnand %p2898_p1, %p2895_p4 }
  0x7f   : > { %2903 = shalt.err (!%p2900_p3)
}
  0x80   : > { %s2904_s25 = scalar_lea.vmem %s462_s24, 256  ;;  %p2912_p13 = scmp.lt.s32.totalorder %s462_s24, %s462_s24 }
  0x81   : > { %p2905_p10 = scmp.ne.s32.totalorder %s462_s24, %s2904_s25  ;;  %p2913_p0 = scmp.lt.s32.totalorder %s2904_s25, %s2904_s25 }
  0x83   : > { %p2907_p11 = pnand %p2905_p10, %p3345_p8  ;;  %p2914_p2 = por %p2913_p0, %p2912_p13 }
  0x85   : > { %p2908_p12 = pneg %p2907_p11 }
  0x87   : > { %p2915_p5 = pnand %p2914_p2, %p2908_p12 }
  0x89   : > { %2918 = shalt.err (!%p2915_p5)
}
  0x8a   : > { %s4925_s12 = smov 128   ;;  %s4926_s13 = smov 8  }
  0x8b   : > { %2648 = dma.hbm_to_vmem [thread:$0]  (!%p3331_p6), %s5022_s9, 256, %s462_s24, [#allocation15], %s4925_s12, %s4925_s12, %s4926_s13  }
  0x8c   : > { %s3193_s28 = smov [#allocation10]   ;;  %s3194_s26 = smov [#allocation13]  }
  0x8d   : > { %s419_s17 = sshll.u32 %s3193_s28, 4  ;;  %s445_s18 = sshll.u32 %s3194_s26, 4  ;;  %s420_s17 = int_to_ptr.vmem [resolvable:$true] %s419_s17  ;;  %s3435_s18 = int_to_ptr.vmem [resolvable:$true] %s445_s18 }
  0x8e   : > { %s5023_s5 = sld [smem:[#allocation97_spill]] }
  0x94   : > { %s2919_s25 = scalar_lea.hbm %s5023_s5, 192 }
  0x95   : > { %p2920_p7 = scmp.ne.s32.totalorder %s5023_s5, %s2919_s25  ;;  %p2926_p1 = scmp.lt.u32.totalorder %s2919_s25, %s5023_s5 }
  0x97   : > { %p2922_p9 = pnand %p2920_p7, %p3345_p8 }
  0x99   : > { %p2923_p4 = pneg %p2922_p9 }
  0x9b   : > { %p2928_p3 = pnand %p2926_p1, %p2923_p4 }
  0x9d   : > { %2931 = shalt.err (!%p2928_p3)
}
  0x9e   : > { %s2932_s3 = scalar_lea.vmem %s420_s17, 192  ;;  %p2940_p13 = scmp.lt.s32.totalorder %s420_s17, %s420_s17 }
  0x9f   : > { %p2933_p10 = scmp.ne.s32.totalorder %s420_s17, %s2932_s3  ;;  %p2941_p0 = scmp.lt.s32.totalorder %s2932_s3, %s2932_s3 }
  0xa1   : > { %p2935_p11 = pnand %p2933_p10, %p3345_p8  ;;  %p2942_p2 = por %p2941_p0, %p2940_p13 }
  0xa3   : > { %p2936_p12 = pneg %p2935_p11 }
  0xa5   : > { %p2943_p5 = pnand %p2942_p2, %p2936_p12 }
  0xa7   : > { %2946 = shalt.err (!%p2943_p5)
}
  0xa8   : > { %s5024_s2 = smov 4   ;;  %s5025_s27 = smov 64  }
  0xa9   : > { %2639 = dma.hbm_to_vmem [thread:$0]  (!%p3331_p6), %s5023_s5, 192, %s420_s17, [#allocation9], %s5025_s27, %s5025_s27, %s5024_s2  }
  0xaa   : > { %s5026_s7 = sld [smem:[#allocation99_spill]] }
  0xb0   : > { %s2947_s25 = scalar_lea.hbm %s5026_s7, 48 }
  0xb1   : > { %p2948_p7 = scmp.ne.s32.totalorder %s5026_s7, %s2947_s25  ;;  %p2954_p1 = scmp.lt.u32.totalorder %s2947_s25, %s5026_s7 }
  0xb3   : > { %p2950_p9 = pnand %p2948_p7, %p3345_p8 }
  0xb5   : > { %p2951_p4 = pneg %p2950_p9 }
  0xb7   : > { %p2956_p3 = pnand %p2954_p1, %p2951_p4 }
  0xb9   : > { %2959 = shalt.err (!%p2956_p3)
}
  0xba   : > { %s2960_s17 = scalar_lea.vmem %s3435_s18, 48  ;;  %s2967_s2 = scalar_lea.vmem %s3435_s18, 64 }
  0xbb   : > { %p2961_p10 = scmp.ne.s32.totalorder %s3435_s18, %s2960_s17  ;;  %p2968_p13 = scmp.lt.s32.totalorder %s3435_s18, %s3435_s18 }
  0xbc   : > { %p2969_p0 = scmp.lt.s32.totalorder %s2967_s2, %s2960_s17 }
  0xbd   : > { %p2963_p11 = pnand %p2961_p10, %p3345_p8 }
  0xbe   : > { %p2970_p2 = por %p2969_p0, %p2968_p13 }
  0xbf   : > { %p2964_p12 = pneg %p2963_p11 }
  0xc1   : > { %p2971_p5 = pnand %p2970_p2, %p2964_p12 }
  0xc3   : > { %2974 = shalt.err (!%p2971_p5)
}
  0xc4   : > { %s5027_s12 = smov 1   ;;  %s5028_s27 = smov 16  }
  0xc5   : > { %2645 = dma.hbm_to_vmem [thread:$0]  (!%p3331_p6), %s5026_s7, 48, %s3435_s18, [#allocation12], %s5028_s27, %s5028_s27, %s5027_s12  }
  0xc6   : > { %s3195_s22 = smov [#allocation16]   ;;  %s5029_s11 = sld [smem:[#allocation101_spill]] }
  0xc7   : > { %s477_s14 = sshll.u32 %s3195_s22, 4  ;;  %s478_s14 = int_to_ptr.vmem [resolvable:$true] %s477_s14 }
  0xcc   : > { %s2975_s24 = scalar_lea.hbm %s5029_s11, 256 }
  0xcd   : > { %p2976_p7 = scmp.ne.s32.totalorder %s5029_s11, %s2975_s24  ;;  %p2982_p1 = scmp.lt.u32.totalorder %s2975_s24, %s5029_s11 }
  0xcf   : > { %p2978_p9 = pnand %p2976_p7, %p3345_p8 }
  0xd1   : > { %p2979_p4 = pneg %p2978_p9 }
  0xd3   : > { %p2984_p3 = pnand %p2982_p1, %p2979_p4 }
  0xd5   : > { %2987 = shalt.err (!%p2984_p3)
}
  0xd6   : > { %s2988_s18 = scalar_lea.vmem %s478_s14, 256  ;;  %p2996_p13 = scmp.lt.s32.totalorder %s478_s14, %s478_s14 }
  0xd7   : > { %p2989_p10 = scmp.ne.s32.totalorder %s478_s14, %s2988_s18  ;;  %p2997_p0 = scmp.lt.s32.totalorder %s2988_s18, %s2988_s18 }
  0xd9   : > { %p2991_p11 = pnand %p2989_p10, %p3345_p8  ;;  %p2998_p2 = por %p2997_p0, %p2996_p13 }
  0xdb   : > { %p2992_p12 = pneg %p2991_p11 }
  0xdd   : > { %p2999_p5 = pnand %p2998_p2, %p2992_p12 }
  0xdf   : > { %3002 = shalt.err (!%p2999_p5)
}
  0xe0   : > { %s5030_s12 = smov 8   ;;  %s5031_s27 = smov 128  }
  0xe1   : > { %2651 = dma.hbm_to_vmem [thread:$0]  (!%p3331_p6), %s5029_s11, 256, %s478_s14, [#allocation15], %s5031_s27, %s5031_s27, %s5030_s12  }
  0xe2   : > { %s2534_s23 = sadd.s32 4294967294, %s3181_s16   ;;  %s3508_s21 = sadd.s32 1, %s3181_s16  }
  0xe3   : > { %s47_s26 = sadd.s32 1, %s3177_s15  ;;  %s44_s22 = ssub.s32 %s3181_s16, %s3508_s21 }
  0xe4   : > { %p54_p8 = scmp.ne.s32.totalorder %s3177_s15, %s3173_s30  ;;  %p45_p7 = scmp.eq.s32.totalorder %s44_s22, 0 }
  0xe5   : > { %p55_p9 = scmp.eq.s32.totalorder %s3181_s16, 0  ;;  %p60_p4 = scmp.ne.s32.totalorder %s3173_s30, %s3169_s29 }
  0xe6   : > { %p341_p1 = scmp.eq.s32.totalorder %s3315_s19, 1  ;;  %p5032_p10 = scmp.eq.s32.totalorder %s3315_s19, 0 }
  0xe7   : > { %s3520_s25 = scalar_select %p45_p7, %s3177_s15, %s47_s26  }
  0xe8   : > { %p56_p3 = por %p55_p9, %p54_p8  ;;  %p3524_p11 = por %p5032_p10, %p60_p4 }
  0xe9   : > { %p3528_p6 = por %p341_p1, %p54_p8  ;;  %p347_p12 = scmp.eq.s32.totalorder %s2534_s23, 1 }
  0xea   : > { %s5033_s4 = scalar_select %p3524_p11, 1, 0 }
  0xeb   : > { %s5034_s14 = scalar_select %p3528_p6, 1, 0 }
  0xec   : > { %p2673_p13 = scmp.lt.s32.totalorder %s3181_s16, 2  ;;  %s494_s24 = sand.u32 1, %s3177_s15  }
  0xed   : > { %p3534_p0 = por %p347_p12, %p60_p4  ;;  %s3538_s17 = sshll.u32 %s494_s24, 3 }
  0xee   : > { %s2590_s2 = sshll.u32 %s3181_s16, 7  ;;  %s498_s13 = scalar_lea.vmem [#allocation2], %s3538_s17 }
  0xef   : > { %s5035_s3 = scalar_select %p3534_p0, 1, 0 }
  0xf0   : > { %s3544_s27 = scalar_lea.hbm %s4901_s0, %s2590_s2  ;;  %s506_s28 = sshll.u32 %s498_s13, 4  ;;  %s3551_s28 = int_to_ptr.vmem [resolvable:$true] %s506_s28 }
  0xf1   : > { %p3547_p2 = pnand %p2673_p13, %p56_p3  ;;  %s3556_s18 = scalar_lea.hbm %s4902_s1, %s2590_s2 }
  0xf2   : > { %s495_s12 = scalar_lea.sflag [#allocation3], %s494_s24  ;;  %s3003_s5 = scalar_lea.hbm %s3544_s27, 128 }
  0xf3   : > { %p3004_p5 = scmp.ne.s32.totalorder %s3544_s27, %s3003_s5  ;;  %p3005_p8 = pneg %p3547_p2 }
  0xf4   : > { %s3008_s7 = scalar_lea.hbm %s4901_s0, 256  ;;  %p3009_p4 = scmp.lt.u32.totalorder %s3544_s27, %s4901_s0 }
  0xf5   : > { %p3006_p7 = pnand %p3005_p8, %p3004_p5  ;;  %p3010_p1 = scmp.lt.u32.totalorder %s3008_s7, %s3003_s5 }
  0xf6   : > { %p3012_p10 = scmp.lt.u32.totalorder %s3003_s5, %s3544_s27 }
  0xf7   : > { %p3007_p9 = pneg %p3006_p7  ;;  %p3011_p3 = por %p3010_p1, %p3009_p4 }
  0xf9   : > { %p3013_p12 = por %p3012_p10, %p3011_p3 }
  0xfb   : > { %p3014_p13 = pnand %p3013_p12, %p3007_p9 }
  0xfd   : > { %3017 = shalt.err (!%p3014_p13)
}
  0xfe   : > { %s3018_s24 = scalar_lea.vmem %s3551_s28, 128  ;;  %s3196_s6 = smov [#allocation2]  }
  0xff   : > { %p3019_p5 = scmp.ne.s32.totalorder %s3551_s28, %s3018_s24  ;;  %s3023_s2 = sshll.u32 %s3196_s6, 4  ;;  %s3024_s2 = int_to_ptr.vmem [resolvable:$false] %s3023_s2 }
 0x100   : > { %s3025_s9 = scalar_lea.vmem %s3024_s2, 256  ;;  %p3026_p6 = scmp.lt.s32.totalorder %s3551_s28, %s3024_s2 }
 0x101   : > { %p3021_p7 = pnand %p3019_p5, %p3005_p8  ;;  %p3027_p4 = scmp.lt.s32.totalorder %s3025_s9, %s3018_s24 }
 0x103   : > { %p3022_p0 = pneg %p3021_p7  ;;  %p3028_p1 = por %p3027_p4, %p3026_p6 }
 0x105   : > { %p3029_p3 = pnand %p3028_p1, %p3022_p0 }
 0x107   : > { %3032 = shalt.err (!%p3029_p3)
}
 0x108   : > { %2655 = dma.hbm_to_vmem [thread:$0]  (!%p3547_p2), %s3544_s27, 128, %s3551_s28, %s495_s12  }
 0x109   : > { %s513_s5 = sand.u32 1, %s3181_s16   ;;  %s517_s7 = scalar_lea.vmem [#allocation5], %s3538_s17 }
 0x10a   : > { %s525_s11 = sshll.u32 %s517_s7, 4  ;;  %s514_s26 = scalar_lea.sflag [#allocation6], %s513_s5  ;;  %s526_s11 = int_to_ptr.vmem [resolvable:$true] %s525_s11 }
 0x10b   : > { %s3033_s22 = scalar_lea.hbm %s3556_s18, 128  ;;  %s3038_s6 = scalar_lea.hbm %s4902_s1, 256 }
 0x10c   : > { %p3034_p6 = scmp.ne.s32.totalorder %s3556_s18, %s3033_s22  ;;  %p3039_p10 = scmp.lt.u32.totalorder %s3556_s18, %s4902_s1 }
 0x10d   : > { %p3040_p12 = scmp.lt.u32.totalorder %s3038_s6, %s3033_s22  ;;  %p3042_p5 = scmp.lt.u32.totalorder %s3033_s22, %s3556_s18 }
 0x10e   : > { %p3036_p0 = pnand %p3034_p6, %p3005_p8 }
 0x10f   : > { %p3041_p13 = por %p3040_p12, %p3039_p10 }
 0x110   : > { %p3037_p9 = pneg %p3036_p0 }
 0x111   : > { %p3043_p7 = por %p3042_p5, %p3041_p13 }
 0x113   : > { %p3044_p4 = pnand %p3043_p7, %p3037_p9 }
 0x115   : > { %3047 = shalt.err (!%p3044_p4)
}
 0x116   : > { %s3048_s17 = scalar_lea.vmem %s526_s11, 128  ;;  %s3197_s27 = smov [#allocation5]  }
 0x117   : > { %p3049_p1 = scmp.ne.s32.totalorder %s526_s11, %s3048_s17  ;;  %s3053_s28 = sshll.u32 %s3197_s27, 4  ;;  %s3054_s28 = int_to_ptr.vmem [resolvable:$false] %s3053_s28 }
 0x118   : > { %s3055_s12 = scalar_lea.vmem %s3054_s28, 256  ;;  %p3056_p0 = scmp.lt.s32.totalorder %s526_s11, %s3054_s28 }
 0x119   : > { %p3051_p3 = pnand %p3049_p1, %p3005_p8  ;;  %p3057_p11 = scmp.lt.s32.totalorder %s3055_s12, %s3048_s17 }
 0x11b   : > { %p3052_p6 = pneg %p3051_p3  ;;  %p3058_p10 = por %p3057_p11, %p3056_p0 }
 0x11d   : > { %p3059_p12 = pnand %p3058_p10, %p3052_p6 }
 0x11f   : > { %3062 = shalt.err (!%p3059_p12)
}
 0x120   : > { %2658 = dma.hbm_to_vmem [thread:$0]  (!%p3547_p2), %s3556_s18, 128, %s526_s11, %s514_s26  }
 0x121   : > { %p5037_p9 = scmp.ne.s32.totalorder %s5016_s20, 0 }
 0x123   : > { %534 = sbr.rel (%p5037_p9) target bundleno = 1269 (0x4f5), region = 72 }
 0x12a   : > { %s3607_s5 = sand.u32 1, %s3173_s30   ;;  %p5038_p11 = scmp.ne.s32.totalorder %s5033_s4, 0 }
 0x12b   : > { %s3610_s7 = sshll.u32 %s3607_s5, 3  ;;  %s537_s22 = scalar_lea.sflag [#allocation3], %s3607_s5 }
 0x12c   : > { %s540_s13 = scalar_lea.vmem [#allocation2], %s3610_s7 }
 0x12d   : > { %3136 = dma.done.wait (%p5038_p11), %s537_s22, 128  }
 0x12e   : > { %3138 = vsyncadd (%p5038_p11), %s537_s22, 4294967168  ;;  %s545_s20 = sand.u32 1, %s3315_s19   ;;  %s549_s18 = scalar_lea.vmem [#allocation5], %s3610_s7 }
 0x12f   : > { %s546_s23 = scalar_lea.sflag [#allocation6], %s545_s20 }
 0x130   : > { %3140 = dma.done.wait (%p5038_p11), %s546_s23, 128  }
 0x131   : > { %3142 = vsyncadd (%p5038_p11), %s546_s23, 4294967168  ;;  %p5039_p2 = scmp.eq.s32.totalorder %s3315_s19, 0 }
 0x133   : > { %3144 = dma.done.wait (%p5039_p2), [#allocation6], 128   ;;  %p5040_p8 = pmov %p5039_p2 }
 0x134   : > { %p5041_p13 = pmov %p5039_p2 }
 0x135   : > { %3146 = vsyncadd (%p5040_p8), [#allocation6], 4294967168 }
 0x136   : > { %3148 = dma.done.wait (%p5041_p13), [#allocation9], 384   ;;  %p5042_p5 = pmov %p5039_p2 }
 0x137   : > { %p5043_p7 = pmov %p5039_p2 }
 0x138   : > { %3150 = vsyncadd (%p5042_p5), [#allocation9], 4294966912 }
 0x139   : > { %3152 = dma.done.wait (%p5043_p7), [#allocation12], 96   ;;  %p5044_p4 = pmov %p5039_p2 }
 0x13a   : > { %p5045_p1 = pmov %p5039_p2 }
 0x13b   : > { %3154 = vsyncadd (%p5044_p4), [#allocation12], 4294967200 }
 0x13c   : > { %3156 = dma.done.wait (%p5045_p1), [#allocation15], 512   ;;  %p5046_p3 = pmov %p5045_p1 }
 0x13d   : > { %v640_v0 = vlaneseq  ;;  %v4940_v1 = vmov 0   ;;  %vm696_vm0 = vcmask 1043456   ;;  %v633_v7 = vld [vmem:[%s549_s18] sm:$0xff]  ;;  %v634_v11 = vld [vmem:[#allocation7] sm:$0xff]  ;;  %v4936_v26 = vmov 2   ;;  %s3200_s4 = smov 17  }
 0x13e   : > { %3158 = vsyncadd (%p5046_p3), [#allocation15], 4294966784  ;;  %2746 = vset.pattern.permute.xlu1 %v4940_v1  ;;  %v694_v8 = vcombine.high %v633_v7, %v633_v7  ;;  %v718_v9 = vsel %vm696_vm0, %v633_v7, 0.0  ;;  %v710_v10 = vsel %vm696_vm0, %v633_v7, -inf  ;;  %v632_v22 = vld [vmem:[%s540_s13] sm:$0xff]  ;;  %2748 = vset.pattern.permute.xlu0 %v4936_v26  ;;  %s3201_s11 = smov 16  }
 0x13f   : > { %v3642_v2 = vshrl.u32 %v640_v0, 7  ;;  %v691_v30 = vcombine.low %v632_v22, %v632_v22  ;;  %v2562_v37 = vld [vmem:[#allocation11] ss:$0 sm:$0xff]  ;;  %v2563_v58 = vld [vmem:[#allocation11 + $0x1] ss:$0 sm:$0xff]  ;;  %s3202_s26 = smov 15  }
 0x140   : > { %v719_v14 = vsel %vm696_vm0, %v694_v8, 0.0  ;;  %v711_v15 = vsel %vm696_vm0, %v694_v8, -inf  ;;  %v3678_v36 = vcombine.low %v633_v7, %v694_v8  ;;  %s3203_s2 = smov 1   ;;  %s3209_s27 = smov 127   ;;  %vm788_vm1 = vcmask 27648  }
 0x141   : > { %v3645_v3 = vsub.s32 0, %v3642_v2  ;;  %v646_v4 = vsub.s32 4, %v3642_v2  ;;  %v3649_v5 = vsub.s32 1, %v3642_v2  ;;  %v3652_v6 = vsub.s32 5, %v3642_v2  ;;  %s3211_s28 = smov 113   ;;  %s3214_s12 = smov 112  }
 0x142   : > { %v720_v18 = vadd.f32 %v719_v14, %v718_v9  ;;  %v712_v19 = vmax.f32 %v710_v10, %v711_v15  ;;  %5049 = vst [vmem:[#allocation30_spill] sm:$0xff] %v3678_v36  ;;  %v980_v38 = vrot.slane %v711_v15, 4  ;;  %v972_v39 = vsel %vm696_vm0, %v3678_v36, -inf  ;;  %s3216_s22 = smov 111   ;;  %s5103_s20 = sld [smem:[#allocation95_spill]] }
 0x143   : > { %5047 = vst [vmem:[#allocation28_spill] sm:$0xff] %v3645_v3  ;;  %5048 = vst [vmem:[#allocation29_spill] sm:$0xff] %v3649_v5  ;;  %v643_v12 = vrot.slane %v634_v11, %v3645_v3  ;;  %v647_v13 = vrot.slane %v634_v11, %v646_v4  ;;  %v666_v16 = vrot.slane %v634_v11, %v3649_v5  ;;  %v1022_v40 = vrot.slane %v719_v14, 4  ;;  %s5206_s9 = sld [smem:[#allocation103_spill]]  ;;  %p5208_p0 = scmp.ne.s32.totalorder %s5034_s14, 0 }
 0x144   : > { %v670_v17 = vrot.slane %v634_v11, %v3652_v6  ;;  %721 = vadd.xlane.f32.xlu1 %v720_v18  ;;  %713 = vmax.xlane.f32.xlu0 %v712_v19  ;;  %v973_v41 = vrot.slane %v972_v39, 4  ;;  %v981_v42 = vmax.f32 %v711_v15, %v980_v38  ;;  %v1014_v43 = vsel %vm696_vm0, %v3678_v36, 0.0  ;;  %s3217_s24 = smov [#allocation17]  }
 0x145   : > { %v653_v20 = vrot.slane %v643_v12, %v3645_v3  ;;  %v657_v21 = vrot.slane %v647_v13, %v3645_v3  ;;  %v676_v24 = vrot.slane %v666_v16, %v3649_v5  ;;  %v1023_v44 = vadd.f32 %v1022_v40, %v719_v14  ;;  %s3067_s6 = sshll.u32 %s3217_s24, 4  ;;  %s3068_s6 = int_to_ptr.vmem [resolvable:$false] %s3067_s6 }
 0x146   : > { %v680_v25 = vrot.slane %v670_v17, %v3649_v5  ;;  %v1015_v45 = vrot.slane %v1014_v43, 4  ;;  %v982_v46 = vrot.slane %v981_v42, 2  ;;  %v974_v47 = vmax.f32 %v972_v39, %v973_v41 }
 0x147   : > { %v660_v23 = vcombine.low %v653_v20, %v657_v21  ;;  %v1024_v48 = vrot.slane %v1023_v44, 2  ;;  %v761_v36 = vand.u32 127, %v640_v0  ;;  %vm1440_vm2 = vcmask 1039360  }
 0x148   : > { %v683_v28 = vcombine.low %v676_v24, %v680_v25  ;;  %v1016_v49 = vadd.f32 %v1015_v45, %v1014_v43  ;;  %v983_v50 = vmax.f32 %v981_v42, %v982_v46  ;;  %v975_v51 = vrot.slane %v974_v47, 2 }
 0x149   : > { %v662_v27 = vmul.f32 %v660_v23, %v632_v22  ;;  %v1025_v52 = vadd.f32 %v1024_v48, %v1023_v44  ;;  %vm1521_vm3 = vcmask 924672   ;;  %vm1602_vm4 = vcmask 916480  }
 0x14a   : > { %v685_v29 = vmul.f32 %v683_v28, %v633_v7  ;;  %v1017_v53 = vrot.slane %v1016_v49, 2  ;;  %v984_v54 = vrot.slane %v983_v50, 1  ;;  %v976_v55 = vmax.f32 %v974_v47, %v975_v51  ;;  %v2567_v7 = vld [vmem:[#allocation13 + $0x2] ss:$0 sm:$0xff] }
 0x14b   : > { %v1026_v61 = vrot.slane %v1025_v52, 1  ;;  %vm1073_vm5 = vcmask 138240   ;;  %vm1161_vm6 = vcmask 130048   ;;  %vm1242_vm7 = vcmask 121856  }
 0x14c   : > { %v686_v31 = vadd.f32 %v685_v29, %v662_v27  ;;  %v1018_v62 = vadd.f32 %v1017_v53, %v1016_v49  ;;  %v985_v63 = vmax.f32 %v983_v50, %v984_v54  ;;  %v977_v4 = vrot.slane %v976_v55, 1 }
 0x14d   : > { %v1027_v12 = vadd.f32 %v1026_v61, %v1025_v52  ;;  %vm1323_vm8 = vcmask 7168   ;;  %vm1683_vm9 = vcmask 908288  }
 0x14e   : > { %v688_v32 = vcombine.high %v686_v31, %v686_v31  ;;  %v3671_v33 = vsel %vm696_vm0, %v686_v31, %v691_v30  ;;  %v1019_v13 = vrot.slane %v1018_v62, 1  ;;  %v3700_v14 = vcombine.low %v985_v63, %v985_v63 }
 0x14f   : > { %v978_v15 = vmax.f32 %v976_v55, %v977_v4  ;;  %v1033_v20 = vmul.f32 0.25, %v1027_v12 }
 0x150   : > { %v3674_v34 = vsel %vm696_vm0, %v688_v32, %v632_v22  ;;  %5052 = vst [vmem:[#allocation33_spill] sm:$0xff] %v3700_v14  ;;  %v1020_v21 = vadd.f32 %v1019_v13, %v1018_v62 }
 0x151   : > { %v707_v35 = vmax.f32 %v3671_v33, %v3674_v34  ;;  %v3686_v56 = vcombine.low %v3671_v33, %v3674_v34  ;;  %v3690_v57 = vcombine.high %v3671_v33, %v3674_v34  ;;  %v2568_v8 = vcombine.low %v3674_v34, %v3674_v34 }
 0x152   : > { %v2569_v9 = vcombine.high %v3674_v34, %v3674_v34  ;;  %v3704_v22 = vcombine.low %v978_v15, %v985_v63  ;;  %v3712_v30 = vcombine.low %v1033_v20, %v1033_v20  ;;  %v1032_v31 = vmul.f32 0.25, %v1020_v21  ;;  %v2564_v15 = vld [vmem:[#allocation11 + $0x2] ss:$0 sm:$0xff]  ;;  %v2565_v21 = vld [vmem:[#allocation13] ss:$0 sm:$0xff] }
 0x153   : > { %708 = vmax.xlane.f32.xlu0 %v707_v35  ;;  %5050 = vst [vmem:[#allocation31_spill] sm:$0xff] %v3686_v56  ;;  %5051 = vst [vmem:[#allocation32_spill] sm:$0xff] %v3690_v57  ;;  %v986_v59 = vsel %vm696_vm0, %v3686_v56, 0.0  ;;  %v1000_v60 = vsel %vm696_vm0, %v3690_v57, 0.0  ;;  %v951_v16 = vsel %vm696_vm0, %v2568_v8, -inf  ;;  %v944_v28 = vsel %vm696_vm0, %v3686_v56, -inf }
 0x154   : > { %v987_v10 = vrot.slane %v986_v59, 4  ;;  %v1001_v11 = vrot.slane %v1000_v60, 4  ;;  %v965_v17 = vsel %vm696_vm0, %v2569_v9, -inf  ;;  %v952_v23 = vrot.slane %v951_v16, 4  ;;  %5053 = vst [vmem:[#allocation34_spill] sm:$0xff] %v3712_v30 }
 0x155   : > { %888 = vbcast.lane.b32.xlu1 %v2562_v37, 256  ;;  %v966_v24 = vrot.slane %v965_v17, 4  ;;  %v958_v29 = vsel %vm696_vm0, %v3690_v57, -inf  ;;  %v715_v37 = vadd.f32 %v3674_v34, %v3671_v33  ;;  %v945_v38 = vrot.slane %v944_v28, 4 }
 0x156   : > { %v988_v18 = vadd.f32 %v987_v10, %v986_v59  ;;  %v1002_v19 = vadd.f32 %v1001_v11, %v1000_v60  ;;  %v953_v32 = vmax.f32 %v951_v16, %v952_v23  ;;  %v959_v39 = vrot.slane %v958_v29, 4 }
 0x157   : > { %v967_v35 = vmax.f32 %v965_v17, %v966_v24  ;;  %v3718_v42 = vcombine.low %v1032_v31, %v1033_v20  ;;  %v946_v45 = vmax.f32 %v944_v28, %v945_v38  ;;  %v993_v49 = vsel %vm696_vm0, %v2568_v8, 0.0  ;;  %v3745_v31 = vld [vmem:[%s4909_s8] sm:$0xff] }
 0x158   : > { %v989_v25 = vrot.slane %v988_v18, 2  ;;  %v1003_v27 = vrot.slane %v1002_v19, 2  ;;  %v954_v43 = vrot.slane %v953_v32, 2  ;;  %v960_v46 = vmax.f32 %v958_v29, %v959_v39 }
 0x159   : > { %5054 = vst [vmem:[#allocation35_spill] sm:$0xff] %v3718_v42  ;;  %v968_v44 = vrot.slane %v967_v35, 2  ;;  %v1007_v50 = vsel %vm696_vm0, %v2569_v9, 0.0  ;;  %v947_v51 = vrot.slane %v946_v45, 2  ;;  %v994_v59 = vrot.slane %v993_v49, 4 }
 0x15a   : > { %v990_v40 = vadd.f32 %v989_v25, %v988_v18  ;;  %v1004_v41 = vadd.f32 %v1003_v27, %v1002_v19  ;;  %v955_v33 = vmax.f32 %v953_v32, %v954_v43  ;;  %v961_v52 = vrot.slane %v960_v46, 2  ;;  %v2566_v27 = vld [vmem:[#allocation13 + $0x1] ss:$0 sm:$0xff]  ;;  %v3769_v43 = vld [vmem:[#allocation14] sm:$0xff] }
 0x15b   : > { %v969_v34 = vmax.f32 %v967_v35, %v968_v44  ;;  %v1008_v60 = vrot.slane %v1007_v50, 4  ;;  %v948_v61 = vmax.f32 %v946_v45, %v947_v51  ;;  %v995_v8 = vadd.f32 %v994_v59, %v993_v49  ;;  %v3777_v44 = vld [vmem:[%s4909_s8 + $0x8] sm:$0xf] }
 0x15c   : > { %v991_v47 = vrot.slane %v990_v40, 1  ;;  %v1005_v48 = vrot.slane %v1004_v41, 1  ;;  %v956_v55 = vrot.slane %v955_v33, 1  ;;  %v962_v62 = vmax.f32 %v960_v46, %v961_v52 }
 0x15d   : > { %v1009_v9 = vadd.f32 %v1008_v60, %v1007_v50  ;;  %v949_v11 = vrot.slane %v948_v61, 1  ;;  %v996_v16 = vrot.slane %v995_v8, 2  ;;  %v4938_v45 = vmov 1  }
 0x15e   : > { %v992_v53 = vadd.f32 %v991_v47, %v990_v40  ;;  %v1006_v54 = vadd.f32 %v1005_v48, %v1004_v41  ;;  %v963_v12 = vrot.slane %v962_v62, 1  ;;  %v3759_v40 = vld [vmem:[#allocation14 + $0x8] sm:$0xf]  ;;  %v4933_v41 = vmov 3  }
 0x15f   : > { %v1010_v17 = vrot.slane %v1009_v9, 2  ;;  %v950_v19 = vmax.f32 %v948_v61, %v949_v11  ;;  %v997_v23 = vadd.f32 %v996_v16, %v995_v8  ;;  %v3206_v46 = vmov 839922192  }
 0x160   : > { %v1028_v63 = vmul.f32 0.25, %v992_v53  ;;  %v1030_v4 = vmul.f32 0.25, %v1006_v54  ;;  %v964_v20 = vmax.f32 %v962_v62, %v963_v12  ;;  %v731_v47 = vunpack.c.l.s4 %v3206_v46 }
 0x161   : > { %v1011_v24 = vadd.f32 %v1010_v17, %v1009_v9  ;;  %v998_v28 = vrot.slane %v997_v23, 1  ;;  %v3207_v51 = vmov 1985246804  }
 0x162   : > { %v3730_v13 = vcombine.low %v1028_v63, %v1030_v4  ;;  %v3738_v25 = vcombine.low %v950_v19, %v964_v20  ;;  %v732_v48 = vunpack.c.0.s8 %v731_v47  ;;  %v738_v52 = vunpack.c.l.s4 %v3207_v51 }
 0x163   : > { %v1012_v29 = vrot.slane %v1011_v24, 1  ;;  %v999_v32 = vadd.f32 %v998_v28, %v997_v23  ;;  %v4934_v19 = vmov 4  }
 0x164   : > { %5055 = vst [vmem:[#allocation36_spill] sm:$0xff] %v3730_v13 }
 0x165   : > { %v1013_v35 = vadd.f32 %v1012_v29, %v1011_v24 }
 0x167   : > { %v1031_v38 = vmul.f32 0.25, %v1013_v35 }
 0x169   : > { %891 = vbcast.lane.b32.xlu0 %v2563_v58, 256  ;;  %v970_v58 = vrot.slane %v969_v34, 1 }
 0x16b   : > { %v971_v10 = vmax.f32 %v969_v34, %v970_v58  ;;  %v3805_v34 = vsub.s32 %v732_v48, %v3642_v2  ;;  %v4929_v48 = vmov 6  }
 0x16d   : > { %927 = vbcast.lane.b32.xlu0 %v2567_v7, 256  ;;  %v957_v7 = vmax.f32 %v955_v33, %v956_v55  ;;  %5058 = vst [vmem:[#allocation39_spill] sm:$0xff] %v3805_v34  ;;  %v739_v55 = vunpack.c.0.s8 %v738_v52 }
 0x16f   : > { %v3734_v18 = vcombine.low %v957_v7, %v971_v10  ;;  %v742_v59 = vsub.s32 %v739_v55, %v3642_v2 }
 0x171   : > { %1064 = vrot.lane.b32.xlu0 %v3700_v14, %s3200_s4  ;;  %5056 = vst [vmem:[#allocation37_spill] sm:$0xff] %v3734_v18 }
 0x175   : > { %1071 = vrot.lane.b32.xlu0 %v3704_v22, %s3200_s4 }
 0x179   : > { %1100 = vrot.lane.b32.xlu0 %v3712_v30, %s3200_s4  ;;  %716 = vadd.xlane.f32.xlu1 %v715_v37  ;;  %v1029_v37 = vmul.f32 0.25, %v999_v32 }
 0x17b   : > { %v3756_v39 = vcombine.low %v1029_v37, %v1031_v38 }
 0x17d   : > { %1107 = vrot.lane.b32.xlu0 %v3718_v42, %s3200_s4  ;;  %5057 = vst [vmem:[#allocation38_spill] sm:$0xff] %v3756_v39 }
 0x181   : > { %1153 = vrot.lane.b32.xlu0 %v3700_v14, %s3201_s11 }
 0x185   : > { %1159 = vrot.lane.b32.xlu0 %v3704_v22, %s3201_s11 }
 0x189   : > { %1188 = vrot.lane.b32.xlu0 %v3730_v13, %s3201_s11 }
 0x18a   : > { %894 = vbcast.lane.b32.xlu1 %v2564_v15, 256 }
 0x18d   : > { %1232 = vrot.lane.b32.xlu0 %v3734_v18, %s3202_s26 }
 0x18e   : > { %921 = vbcast.lane.b32.xlu1 %v2565_v21, 256 }
 0x191   : > { %1238 = vrot.lane.b32.xlu0 %v3738_v25, %s3202_s26 }
 0x192   : > { %924 = vbcast.lane.b32.xlu1 %v2566_v27, 256  ;;  %v4931_v27 = vmov 5  }
 0x195   : > { %1252 = vperm.xlu0 %2748, %v3745_v31  }
 0x196   : > { %1062 = vrot.lane.b32.xlu1 %v3734_v18, %s3200_s4 }
 0x199   : > { %1265 = vrot.lane.b32.xlu0 %v3712_v30, %s3202_s26 }
 0x19a   : > { %1069 = vrot.lane.b32.xlu1 %v3738_v25, %s3200_s4 }
 0x19d   : > { %1271 = vrot.lane.b32.xlu0 %v3718_v42, %s3202_s26 }
 0x19e   : > { %1084 = vperm.xlu1 %2746, %v3745_v31  }
 0x1a1   : > { %1286 = vperm.xlu0 %2748, %v3759_v40  }
 0x1a2   : > { %1098 = vrot.lane.b32.xlu1 %v3756_v39, %s3200_s4 }
 0x1a5   : > { %1315 = vrot.lane.b32.xlu0 %v3700_v14, %s3203_s2 }
 0x1a6   : > { %2751 = vset.pattern.permute.xlu0 %v4933_v41  ;;  %1105 = vrot.lane.b32.xlu1 %v3730_v13, %s3200_s4 }
 0x1a9   : > { %1321 = vrot.lane.b32.xlu0 %v3704_v22, %s3203_s2 }
 0x1aa   : > { %1119 = vperm.xlu1 %2746, %v3769_v43  }
 0x1ad   : > { %1337 = vperm.xlu0 %2751, %v3777_v44  }
 0x1ae   : > { %1151 = vrot.lane.b32.xlu1 %v3734_v18, %s3201_s11 }
 0x1af   : > { %2747 = vset.pattern.permute.xlu1 %v4938_v45 }
 0x1b1   : > { %2753 = vset.pattern.permute.xlu0 %v4940_v1 }
 0x1b2   : > { %1157 = vrot.lane.b32.xlu1 %v3738_v25, %s3201_s11 }
 0x1b6   : > { %1171 = vperm.xlu1 %2747, %v3745_v31  }
 0x1ba   : > { %1182 = vrot.lane.b32.xlu1 %v3756_v39, %s3201_s11 }
 0x1be   : > { %1184 = vrot.lane.b32.xlu1 %v3712_v30, %s3201_s11 }
 0x1c2   : > { %1190 = vrot.lane.b32.xlu1 %v3718_v42, %s3201_s11 }
 0x1c6   : > { %1205 = vperm.xlu1 %2747, %v3759_v40  }
 0x1ca   : > { %1234 = vrot.lane.b32.xlu1 %v3700_v14, %s3202_s26 }
 0x1cb   : > { %2749 = vset.pattern.permute.xlu1 %v4936_v26 }
 0x1ce   : > { %1240 = vrot.lane.b32.xlu1 %v3704_v22, %s3202_s26 }
 0x1d1   : > { %v714_v33 = vpop.xlane.xlu0 %713  ;;  %v722_v53 = vpop.xlane.xlu1 %721 }
 0x1d2   : > { %1256 = vperm.xlu1 %2749, %v3777_v44   ;;  %v750_v54 = vrot.slane %v714_v33, %v3805_v34  ;;  %v724_v58 = vmul.f32 0.00390625, %v722_v53 }
 0x1d4   : > { %v823_v60 = vrot.slane %v724_v58, %v3805_v34 }
 0x1d5   : > { %v3821_v62 = vpop.permute.xlu1 %888 }
 0x1d6   : > { %1263 = vrot.lane.b32.xlu1 %v3756_v39, %s3202_s26  ;;  %5059 = vst [vmem:[#allocation40_spill] sm:$0xff] %v3821_v62 }
 0x1da   : > { %1269 = vrot.lane.b32.xlu1 %v3730_v13, %s3202_s26 }
 0x1de   : > { %1282 = vperm.xlu1 %2749, %v3769_v43  }
 0x1e0   : > { %v709_v49 = vpop.xlane.xlu0 %708 }
 0x1e1   : > { %v736_v50 = vrot.slane %v709_v49, %v3805_v34  ;;  %v743_v61 = vrot.slane %v709_v49, %v742_v59 }
 0x1e2   : > { %1313 = vrot.lane.b32.xlu1 %v3734_v18, %s3203_s2 }
 0x1e3   : > { %752 = vperm.xlu0 %2753, %v736_v50   ;;  %2750 = vset.pattern.permute.xlu1 %v4933_v41 }
 0x1e4   : > { %v3823_v7 = vpop.permute.xlu0 %891 }
 0x1e5   : > { %5060 = vst [vmem:[#allocation41_spill] sm:$0xff] %v3823_v7 }
 0x1e6   : > { %1319 = vrot.lane.b32.xlu1 %v3738_v25, %s3203_s2 }
 0x1e8   : > { %v3830_v12 = vpop.permute.xlu0 %927 }
 0x1e9   : > { %5063 = vst [vmem:[#allocation44_spill] sm:$0xff] %v3830_v12 }
 0x1ea   : > { %1333 = vperm.xlu1 %2750, %v3745_v31  }
 0x1ec   : > { %v3843_v16 = vpop.permute.xlu0 %1064 }
 0x1ee   : > { %1344 = vrot.lane.b32.xlu1 %v3756_v39, %s3203_s2 }
 0x1ef   : > { %2752 = vset.pattern.permute.xlu1 %v4940_v1 }
 0x1f0   : > { %v3852_v21 = vpop.permute.xlu0 %1071 }
 0x1f2   : > { %758 = vperm.xlu1 %2752, %v750_v54  }
 0x1f4   : > { %v3860_v24 = vpop.permute.xlu0 %1100 }
 0x1f6   : > { %831 = vperm.xlu1 %2752, %v823_v60  }
 0x1f8   : > { %v3874_v32 = vpop.permute.xlu0 %1107 }
 0x1fa   : > { %755 = vperm.xlu1 %2752, %v743_v61  }
 0x1fc   : > { %v3882_v37 = vpop.permute.xlu0 %1153 }
 0x200   : > { %v3893_v47 = vpop.permute.xlu0 %1159 }
 0x204   : > { %v3902_v49 = vpop.permute.xlu0 %1188 }
 0x205   : > { %5065 = vst [vmem:[#allocation46_spill] sm:$0xff] %v3902_v49 }
 0x206   : > { %v717_v63 = vpop.xlane.xlu1 %716 }
 0x207   : > { %v723_v4 = vmul.f32 0.00390625, %v717_v63 }
 0x208   : > { %v3911_v51 = vpop.permute.xlu0 %1232 }
 0x209   : > { %v809_v8 = vrot.slane %v723_v4, %v3805_v34  ;;  %v816_v9 = vrot.slane %v723_v4, %v742_v59  ;;  %v764_v34 = vsub.s32 %v761_v36, %v3642_v2 }
 0x20a   : > { %v3826_v10 = vpop.permute.xlu1 %894 }
 0x20b   : > { %5061 = vst [vmem:[#allocation42_spill] sm:$0xff] %v3826_v10  ;;  %828 = vperm.xlu0 %2753, %v816_v9   ;;  %825 = vperm.xlu1 %2752, %v809_v8  }
 0x20c   : > { %v3920_v54 = vpop.permute.xlu0 %1238 }
 0x20e   : > { %v3828_v11 = vpop.permute.xlu1 %921 }
 0x20f   : > { %5062 = vst [vmem:[#allocation43_spill] sm:$0xff] %v3828_v11  ;;  %1350 = vrot.lane.b32.xlu0 %v3730_v13, %s3203_s2  ;;  %1346 = vrot.lane.b32.xlu1 %v3712_v30, %s3203_s2 }
 0x210   : > { %2754 = vset.pattern.permute.xlu0 %v4933_v41  ;;  %2755 = vset.pattern.permute.xlu1 %v4933_v41 }
 0x212   : > { %v3838_v15 = vpop.permute.xlu1 %924 }
 0x213   : > { %5064 = vst [vmem:[#allocation45_spill] sm:$0xff] %v3838_v15  ;;  %1363 = vperm.xlu0 %2754, %v3769_v43   ;;  %1352 = vrot.lane.b32.xlu1 %v3718_v42, %s3203_s2  ;;  %v727_v15 = vld [vmem:[#allocation8 + $0x8] sm:$0xf] }
 0x214   : > { %v3924_v58 = vpop.permute.xlu0 %1252 }
 0x216   : > { %v3845_v17 = vpop.permute.xlu1 %1062 }
 0x217   : > { %1367 = vperm.xlu1 %2755, %v3759_v40   ;;  %2756 = vset.pattern.permute.xlu0 %v4934_v19 }
 0x218   : > { %1395 = vperm.xlu0 %2756, %v3745_v31   ;;  %v3930_v61 = vpop.permute.xlu0 %1265 }
 0x21a   : > { %v3850_v20 = vpop.permute.xlu1 %1069 }
 0x21b   : > { %2757 = vset.pattern.permute.xlu1 %v4934_v19 }
 0x21c   : > { %1399 = vperm.xlu1 %2757, %v3777_v44   ;;  %1414 = vperm.xlu0 %2756, %v3759_v40   ;;  %v3934_v4 = vpop.permute.xlu0 %1271 }
 0x21e   : > { %v3857_v23 = vpop.permute.xlu1 %1084 }
 0x220   : > { %1410 = vperm.xlu1 %2757, %v3769_v43   ;;  %1434 = vrot.lane.b32.xlu0 %v3734_v18, %s3209_s27 }
 0x221   : > { %2759 = vset.pattern.permute.xlu0 %v4931_v27 }
 0x222   : > { %v3865_v28 = vpop.permute.xlu1 %1098 }
 0x224   : > { %1432 = vrot.lane.b32.xlu1 %v3738_v25, %s3209_s27  ;;  %1438 = vrot.lane.b32.xlu0 %v3700_v14, %s3209_s27 }
 0x225   : > { %2758 = vset.pattern.permute.xlu1 %v4931_v27 }
 0x226   : > { %v3872_v29 = vpop.permute.xlu1 %1105 }
 0x228   : > { %1436 = vrot.lane.b32.xlu1 %v3704_v22, %s3209_s27  ;;  %1456 = vperm.xlu0 %2759, %v3777_v44  }
 0x22a   : > { %v3879_v35 = vpop.permute.xlu1 %1119 }
 0x22c   : > { %1452 = vperm.xlu1 %2758, %v3745_v31   ;;  %1467 = vrot.lane.b32.xlu0 %v3718_v42, %s3209_s27 }
 0x22e   : > { %v3886_v38 = vpop.permute.xlu1 %1151 }
 0x230   : > { %1463 = vrot.lane.b32.xlu1 %v3730_v13, %s3209_s27  ;;  %1482 = vperm.xlu0 %2759, %v3769_v43  }
 0x232   : > { %v3891_v46 = vpop.permute.xlu1 %1157 }
 0x234   : > { %1465 = vrot.lane.b32.xlu1 %v3756_v39, %s3209_s27  ;;  %1513 = vrot.lane.b32.xlu0 %v3738_v25, %s3211_s28 }
 0x235   : > { %2760 = vset.pattern.permute.xlu0 %v4929_v48 }
 0x236   : > { %v3900_v33 = vpop.permute.xlu1 %1171 }
 0x238   : > { %1469 = vrot.lane.b32.xlu1 %v3712_v30, %s3209_s27  ;;  %1517 = vrot.lane.b32.xlu0 %v3704_v22, %s3211_s28 }
 0x23a   : > { %v3908_v50 = vpop.permute.xlu1 %1182 }
 0x23c   : > { %1486 = vperm.xlu1 %2758, %v3759_v40  }
 0x23e   : > { %v3913_v52 = vpop.permute.xlu1 %1184 }
 0x240   : > { %1515 = vrot.lane.b32.xlu1 %v3734_v18, %s3211_s28 }
 0x241   : > { %2761 = vset.pattern.permute.xlu1 %v4929_v48  ;;  %v3940_v48 = vpop.permute.xlu0 %1286 }
 0x242   : > { %v3918_v53 = vpop.permute.xlu1 %1190 }
 0x245   : > { %v3944_v41 = vpop.permute.xlu0 %1315 }
 0x246   : > { %v3922_v55 = vpop.permute.xlu1 %1205 }
 0x247   : > { %5066 = vst [vmem:[#allocation47_spill] sm:$0xff] %v3922_v55 }
 0x249   : > { %v3950_v45 = vpop.permute.xlu0 %1321 }
 0x24a   : > { %v3926_v59 = vpop.permute.xlu1 %1234 }
 0x24d   : > { %v3955_v57 = vpop.permute.xlu0 %1337 }
 0x24e   : > { %v3928_v60 = vpop.permute.xlu1 %1240 }
 0x252   : > { %v3932_v63 = vpop.permute.xlu1 %1256 }
 0x256   : > { %v3936_v8 = vpop.permute.xlu1 %1263 }
 0x257   : > { %5067 = vst [vmem:[#allocation48_spill] sm:$0xff] %v3936_v8 }
 0x25a   : > { %v3938_v9 = vpop.permute.xlu1 %1269 }
 0x25b   : > { %5068 = vst [vmem:[#allocation49_spill] sm:$0xff] %v3938_v9 }
 0x25e   : > { %v3942_v27 = vpop.permute.xlu1 %1282 }
 0x25f   : > { %5069 = vst [vmem:[#allocation50_spill] sm:$0xff] %v3942_v27 }
 0x262   : > { %v3946_v19 = vpop.permute.xlu1 %1313  ;;  %v753_v10 = vpop.permute.xlu0 %752 }
 0x263   : > { %5070 = vst [vmem:[#allocation51_spill] sm:$0xff] %v3946_v19  ;;  %v765_v62 = vrot.slane %v753_v10, %v764_v34  ;;  %v725_v19 = vld [vmem:[#allocation8] sm:$0xf] }
 0x265   : > { %v785_v8 = vmul.f32 %v765_v62, %v725_v19 }
 0x266   : > { %v3948_v26 = vpop.permute.xlu1 %1319 }
 0x267   : > { %5071 = vst [vmem:[#allocation52_spill] sm:$0xff] %v3948_v26  ;;  %v800_v26 = vld [vmem:[#allocation10 + $0x8] sm:$0xf] }
 0x26a   : > { %v3952_v1 = vpop.permute.xlu1 %1333 }
 0x26b   : > { %5072 = vst [vmem:[#allocation53_spill] sm:$0xff] %v3952_v1 }
 0x26e   : > { %v3957_v56 = vpop.permute.xlu1 %1344 }
 0x26f   : > { %5073 = vst [vmem:[#allocation54_spill] sm:$0xff] %v3957_v56  ;;  %v726_v56 = vld [vmem:[#allocation8 + $0x4] sm:$0xf] }
 0x272   : > { %v759_v12 = vpop.permute.xlu1 %758 }
 0x273   : > { %v773_v7 = vrot.slane %v759_v12, %v764_v34  ;;  %v789_v12 = vsel %vm788_vm1, %v785_v8, 0.0 }
 0x275   : > { %v787_v11 = vmul.f32 %v773_v7, %v727_v15  ;;  %v798_v15 = vld [vmem:[#allocation10] sm:$0xf] }
 0x276   : > { %v832_v5 = vpop.permute.xlu1 %831 }
 0x277   : > { %v844_v27 = vrot.slane %v832_v5, %v764_v34  ;;  %v795_v1 = vsel %vm788_vm1, %v787_v11, 0.0  ;;  %v799_v11 = vld [vmem:[#allocation10 + $0x4] sm:$0xf] }
 0x278   : > { %796 = vadd.xlane.f32.xlu1 %v795_v1 }
 0x279   : > { %v856_v0 = vmul.f32 %v844_v27, %v800_v26 }
 0x27a   : > { %v756_v9 = vpop.permute.xlu1 %755 }
 0x27b   : > { %v769_v55 = vrot.slane %v756_v9, %v764_v34  ;;  %v863_v36 = vsel %vm788_vm1, %v856_v0, 0.0 }
 0x27c   : > { %864 = vadd.xlane.f32.xlu1 %v863_v36 }
 0x27d   : > { %v786_v49 = vmul.f32 %v769_v55, %v726_v56 }
 0x27f   : > { %v792_v7 = vsel %vm788_vm1, %v786_v49, 0.0 }
 0x280   : > { %790 = vadd.xlane.f32.xlu1 %v789_v12  ;;  %793 = vadd.xlane.f32.xlu0 %v792_v7 }
 0x28a   : > { %v829_v10 = vpop.permute.xlu0 %828  ;;  %v826_v5 = vpop.permute.xlu1 %825 }
 0x28b   : > { %v840_v1 = vrot.slane %v829_v10, %v764_v34  ;;  %v836_v26 = vrot.slane %v826_v5, %v764_v34 }
 0x28d   : > { %v854_v62 = vmul.f32 %v836_v26, %v798_v15  ;;  %v855_v19 = vmul.f32 %v840_v1, %v799_v11  ;;  %v4969_v15 = vmov 7  }
 0x28e   : > { %v3964_v27 = vpop.permute.xlu1 %1346  ;;  %v3968_v8 = vpop.permute.xlu0 %1350 }
 0x28f   : > { %v857_v9 = vsel %vm788_vm1, %v854_v62, 0.0  ;;  %v860_v0 = vsel %vm788_vm1, %v855_v19, 0.0  ;;  %5074 = vst [vmem:[#allocation55_spill] sm:$0xff] %v3968_v8 }
 0x290   : > { %858 = vadd.xlane.f32.xlu1 %v857_v9 }
 0x292   : > { %v3970_v56 = vpop.permute.xlu1 %1352  ;;  %v3972_v49 = vpop.permute.xlu0 %1363 }
 0x293   : > { %5075 = vst [vmem:[#allocation56_spill] sm:$0xff] %v3972_v49 }
 0x296   : > { %1533 = vperm.xlu0 %2760, %v3745_v31   ;;  %v3975_v55 = vpop.permute.xlu1 %1367 }
 0x297   : > { %5076 = vst [vmem:[#allocation57_spill] sm:$0xff] %v3975_v55  ;;  %v3979_v34 = vpop.permute.xlu0 %1395 }
 0x298   : > { %5077 = vst [vmem:[#allocation58_spill] sm:$0xff] %v3979_v34 }
 0x29a   : > { %1546 = vrot.lane.b32.xlu0 %v3756_v39, %s3211_s28 }
 0x29b   : > { %v3981_v36 = vpop.permute.xlu1 %1399  ;;  %v3987_v7 = vpop.permute.xlu0 %1414 }
 0x29c   : > { %5078 = vst [vmem:[#allocation59_spill] sm:$0xff] %v3981_v36  ;;  %5080 = vst [vmem:[#allocation61_spill] sm:$0xff] %v3987_v7 }
 0x29e   : > { %1550 = vrot.lane.b32.xlu0 %v3712_v30, %s3211_s28 }
 0x29f   : > { %v3985_v12 = vpop.permute.xlu1 %1410  ;;  %v3995_v5 = vpop.permute.xlu0 %1434 }
 0x2a0   : > { %5079 = vst [vmem:[#allocation60_spill] sm:$0xff] %v3985_v12  ;;  %5082 = vst [vmem:[#allocation63_spill] sm:$0xff] %v3995_v5 }
 0x2a1   : > { %1519 = vrot.lane.b32.xlu1 %v3700_v14, %s3211_s28 }
 0x2a2   : > { %1567 = vperm.xlu0 %2760, %v3759_v40  }
 0x2a3   : > { %v3992_v10 = vpop.permute.xlu1 %1432  ;;  %v1439_v26 = vpop.permute.xlu0 %1438 }
 0x2a4   : > { %5081 = vst [vmem:[#allocation62_spill] sm:$0xff] %v3992_v10 }
 0x2a5   : > { %1537 = vperm.xlu1 %2761, %v3777_v44  }
 0x2a6   : > { %2763 = vset.pattern.permute.xlu0 %v4969_v15 }
 0x2a7   : > { %v1437_v11 = vpop.permute.xlu1 %1436  ;;  %v1457_v19 = vpop.permute.xlu0 %1456 }
 0x2a8   : > { %v1442_v7 = vsel %vm1440_vm2, %v1437_v11, %v1439_v26  ;;  %v1450_v12 = vsel %vm1440_vm2, %v1439_v26, %v1437_v11 }
 0x2a9   : > { %1544 = vrot.lane.b32.xlu1 %v3730_v13, %s3211_s28  ;;  %v1462_v10 = vmul.f32 %v1457_v19, %v1450_v12 }
 0x2ab   : > { %v4000_v1 = vpop.permute.xlu1 %1452 }
 0x2ac   : > { %5083 = vst [vmem:[#allocation64_spill] sm:$0xff] %v4000_v1  ;;  %v1468_v1 = vpop.permute.xlu0 %1467 }
 0x2ad   : > { %1548 = vrot.lane.b32.xlu1 %v3718_v42, %s3211_s28 }
 0x2af   : > { %v4004_v62 = vpop.permute.xlu1 %1463 }
 0x2b0   : > { %5084 = vst [vmem:[#allocation65_spill] sm:$0xff] %v4004_v62 }
 0x2b1   : > { %1563 = vperm.xlu1 %2761, %v3769_v43  }
 0x2b3   : > { %v4007_v9 = vpop.permute.xlu1 %1465 }
 0x2b4   : > { %5085 = vst [vmem:[#allocation66_spill] sm:$0xff] %v4007_v9  ;;  %v1461_v9 = vmul.f32 %v1457_v19, %v1442_v7 }
 0x2b5   : > { %1594 = vrot.lane.b32.xlu1 %v3738_v25, %s3214_s12 }
 0x2b6   : > { %2762 = vset.pattern.permute.xlu1 %v4969_v15 }
 0x2b7   : > { %v1470_v36 = vpop.permute.xlu1 %1469 }
 0x2b8   : > { %v1472_v34 = vsel %vm1440_vm2, %v1468_v1, %v1470_v36  ;;  %v1480_v62 = vsel %vm1440_vm2, %v1470_v36, %v1468_v1 }
 0x2b9   : > { %1598 = vrot.lane.b32.xlu1 %v3704_v22, %s3214_s12 }
 0x2bb   : > { %v1487_v5 = vpop.permute.xlu1 %1486 }
 0x2bc   : > { %v1491_v55 = vmul.f32 %v1487_v5, %v1472_v34  ;;  %v1492_v49 = vmul.f32 %v1487_v5, %v1480_v62  ;;  %v4972_v34 = vmov 8   ;;  %v5090_v5 = vmov 1  }
 0x2bd   : > { %1614 = vperm.xlu1 %2762, %v3745_v31  }
 0x2be   : > { %v4019_v15 = vadd.f32 %v1491_v55, %v1461_v9  ;;  %v4021_v8 = vadd.f32 %v1492_v49, %v1462_v10  ;;  %v1756_v49 = vld [vmem:[%s4911_s10] sm:$0xff]  ;;  %v4063_v55 = vpop.permute.xlu0 %1482 }
 0x2bf   : > { %v1516_v36 = vpop.permute.xlu1 %1515 }
 0x2c0   : > { %5086 = vst [vmem:[#allocation67_spill] sm:$0xff] %v4019_v15  ;;  %5087 = vst [vmem:[#allocation68_spill] sm:$0xff] %v4021_v8 }
 0x2c1   : > { %861 = vadd.xlane.f32.xlu0 %v860_v0  ;;  %1625 = vrot.lane.b32.xlu1 %v3730_v13, %s3214_s12  ;;  %v5088_v0 = vmov 0  }
 0x2c5   : > { %1627 = vrot.lane.b32.xlu1 %v3756_v39, %s3214_s12 }
 0x2c9   : > { %1631 = vrot.lane.b32.xlu1 %v3712_v30, %s3214_s12 }
 0x2cd   : > { %1648 = vperm.xlu1 %2762, %v3759_v40  }
 0x2d1   : > { %2765 = vset.pattern.permute.xlu1 %v4972_v34 }
 0x2d2   : > { %1699 = vperm.xlu1 %2765, %v3777_v44  }
 0x2d6   : > { %1725 = vperm.xlu1 %2765, %v3769_v43  }
 0x2d7   : > { %1596 = vrot.lane.b32.xlu0 %v3734_v18, %s3214_s12 }
 0x2da   : > { %1675 = vrot.lane.b32.xlu1 %v3738_v25, %s3216_s22 }
 0x2db   : > { %1600 = vrot.lane.b32.xlu0 %v3700_v14, %s3214_s12  ;;  %2767 = vset.pattern.permute.xlu1 %v5088_v0 }
 0x2de   : > { %1679 = vrot.lane.b32.xlu1 %v3704_v22, %s3216_s22 }
 0x2df   : > { %1618 = vperm.xlu0 %2763, %v3777_v44  }
 0x2e2   : > { %1706 = vrot.lane.b32.xlu1 %v3730_v13, %s3216_s22 }
 0x2e3   : > { %1629 = vrot.lane.b32.xlu0 %v3718_v42, %s3214_s12 }
 0x2e6   : > { %1710 = vrot.lane.b32.xlu1 %v3718_v42, %s3216_s22 }
 0x2e7   : > { %1644 = vperm.xlu0 %2763, %v3769_v43  }
 0x2ea   : > { %1760 = vperm.xlu1 %2767, %v1756_v49  }
 0x2eb   : > { %2764 = vset.pattern.permute.xlu0 %v4972_v34 }
 0x2ec   : > { %1695 = vperm.xlu0 %2764, %v3745_v31   ;;  %v1514_v31 = vpop.permute.xlu0 %1513 }
 0x2ed   : > { %v1522_v26 = vsel %vm1521_vm3, %v1514_v31, %v1516_v36  ;;  %v1530_v62 = vsel %vm1521_vm3, %v1516_v36, %v1514_v31 }
 0x2f0   : > { %1729 = vperm.xlu0 %2764, %v3759_v40   ;;  %v1518_v12 = vpop.permute.xlu0 %1517 }
 0x2f4   : > { %2766 = vset.pattern.permute.xlu0 %v5088_v0 }
 0x2f5   : > { %1089 = vperm.xlu0 %2766, %v3777_v44  }
 0x2f9   : > { %1124 = vperm.xlu0 %2766, %v3759_v40   ;;  %v1757_v40 = vld [vmem:[%s4911_s10 + $0x8] sm:$0xf] }
 0x2fd   : > { %1677 = vrot.lane.b32.xlu0 %v3734_v18, %s3216_s22 }
 0x301   : > { %1681 = vrot.lane.b32.xlu0 %v3700_v14, %s3216_s22 }
 0x305   : > { %1708 = vrot.lane.b32.xlu0 %v3756_v39, %s3216_s22  ;;  %v4072_v7 = vpop.xlane.xlu1 %796 }
 0x306   : > { %5089 = vst [vmem:[#allocation69_spill] sm:$0xff] %v4072_v7 }
 0x309   : > { %1712 = vrot.lane.b32.xlu0 %v3712_v30, %s3216_s22  ;;  %v4076_v11 = vpop.xlane.xlu1 %864 }
 0x30a   : > { %5091 = vst [vmem:[#allocation70_spill] sm:$0xff] %v4076_v11 }
 0x30d   : > { %1765 = vperm.xlu0 %2766, %v1757_v40   ;;  %v794_v10 = vpop.xlane.xlu0 %793  ;;  %v4081_v49 = vpop.xlane.xlu1 %790 }
 0x30e   : > { %5092 = vst [vmem:[#allocation71_spill] sm:$0xff] %v4081_v49 }
 0x311   : > { %2768 = vset.pattern.permute.xlu0 %v5090_v5 }
 0x312   : > { %1175 = vperm.xlu0 %2768, %v3777_v44  }
 0x315   : > { %v1534_v1 = vpop.permute.xlu0 %1533 }
 0x316   : > { %v1540_v19 = vmul.f32 %v1534_v1, %v1522_v26  ;;  %v1541_v9 = vmul.f32 %v1534_v1, %v1530_v62  ;;  %1201 = vperm.xlu0 %2768, %v3769_v43  }
 0x319   : > { %v1547_v7 = vpop.permute.xlu0 %1546 }
 0x31d   : > { %v4083_v40 = vpop.xlane.xlu1 %858  ;;  %v1551_v44 = vpop.permute.xlu0 %1550 }
 0x31e   : > { %5093 = vst [vmem:[#allocation72_spill] sm:$0xff] %v4083_v40 }
 0x321   : > { %v1520_v34 = vpop.permute.xlu1 %1519  ;;  %v1568_v11 = vpop.permute.xlu0 %1567 }
 0x322   : > { %v1523_v15 = vsel %vm1521_vm3, %v1518_v12, %v1520_v34  ;;  %v1531_v30 = vsel %vm1521_vm3, %v1520_v34, %v1518_v12 }
 0x325   : > { %v1538_v0 = vpop.permute.xlu1 %1537 }
 0x326   : > { %v1542_v43 = vmul.f32 %v1538_v0, %v1523_v15  ;;  %v1543_v1 = vmul.f32 %v1538_v0, %v1531_v30 }
 0x329   : > { %v1545_v5 = vpop.permute.xlu1 %1544 }
 0x32a   : > { %v1552_v40 = vsel %vm1521_vm3, %v1545_v5, %v1547_v7  ;;  %v1560_v49 = vsel %vm1521_vm3, %v1547_v7, %v1545_v5 }
 0x32d   : > { %v1549_v8 = vpop.permute.xlu1 %1548 }
 0x32e   : > { %v1553_v31 = vsel %vm1521_vm3, %v1549_v8, %v1551_v44  ;;  %v1561_v36 = vsel %vm1521_vm3, %v1551_v44, %v1549_v8 }
 0x32f   : > { %v1572_v26 = vmul.f32 %v1568_v11, %v1553_v31  ;;  %v1573_v62 = vmul.f32 %v1568_v11, %v1561_v36 }
 0x331   : > { %v4091_v42 = vadd.f32 %v1572_v26, %v1542_v43  ;;  %v4093_v39 = vadd.f32 %v1573_v62, %v1543_v1  ;;  %v1564_v13 = vpop.permute.xlu1 %1563 }
 0x332   : > { %v1570_v18 = vmul.f32 %v1564_v13, %v1552_v40  ;;  %v1571_v14 = vmul.f32 %v1564_v13, %v1560_v49 }
 0x333   : > { %5094 = vst [vmem:[#allocation73_spill] sm:$0xff] %v4093_v39  ;;  %v5133_v39 = vld [vmem:[#allocation62_spill] sm:$0xff] }
 0x334   : > { %v4095_v34 = vadd.f32 %v1570_v18, %v1540_v19  ;;  %v4097_v12 = vadd.f32 %v1571_v14, %v1541_v9 }
 0x335   : > { %v4099_v8 = vpop.permute.xlu1 %1594 }
 0x336   : > { %5095 = vst [vmem:[#allocation74_spill] sm:$0xff] %v4095_v34  ;;  %5096 = vst [vmem:[#allocation75_spill] sm:$0xff] %v4097_v12 }
 0x339   : > { %v1599_v30 = vpop.permute.xlu1 %1598 }
 0x33d   : > { %v4101_v15 = vpop.permute.xlu1 %1614 }
 0x33e   : > { %5097 = vst [vmem:[#allocation76_spill] sm:$0xff] %v4101_v15 }
 0x341   : > { %v4105_v7 = vpop.permute.xlu1 %1625 }
 0x345   : > { %v4109_v44 = vpop.permute.xlu1 %1627 }
 0x349   : > { %v4111_v13 = vpop.permute.xlu1 %1631 }
 0x34e   : > { %v862_v0 = vpop.xlane.xlu0 %861 }
 0x34f   : > { %v4103_v11 = vadd.f32 %v862_v0, %v794_v10  ;;  %v4117_v10 = vpop.permute.xlu1 %1648  ;;  %v4139_v0 = vld [vmem:[%s5103_s20 + $0x8] sm:$0xff] }
 0x351   : > { %5098 = vst [vmem:[#allocation77_spill] sm:$0xff] %v4103_v11 }
 0x352   : > { %v4107_v5 = vpop.permute.xlu0 %1596 }
 0x356   : > { %v1601_v40 = vpop.permute.xlu0 %1600 }
 0x357   : > { %v1604_v14 = vsel %vm1602_vm4, %v1599_v30, %v1601_v40  ;;  %v1612_v18 = vsel %vm1602_vm4, %v1601_v40, %v1599_v30  ;;  %v4134_v30 = vld [vmem:[%s5103_s20] sm:$0xff]  ;;  %v4142_v40 = vsub.s32 2, %v3642_v2 }
 0x359   : > { %5104 = vst [vmem:[#allocation82_spill] sm:$0xff] %v4142_v40 }
 0x35e   : > { %v1619_v19 = vpop.permute.xlu0 %1618 }
 0x35f   : > { %v1623_v9 = vmul.f32 %v1619_v19, %v1604_v14  ;;  %v4115_v49 = vmul.f32 %v1619_v19, %v1612_v18  ;;  %v4148_v18 = vrot.slane %v4134_v30, %v3645_v3  ;;  %v4152_v19 = vrot.slane %v4139_v0, %v3645_v3 }
 0x360   : > { %v4167_v3 = vrot.slane %v4139_v0, %v4142_v40 }
 0x361   : > { %5099 = vst [vmem:[#allocation78_spill] sm:$0xff] %v4115_v49  ;;  %v5130_v49 = vld [vmem:[#allocation53_spill] sm:$0xff] }
 0x362   : > { %v4119_v31 = vpop.permute.xlu0 %1629 }
 0x363   : > { %v1634_v36 = vsel %vm1602_vm4, %v4119_v31, %v4111_v13 }
 0x364   : > { %v1653_v43 = vmul.f32 %v4117_v10, %v1634_v36  ;;  %v4159_v36 = vrot.slane %v4134_v30, %v4142_v40  ;;  %v4190_v40 = vsub.s32 3, %v3642_v2 }
 0x366   : > { %v4125_v1 = vadd.f32 %v1653_v43, %v1623_v9  ;;  %v4127_v26 = vpop.permute.xlu0 %1644  ;;  %v1115_v9 = vsel %vm1073_vm5, %v3865_v28, %v3872_v29  ;;  %v1109_v43 = vsel %vm1073_vm5, %v3872_v29, %v3865_v28  ;;  %v4183_v28 = vsel %vm1073_vm5, %v3843_v16, %v3852_v21  ;;  %5106 = vst [vmem:[#allocation84_spill] sm:$0xff] %v4190_v40 }
 0x367   : > { %5101 = vst [vmem:[#allocation80_spill] sm:$0xff] %v4127_v26  ;;  %v1127_v11 = vmul.f32 %v3879_v35, %v1115_v9  ;;  %v4178_v26 = vsel %vm1073_vm5, %v3852_v21, %v3843_v16  ;;  %v1074_v29 = vsel %vm1073_vm5, %v3850_v20, %v3845_v17  ;;  %v1243_v16 = vsel %vm1242_vm7, %v3920_v54, %v3911_v51 }
 0x368   : > { %5100 = vst [vmem:[#allocation79_spill] sm:$0xff] %v4125_v1  ;;  %v1128_v1 = vmul.f32 %v3879_v35, %v1109_v43  ;;  %v4195_v35 = vsel %vm1073_vm5, %v3874_v32, %v3860_v24  ;;  %v1093_v43 = vmul.f32 %v3857_v23, %v1074_v29  ;;  %v1331_v29 = vsel %vm1323_vm8, %v3944_v41, %v3950_v45 }
 0x36b   : > { %v4129_v62 = vpop.permute.xlu0 %1695 }
 0x36c   : > { %5102 = vst [vmem:[#allocation81_spill] sm:$0xff] %v4129_v62  ;;  %v1080_v62 = vsel %vm1073_vm5, %v3845_v17, %v3850_v20  ;;  %v1249_v17 = vsel %vm1242_vm7, %v3911_v51, %v3920_v54  ;;  %v4207_v20 = vsel %vm1073_vm5, %v3860_v24, %v3874_v32  ;;  %v1132_v51 = vadd.f32 %v1128_v1, %v1093_v43 }
 0x36d   : > { %v1092_v9 = vmul.f32 %v3857_v23, %v1080_v62  ;;  %v1274_v62 = vsel %vm1242_vm7, %v3934_v4, %v3930_v61  ;;  %v1280_v23 = vsel %vm1242_vm7, %v3930_v61, %v3934_v4  ;;  %v1325_v24 = vsel %vm1323_vm8, %v3950_v45, %v3944_v41 }
 0x36e   : > { %v4226_v32 = vsel %vm1161_vm6, %v3893_v47, %v3882_v37  ;;  %v4231_v54 = vsel %vm1161_vm6, %v3882_v37, %v3893_v47  ;;  %v1259_v61 = vmul.f32 %v3924_v58, %v1249_v17  ;;  %v1260_v4 = vmul.f32 %v3924_v58, %v1243_v16  ;;  %v4257_v17 = vpop.permute.xlu1 %1699 }
 0x36f   : > { %v4144_v14 = vpop.permute.xlu0 %1729  ;;  %v1131_v21 = vadd.f32 %v1127_v11, %v1092_v9  ;;  %v4237_v11 = vrot.slane %v4134_v30, %v4190_v40  ;;  %v4241_v41 = vrot.slane %v4139_v0, %v4190_v40  ;;  %v1250_v45 = vsel %vm1242_vm7, %v3926_v59, %v3928_v60  ;;  %5108 = vst [vmem:[#allocation86_spill] sm:$0xff] %v4257_v17 }
 0x370   : > { %5105 = vst [vmem:[#allocation83_spill] sm:$0xff] %v4144_v14  ;;  %v1291_v1 = vmul.f32 %v3940_v48, %v1280_v23  ;;  %v1292_v37 = vmul.f32 %v3940_v48, %v1274_v62  ;;  %v1342_v47 = vmul.f32 %v3955_v57, %v1331_v29  ;;  %v1244_v9 = vsel %vm1242_vm7, %v3928_v60, %v3926_v59 }
 0x371   : > { %v4250_v58 = vmul.f32 %v4148_v18, %v1131_v21  ;;  %v1261_v43 = vmul.f32 %v3932_v63, %v1250_v45  ;;  %v1343_v16 = vmul.f32 %v3955_v57, %v1325_v24  ;;  %v4262_v23 = vmul.f32 %v4152_v19, %v1132_v51 }
 0x372   : > { %v1162_v48 = vsel %vm1161_vm6, %v3891_v46, %v3886_v38  ;;  %v1168_v21 = vsel %vm1161_vm6, %v3886_v38, %v3891_v46  ;;  %v1262_v59 = vmul.f32 %v3932_v63, %v1244_v9  ;;  %v4279_v62 = vrot.slane %v4134_v30, %v3652_v6  ;;  %v5115_v63 = vld [vmem:[#allocation46_spill] sm:$0xff]  ;;  %v5119_v9 = vld [vmem:[#allocation49_spill] sm:$0xff] }
 0x373   : > { %5107 = vst [vmem:[#allocation85_spill] sm:$0xff] %v4250_v58  ;;  %5110 = vst [vmem:[#allocation88_spill] sm:$0xff] %v4262_v23  ;;  %v4272_v60 = vmul.f32 %v3900_v33, %v1168_v21  ;;  %v4275_v57 = vmul.f32 %v3900_v33, %v1162_v48  ;;  %v4283_v29 = vrot.slane %v4139_v0, %v3652_v6  ;;  %v5118_v6 = vld [vmem:[#allocation47_spill] sm:$0xff]  ;;  %v5120_v48 = vld [vmem:[#allocation48_spill] sm:$0xff] }
 0x374   : > { %v4169_v14 = vpop.permute.xlu0 %1089  ;;  %5113 = vst [vmem:[#allocation91_spill] sm:$0xff] %v4279_v62  ;;  %v1193_v38 = vsel %vm1161_vm6, %v3918_v53, %v3913_v52  ;;  %v1199_v46 = vsel %vm1161_vm6, %v3913_v52, %v3918_v53  ;;  %v4294_v33 = vsel %vm1161_vm6, %v5115_v63, %v3908_v50  ;;  %v4299_v51 = vsel %vm1161_vm6, %v3908_v50, %v5115_v63  ;;  %v5122_v63 = vld [vmem:[#allocation50_spill] sm:$0xff]  ;;  %v5124_v23 = vld [vmem:[#allocation52_spill] sm:$0xff] }
 0x375   : > { %5111 = vst [vmem:[#allocation89_spill] sm:$0xff] %v4272_v60  ;;  %5112 = vst [vmem:[#allocation90_spill] sm:$0xff] %v4275_v57  ;;  %v4302_v24 = vmul.f32 %v5118_v6, %v1199_v46  ;;  %v1295_v45 = vadd.f32 %v1291_v1, %v1261_v43  ;;  %v1279_v21 = vsel %vm1242_vm7, %v5120_v48, %v5119_v9  ;;  %v5123_v46 = vld [vmem:[#allocation51_spill] sm:$0xff]  ;;  %v5125_v57 = vld [vmem:[#allocation54_spill] sm:$0xff] }
 0x376   : > { %5114 = vst [vmem:[#allocation92_spill] sm:$0xff] %v4283_v29  ;;  %5116 = vst [vmem:[#allocation46_spill] sm:$0xff] %v4294_v33  ;;  %v1361_v52 = vsel %vm1323_vm8, %v3964_v27, %v3970_v56  ;;  %v1296_v17 = vadd.f32 %v1292_v37, %v1262_v59  ;;  %v1273_v50 = vsel %vm1242_vm7, %v5119_v9, %v5120_v48  ;;  %v5126_v60 = vld [vmem:[#allocation55_spill] sm:$0xff]  ;;  %v4329_v9 = vpop.permute.xlu1 %1725 }
 0x377   : > { %5117 = vst [vmem:[#allocation93_spill] sm:$0xff] %v4299_v51  ;;  %v1355_v1 = vsel %vm1323_vm8, %v3970_v56, %v3964_v27  ;;  %v1290_v43 = vmul.f32 %v5122_v63, %v1273_v50  ;;  %v1324_v58 = vsel %vm1323_vm8, %v5124_v23, %v5123_v46  ;;  %v1354_v37 = vsel %vm1323_vm8, %v5126_v60, %v5125_v57  ;;  %v5128_v56 = vld [vmem:[#allocation56_spill] sm:$0xff]  ;;  %v5129_v50 = vld [vmem:[#allocation57_spill] sm:$0xff] }
 0x378   : > { %v4218_v15 = vpop.permute.xlu0 %1124  ;;  %v1360_v59 = vsel %vm1323_vm8, %v5125_v57, %v5126_v60  ;;  %5127 = vst [vmem:[#allocation49_spill] sm:$0xff] %v4329_v9  ;;  %v1330_v27 = vsel %vm1323_vm8, %v5123_v46, %v5124_v23  ;;  %v1341_v34 = vmul.f32 %v5130_v49, %v1324_v58  ;;  %v1373_v60 = vmul.f32 %v5129_v50, %v1355_v1  ;;  %v5132_v9 = vld [vmem:[#allocation63_spill] sm:$0xff] }
 0x379   : > { %v1370_v48 = vmul.f32 %v5128_v56, %v1360_v59  ;;  %v1340_v12 = vmul.f32 %v5130_v49, %v1330_v27  ;;  %v1441_v23 = vsel %vm1440_vm2, %v5133_v39, %v5132_v9  ;;  %v1449_v46 = vsel %vm1440_vm2, %v5132_v9, %v5133_v39  ;;  %v5136_v39 = vld [vmem:[#allocation58_spill] sm:$0xff] }
 0x37a   : > { %v4358_v58 = vmul.f32 %v4159_v36, %v1295_v45  ;;  %v1294_v59 = vadd.f32 %v1290_v43, %v1260_v4  ;;  %v1405_v9 = vmul.f32 %v3738_v25, %v5136_v39  ;;  %v5140_v25 = vld [vmem:[#allocation37_spill] sm:$0xff]  ;;  %v5141_v43 = vld [vmem:[#allocation60_spill] sm:$0xff] }
 0x37b   : > { %v1374_v27 = vadd.f32 %v1370_v48, %v1340_v12  ;;  %v5138_v12 = vld [vmem:[#allocation59_spill] sm:$0xff]  ;;  %v5142_v48 = vld [vmem:[#allocation36_spill] sm:$0xff] }
 0x37c   : > { %v4259_v40 = vpop.permute.xlu0 %1677 }
 0x37d   : > { %5109 = vst [vmem:[#allocation87_spill] sm:$0xff] %v4259_v40  ;;  %v1289_v40 = vmul.f32 %v5122_v63, %v1279_v21  ;;  %v1371_v21 = vmul.f32 %v5128_v56, %v1354_v37  ;;  %v1372_v63 = vmul.f32 %v5129_v50, %v1361_v52  ;;  %v5134_v52 = vld [vmem:[#allocation66_spill] sm:$0xff]  ;;  %v5135_v37 = vld [vmem:[#allocation65_spill] sm:$0xff] }
 0x37e   : > { %v1479_v49 = vsel %vm1440_vm2, %v5134_v52, %v5135_v37 }
 0x37f   : > { %v1293_v1 = vadd.f32 %v1289_v40, %v1259_v61  ;;  %v1375_v56 = vadd.f32 %v1371_v21, %v1341_v34  ;;  %v1376_v50 = vadd.f32 %v1372_v63, %v1342_v47  ;;  %v1490_v45 = vmul.f32 %v4063_v55, %v1479_v49  ;;  %v5139_v61 = vld [vmem:[#allocation33_spill] sm:$0xff]  ;;  %v5143_v63 = vld [vmem:[#allocation38_spill] sm:$0xff] }
 0x380   : > { %v4310_v53 = vpop.permute.xlu0 %1681  ;;  %v1377_v40 = vadd.f32 %v1373_v60, %v1343_v16  ;;  %v1407_v34 = vmul.f32 %v5138_v12, %v3704_v22  ;;  %v1408_v4 = vmul.f32 %v5139_v61, %v5138_v12  ;;  %v1406_v47 = vmul.f32 %v5140_v25, %v5136_v39  ;;  %v5146_v16 = vld [vmem:[#allocation34_spill] sm:$0xff] }
 0x381   : > { %5121 = vst [vmem:[#allocation47_spill] sm:$0xff] %v4310_v53  ;;  %v4338_v53 = vmul.f32 %v5118_v6, %v1193_v38  ;;  %v1471_v38 = vsel %vm1440_vm2, %v5135_v37, %v5134_v52  ;;  %v4361_v6 = vmul.f32 %v4167_v3, %v1296_v17  ;;  %v4369_v37 = vpop.permute.xlu1 %1675  ;;  %v1420_v21 = vmul.f32 %v5142_v48, %v5141_v43 }
 0x382   : > { %v1489_v52 = vmul.f32 %v4063_v55, %v1471_v38  ;;  %v1421_v55 = vmul.f32 %v5143_v63, %v5141_v43  ;;  %v4388_v22 = vmul.f32 %v4159_v36, %v1293_v1  ;;  %v4391_v38 = vmul.f32 %v4167_v3, %v1294_v59 }
 0x383   : > { %v4394_v49 = vmul.f32 %v4237_v11, %v1374_v27  ;;  %v4397_v39 = vsub.s32 6, %v3642_v2  ;;  %v4400_v12 = vmul.f32 %v4241_v41, %v1375_v56  ;;  %v4403_v61 = vmul.f32 %v4237_v11, %v1376_v50 }
 0x384   : > { %v4343_v57 = vpop.permute.xlu0 %1708  ;;  %v4408_v1 = vmul.f32 %v4241_v41, %v1377_v40  ;;  %v4411_v59 = vsub.s32 7, %v3642_v2  ;;  %v1129_v27 = vmul.f32 %v4218_v15, %v4207_v20  ;;  %v1130_v56 = vmul.f32 %v4218_v15, %v4195_v35  ;;  %v5150_v40 = vld [vmem:[#allocation67_spill] sm:$0xff] }
 0x385   : > { %5131 = vst [vmem:[#allocation48_spill] sm:$0xff] %v4343_v57  ;;  %v5137_v57 = vld [vmem:[#allocation64_spill] sm:$0xff]  ;;  %5147 = vst [vmem:[#allocation50_spill] sm:$0xff] %v4397_v39  ;;  %v4417_v63 = vadd.f32 %v1420_v21, %v1405_v9  ;;  %v4419_v50 = vadd.f32 %v1421_v55, %v1406_v47  ;;  %v4429_v2 = vrot.slane %v4134_v30, %v4397_v39 }
 0x386   : > { %v1459_v33 = vmul.f32 %v5137_v57, %v1441_v23  ;;  %v1460_v51 = vmul.f32 %v5137_v57, %v1449_v46  ;;  %v5144_v57 = vld [vmem:[#allocation35_spill] sm:$0xff]  ;;  %v5145_v23 = vld [vmem:[#allocation61_spill] sm:$0xff]  ;;  %5148 = vst [vmem:[#allocation51_spill] sm:$0xff] %v4411_v59  ;;  %v4433_v20 = vrot.slane %v4139_v0, %v4397_v39  ;;  %v1094_v15 = vmul.f32 %v4169_v14, %v4183_v28  ;;  %v5151_v47 = vld [vmem:[#allocation68_spill] sm:$0xff] }
 0x387   : > { %v1422_v46 = vmul.f32 %v5145_v23, %v5144_v57  ;;  %v1423_v60 = vmul.f32 %v5146_v16, %v5145_v23  ;;  %5149 = vst [vmem:[#allocation52_spill] sm:$0xff] %v4429_v2  ;;  %v1095_v35 = vmul.f32 %v4169_v14, %v4178_v26  ;;  %v4454_v28 = vmul.f32 %v4283_v29, %v5151_v47  ;;  %v5152_v57 = vld [vmem:[#allocation29_spill] sm:$0xff] }
 0x388   : > { %v4371_v17 = vpop.permute.xlu0 %1712  ;;  %v1493_v25 = vadd.f32 %v1489_v52, %v1459_v33  ;;  %v1494_v43 = vadd.f32 %v1490_v45, %v1460_v51  ;;  %v4425_v52 = vpop.permute.xlu1 %1679  ;;  %v4458_v26 = vrot.slane %v4134_v30, %v4411_v59  ;;  %v1133_v14 = vadd.f32 %v1129_v27, %v1094_v15 }
 0x389   : > { %v4421_v33 = vadd.f32 %v1422_v46, %v1407_v34  ;;  %v4423_v51 = vadd.f32 %v1423_v60, %v1408_v4  ;;  %v4447_v34 = vmul.f32 %v4279_v62, %v5150_v40  ;;  %v1642_v4 = vsel %vm1602_vm4, %v4111_v13, %v4119_v31 }
 0x38a   : > { %v4440_v9 = vmul.f32 %v4279_v62, %v1493_v25  ;;  %v4443_v45 = vmul.f32 %v4283_v29, %v1494_v43  ;;  %v1134_v21 = vadd.f32 %v1130_v56, %v1095_v35  ;;  %v4462_v23 = vrot.slane %v4134_v30, %v5152_v57 }
 0x38b   : > { %v4466_v46 = vrot.slane %v4139_v0, %v5152_v57  ;;  %v4472_v16 = vmul.f32 %v4429_v2, %v4091_v42  ;;  %v4476_v60 = vrot.slane %v4139_v0, %v4411_v59  ;;  %v1654_v25 = vmul.f32 %v4117_v10, %v1642_v4  ;;  %v5155_v4 = vld [vmem:[#allocation73_spill] sm:$0xff] }
 0x38c   : > { %v4405_v48 = vpop.permute.xlu0 %1765  ;;  %v1633_v30 = vsel %vm1602_vm4, %v4105_v7, %v4109_v44  ;;  %v1603_v0 = vsel %vm1602_vm4, %v4099_v8, %v4107_v5  ;;  %v1611_v10 = vsel %vm1602_vm4, %v4107_v5, %v4099_v8  ;;  %v1145_v27 = vmul.f32 %v4148_v18, %v1133_v14  ;;  %v5157_v8 = vld [vmem:[#allocation75_spill] sm:$0xff]  ;;  %v5158_v14 = vld [vmem:[#allocation78_spill] sm:$0xff] }
 0x38d   : > { %v1146_v56 = vmul.f32 %v4152_v19, %v1134_v21  ;;  %v1589_v47 = vmul.f32 %v4433_v20, %v5155_v4  ;;  %v1587_v5 = vmul.f32 %v4433_v20, %v5157_v8  ;;  %v1658_v21 = vadd.f32 %v1654_v25, %v5158_v14  ;;  %v5167_v14 = vld [vmem:[#allocation87_spill] sm:$0xff] }
 0x391   : > { %v1176_v55 = vpop.permute.xlu0 %1175 }
 0x392   : > { %v1180_v13 = vmul.f32 %v1176_v55, %v4231_v54  ;;  %v1181_v31 = vmul.f32 %v1176_v55, %v4226_v32  ;;  %v1641_v54 = vsel %vm1602_vm4, %v4109_v44, %v4105_v7  ;;  %v1707_v32 = vpop.permute.xlu1 %1706  ;;  %v5156_v55 = vld [vmem:[#allocation74_spill] sm:$0xff] }
 0x393   : > { %v1586_v57 = vmul.f32 %v4429_v2, %v5156_v55 }
 0x394   : > { %v1214_v43 = vadd.f32 %v4302_v24, %v1180_v13  ;;  %v1215_v42 = vadd.f32 %v4338_v53, %v1181_v31  ;;  %v5153_v24 = vld [vmem:[#allocation93_spill] sm:$0xff]  ;;  %v5154_v53 = vld [vmem:[#allocation46_spill] sm:$0xff] }
 0x395   : > { %v1202_v15 = vpop.permute.xlu0 %1201 }
 0x396   : > { %v1226_v7 = vmul.f32 %v4462_v23, %v1214_v43  ;;  %v1227_v44 = vmul.f32 %v4466_v46, %v1215_v42  ;;  %v1208_v35 = vmul.f32 %v1202_v15, %v5153_v24  ;;  %v1209_v40 = vmul.f32 %v1202_v15, %v5154_v53  ;;  %v5159_v43 = vld [vmem:[#allocation89_spill] sm:$0xff]  ;;  %v5160_v42 = vld [vmem:[#allocation90_spill] sm:$0xff]  ;;  %v5161_v24 = vld [vmem:[#allocation76_spill] sm:$0xff]  ;;  %v1711_v55 = vpop.permute.xlu1 %1710 }
 0x397   : > { %v1621_v29 = vmul.f32 %v5161_v24, %v1603_v0  ;;  %v1622_v15 = vmul.f32 %v5161_v24, %v1611_v10  ;;  %v5162_v53 = vld [vmem:[#allocation80_spill] sm:$0xff]  ;;  %v1670_v0 = vmul.f32 %v4476_v60, %v1658_v21  ;;  %v1692_v21 = vsel %vm1683_vm9, %v5167_v14, %v4369_v37  ;;  %v5169_v24 = vld [vmem:[#allocation49_spill] sm:$0xff] }
 0x398   : > { %v1230_v13 = vadd.f32 %v1226_v7, %v1145_v27  ;;  %v1231_v31 = vadd.f32 %v1227_v44, %v1146_v56  ;;  %v1212_v59 = vadd.f32 %v1208_v35, %v5159_v43  ;;  %v1213_v39 = vadd.f32 %v1209_v40, %v5160_v42  ;;  %v5163_v56 = vld [vmem:[#allocation79_spill] sm:$0xff]  ;;  %v5164_v44 = vld [vmem:[#allocation48_spill] sm:$0xff] }
 0x399   : > { %v1651_v4 = vmul.f32 %v5162_v53, %v1633_v30  ;;  %v1652_v62 = vmul.f32 %v5162_v53, %v1641_v54  ;;  %v1669_v7 = vmul.f32 %v4458_v26, %v5163_v56  ;;  %v1714_v10 = vsel %vm1683_vm9, %v1707_v32, %v5164_v44  ;;  %v5168_v43 = vld [vmem:[#allocation47_spill] sm:$0xff] }
 0x39a   : > { %v1311_v2 = vadd.f32 %v4358_v58, %v1230_v13  ;;  %v1312_v8 = vadd.f32 %v4361_v6, %v1231_v31  ;;  %v1224_v25 = vmul.f32 %v4462_v23, %v1212_v59  ;;  %v1225_v27 = vmul.f32 %v4466_v46, %v1213_v39  ;;  %v5165_v6 = vld [vmem:[#allocation85_spill] sm:$0xff]  ;;  %v5166_v59 = vld [vmem:[#allocation88_spill] sm:$0xff] }
 0x39b   : > { %v1722_v30 = vsel %vm1683_vm9, %v5164_v44, %v1707_v32  ;;  %v1655_v39 = vadd.f32 %v1651_v4, %v1621_v29  ;;  %v1684_v13 = vsel %vm1683_vm9, %v4369_v37, %v5167_v14  ;;  %v1723_v32 = vsel %vm1683_vm9, %v4371_v17, %v1711_v55  ;;  %v1761_v14 = vpop.permute.xlu1 %1760 }
 0x39c   : > { %v1392_v54 = vadd.f32 %v4403_v61, %v1311_v2  ;;  %v1393_v58 = vadd.f32 %v4408_v1, %v1312_v8  ;;  %v1228_v35 = vadd.f32 %v1224_v25, %v5165_v6  ;;  %v1229_v40 = vadd.f32 %v1225_v27, %v5166_v59 }
 0x39d   : > { %v1656_v29 = vadd.f32 %v1652_v62, %v1622_v15  ;;  %v1693_v42 = vsel %vm1683_vm9, %v5168_v43, %v4425_v52  ;;  %v1732_v53 = vmul.f32 %v5169_v24, %v1714_v10  ;;  %v1733_v37 = vmul.f32 %v5169_v24, %v1722_v30  ;;  %v5171_v15 = vld [vmem:[#allocation83_spill] sm:$0xff]  ;;  %v1058_v24 = vld [vmem:[#allocation16] sm:$0xff] }
 0x39e   : > { %v1430_v61 = vadd.f32 %v4421_v33, %v1392_v54  ;;  %v1431_v1 = vadd.f32 %v4423_v51, %v1393_v58  ;;  %v1309_v2 = vadd.f32 %v4388_v22, %v1228_v35  ;;  %v1310_v31 = vadd.f32 %v4391_v38, %v1229_v40  ;;  %v5170_v22 = vld [vmem:[#allocation81_spill] sm:$0xff] }
 0x39f   : > { %v1702_v25 = vmul.f32 %v5170_v22, %v1684_v13  ;;  %v1703_v62 = vmul.f32 %v5170_v22, %v1692_v21  ;;  %v1685_v38 = vsel %vm1683_vm9, %v4425_v52, %v5168_v43  ;;  %v1735_v27 = vmul.f32 %v5171_v15, %v1723_v32 }
 0x3a0   : > { %v1511_v4 = vadd.f32 %v4447_v34, %v1430_v61  ;;  %v1512_v8 = vadd.f32 %v4454_v28, %v1431_v1  ;;  %v1390_v33 = vadd.f32 %v4394_v49, %v1309_v2  ;;  %v1391_v51 = vadd.f32 %v4400_v12, %v1310_v31  ;;  %v5172_v49 = vld [vmem:[#allocation86_spill] sm:$0xff] }
 0x3a1   : > { %v1705_v10 = vmul.f32 %v5172_v49, %v1693_v42  ;;  %v1736_v12 = vadd.f32 %v1732_v53, %v1702_v25  ;;  %v1737_v30 = vadd.f32 %v1733_v37, %v1703_v62  ;;  %v1715_v54 = vsel %vm1683_vm9, %v1711_v55, %v4371_v17  ;;  %v1059_v42 = vld [vmem:[#allocation16 + $0x8] sm:$0xf] }
 0x3a2   : > { %v1592_v56 = vadd.f32 %v4472_v16, %v1511_v4  ;;  %v1593_v44 = vadd.f32 %v1589_v47, %v1512_v8  ;;  %v1428_v34 = vadd.f32 %v4417_v63, %v1390_v33  ;;  %v1429_v28 = vadd.f32 %v4419_v50, %v1391_v51  ;;  %v4567_v63 = vld [vmem:[%s5103_s20 + $0x10] ss:$0 sm:$0xff]  ;;  %v4572_v50 = vld [vmem:[%s5103_s20 + $0x18] ss:$0 sm:$0xff]  ;;  %v5182_v62 = vld [vmem:[#allocation71_spill] sm:$0xff] }
 0x3a3   : > { %v1667_v16 = vmul.f32 %v4458_v26, %v1655_v39  ;;  %v1668_v47 = vmul.f32 %v4476_v60, %v1656_v29  ;;  %v1734_v17 = vmul.f32 %v5171_v15, %v1715_v54  ;;  %v1739_v55 = vadd.f32 %v1735_v27, %v1705_v10  ;;  %v5184_v27 = vld [vmem:[#allocation40_spill] sm:$0xff]  ;;  %v5187_v10 = vld [vmem:[#allocation70_spill] sm:$0xff]  ;;  %v5189_v54 = vld [vmem:[#allocation41_spill] sm:$0xff] }
 0x3a4   : > { %v1673_v58 = vadd.f32 %v1669_v7, %v1592_v56  ;;  %v1674_v6 = vadd.f32 %v1670_v0, %v1593_v44  ;;  %v1509_v52 = vadd.f32 %v4440_v9, %v1428_v34  ;;  %v1510_v35 = vadd.f32 %v4443_v45, %v1429_v28  ;;  %v5185_v44 = vld [vmem:[#allocation43_spill] sm:$0xff] }
 0x3a5   : > { %v1704_v45 = vmul.f32 %v5172_v49, %v1685_v38  ;;  %v1748_v40 = vmul.f32 %v4567_v63, %v1736_v12  ;;  %v1749_v39 = vmul.f32 %v4572_v50, %v1737_v30  ;;  %v1751_v21 = vmul.f32 %v4572_v50, %v1739_v55  ;;  %v5183_v38 = vld [vmem:[#allocation72_spill] sm:$0xff]  ;;  %v5186_v49 = vld [vmem:[#allocation69_spill] sm:$0xff] }
 0x3a6   : > { %v1590_v9 = vadd.f32 %v1586_v57, %v1509_v52  ;;  %v1591_v7 = vadd.f32 %v1587_v5, %v1510_v35  ;;  %v5173_v53 = vmov 2   ;;  %v5174_v37 = vmov 1   ;;  %v5188_v30 = vld [vmem:[#allocation77_spill] sm:$0xff] }
 0x3a7   : > { %v1738_v13 = vadd.f32 %v1734_v17, %v1704_v45  ;;  %v1755_v1 = vadd.f32 %v1751_v21, %v1674_v6  ;;  %v5176_v4 = vmov 3   ;;  %v5177_v8 = vmov 5   ;;  %v5190_v6 = vld [vmem:[#allocation42_spill] sm:$0xff]  ;;  %v5191_v35 = vld [vmem:[#allocation45_spill] sm:$0xff] }
 0x3a8   : > { %v1671_v0 = vadd.f32 %v1667_v16, %v1590_v9  ;;  %v1672_v59 = vadd.f32 %v1668_v47, %v1591_v7  ;;  %v5178_v33 = vmov 6   ;;  %v5179_v51 = vmov 7   ;;  %v5192_v47 = vld [vmem:[#allocation44_spill] sm:$0xff] }
 0x3a9   : > { %v1750_v57 = vmul.f32 %v4567_v63, %v1738_v13  ;;  %v4589_v29 = vadd.f32 %v4405_v48, %v1755_v1  ;;  %v5180_v22 = vmov 8   ;;  %v5181_v25 = vmov 0  }
 0x3aa   : > { %v1752_v32 = vadd.f32 %v1748_v40, %v1671_v0  ;;  %v1753_v61 = vadd.f32 %v1749_v39, %v1672_v59  ;;  %v866_v15 = vadd.f32 %v5183_v38, %v5182_v62  ;;  %v868_v12 = vadd.f32 %v5187_v10, %v5186_v49 }
 0x3ab   : > { %v1754_v5 = vadd.f32 %v1750_v57, %v1673_v58  ;;  %v900_v58 = vadd.f32 %v5189_v54, %v5188_v30 }
 0x3ac   : > { %v4579_v2 = vadd.f32 %v1761_v14, %v1752_v32  ;;  %v4581_v31 = vadd.f32 %v1761_v14, %v1753_v61  ;;  %v899_v56 = vadd.f32 %v5184_v27, %v866_v15  ;;  %v901_v52 = vadd.f32 %v5190_v6, %v868_v12 }
 0x3ad   : > { %v4596_v43 = vadd.f32 %v4405_v48, %v1754_v5  ;;  %v5175_v48 = vmov 4   ;;  %v933_v16 = vadd.f32 %v5191_v35, %v900_v58 }
 0x3ae   : > { %1774 = vrot.lane.b32.xlu1 %v4581_v31, %s3200_s4  ;;  %1782 = vrot.lane.b32.xlu0 %v4579_v2, %s3200_s4  ;;  %v932_v34 = vadd.f32 %v5185_v44, %v899_v56  ;;  %v934_v17 = vadd.f32 %v5192_v47, %v901_v52 }
 0x3b0   : > { %2787 = vtanh.f32 %v932_v34 }
 0x3b1   : > { %2789 = vtanh.f32 %v933_v16 }
 0x3b2   : > { %1776 = vrot.lane.b32.xlu1 %v4589_v29, %s3200_s4  ;;  %1816 = vrot.lane.b32.xlu0 %v4581_v31, %s3201_s11  ;;  %2791 = vtanh.f32 %v934_v17 }
 0x3b6   : > { %1784 = vrot.lane.b32.xlu1 %v4596_v43, %s3200_s4  ;;  %1822 = vrot.lane.b32.xlu0 %v4579_v2, %s3201_s11  ;;  %s5207_s4 = sld [smem:[#allocation104_spill]] }
 0x3ba   : > { %1801 = vperm.xlu1 %2767, %v1059_v42   ;;  %1835 = vperm.xlu0 %2768, %v1058_v24   ;;  %v2788_v28 = vpop.eup %2787 }
 0x3bb   : > { %v2790_v0 = vpop.eup %2789 }
 0x3bc   : > { %v2792_v14 = vpop.eup %2791 }
 0x3be   : > { %1818 = vrot.lane.b32.xlu1 %v4589_v29, %s3201_s11  ;;  %2771 = vset.pattern.permute.xlu0 %v5173_v53 }
 0x3bf   : > { %1877 = vperm.xlu0 %2771, %v1059_v42   ;;  %2769 = vset.pattern.permute.xlu1 %v5174_v37 }
 0x3c2   : > { %1824 = vrot.lane.b32.xlu1 %v4596_v43, %s3201_s11 }
 0x3c3   : > { %1854 = vrot.lane.b32.xlu0 %v4581_v31, %s3202_s26 }
 0x3c4   : > { %2773 = vset.pattern.permute.xlu0 %v5175_v48 }
 0x3c6   : > { %1839 = vperm.xlu1 %2769, %v1059_v42  }
 0x3c7   : > { %1860 = vrot.lane.b32.xlu0 %v4579_v2, %s3202_s26 }
 0x3ca   : > { %2770 = vset.pattern.permute.xlu1 %v5173_v53 }
 0x3cb   : > { %1873 = vperm.xlu1 %2770, %v1058_v24   ;;  %1931 = vperm.xlu0 %2773, %v1058_v24  }
 0x3cf   : > { %2772 = vset.pattern.permute.xlu1 %v5176_v4  ;;  %2776 = vset.pattern.permute.xlu0 %v5177_v8 }
 0x3d0   : > { %1911 = vperm.xlu1 %2772, %v1058_v24   ;;  %1969 = vperm.xlu0 %2776, %v1059_v42  }
 0x3d4   : > { %1915 = vperm.xlu1 %2772, %v1059_v42   ;;  %1898 = vrot.lane.b32.xlu0 %v4579_v2, %s3203_s2 }
 0x3d5   : > { %2777 = vset.pattern.permute.xlu0 %v5178_v33 }
 0x3d8   : > { %1856 = vrot.lane.b32.xlu1 %v4589_v29, %s3202_s26  ;;  %2003 = vperm.xlu0 %2777, %v1058_v24  }
 0x3d9   : > { %2774 = vset.pattern.permute.xlu1 %v5175_v48 }
 0x3dc   : > { %1862 = vrot.lane.b32.xlu1 %v4596_v43, %s3202_s26  ;;  %2780 = vset.pattern.permute.xlu0 %v5179_v51  ;;  %s5193_s26 = sld [smem:[#allocation102_spill]] }
 0x3dd   : > { %2045 = vperm.xlu0 %2780, %v1059_v42  }
 0x3e0   : > { %1935 = vperm.xlu1 %2774, %v1059_v42  }
 0x3e1   : > { %1950 = vrot.lane.b32.xlu0 %v4596_v43, %s3209_s27 }
 0x3e2   : > { %2781 = vset.pattern.permute.xlu0 %v5180_v22  ;;  %v2156_v9 = vld [vmem:[%s5193_s26] sm:$0x7] }
 0x3e4   : > { %2775 = vset.pattern.permute.xlu1 %v5177_v8 }
 0x3e5   : > { %1965 = vperm.xlu1 %2775, %v1058_v24   ;;  %2079 = vperm.xlu0 %2781, %v1058_v24  }
 0x3e9   : > { %1892 = vrot.lane.b32.xlu1 %v4581_v31, %s3203_s2  ;;  %2782 = vset.pattern.permute.xlu0 %v5181_v25 }
 0x3ea   : > { %1796 = vperm.xlu0 %2782, %v1058_v24   ;;  %2778 = vset.pattern.permute.xlu1 %v5178_v33 }
 0x3ed   : > { %1894 = vrot.lane.b32.xlu1 %v4589_v29, %s3203_s2 }
 0x3ee   : > { %1986 = vrot.lane.b32.xlu0 %v4581_v31, %s3211_s28 }
 0x3f1   : > { %1900 = vrot.lane.b32.xlu1 %v4596_v43, %s3203_s2  ;;  %s2592_s2 = sshll.u32 %s3315_s19, 7 }
 0x3f2   : > { %1990 = vrot.lane.b32.xlu0 %v4589_v29, %s3211_s28  ;;  %s4824_s17 = scalar_lea.hbm %s5206_s9, %s2592_s2  ;;  %s4833_s11 = scalar_lea.hbm %s5207_s4, %s2592_s2 }
 0x3f5   : > { %2007 = vperm.xlu1 %2778, %v1059_v42  }
 0x3f6   : > { %2024 = vrot.lane.b32.xlu0 %v4581_v31, %s3214_s12 }
 0x3f9   : > { %2779 = vset.pattern.permute.xlu1 %v5179_v51 }
 0x3fa   : > { %2041 = vperm.xlu1 %2779, %v1058_v24   ;;  %2028 = vrot.lane.b32.xlu0 %v4589_v29, %s3214_s12 }
 0x3fe   : > { %1946 = vrot.lane.b32.xlu1 %v4579_v2, %s3209_s27  ;;  %2062 = vrot.lane.b32.xlu0 %v4581_v31, %s3216_s22 }
 0x3ff   : > { %2783 = vset.pattern.permute.xlu1 %v5180_v22 }
 0x402   : > { %1948 = vrot.lane.b32.xlu1 %v4581_v31, %s3209_s27  ;;  %2066 = vrot.lane.b32.xlu0 %v4589_v29, %s3216_s22 }
 0x406   : > { %1952 = vrot.lane.b32.xlu1 %v4589_v29, %s3209_s27  ;;  %2180 = vperm.xlu0 %2782, %v2788_v28   ;;  %s624_s27 = scalar_lea.vmem [#allocation17], %s3610_s7 }
 0x40a   : > { %2083 = vperm.xlu1 %2783, %v1059_v42  }
 0x40e   : > { %1984 = vrot.lane.b32.xlu1 %v4579_v2, %s3211_s28 }
 0x40f   : > { %2784 = vset.pattern.permute.xlu1 %v5181_v25 }
 0x412   : > { %1988 = vrot.lane.b32.xlu1 %v4596_v43, %s3211_s28  ;;  %s2329_s28 = sshll.u32 %s624_s27, 4  ;;  %s4826_s28 = int_to_ptr.vmem [resolvable:$true] %s2329_s28 }
 0x413   : > { %s3063_s26 = scalar_lea.vmem %s4826_s28, 128  ;;  %p3070_p9 = scmp.lt.s32.totalorder %s4826_s28, %s3068_s6 }
 0x414   : > { %p3064_p6 = scmp.ne.s32.totalorder %s4826_s28, %s3063_s26 }
 0x416   : > { %2022 = vrot.lane.b32.xlu1 %v4579_v2, %s3214_s12  ;;  %p3065_p10 = pnand %p3064_p6, %p5208_p0 }
 0x418   : > { %p3066_p12 = pneg %p3065_p10 }
 0x41a   : > { %2026 = vrot.lane.b32.xlu1 %v4596_v43, %s3214_s12  ;;  %s5004_s12 = scalar_lea.vmem [#allocation18], %s3610_s7 }
 0x41e   : > { %2060 = vrot.lane.b32.xlu1 %v4579_v2, %s3216_s22 }
 0x420   : > { %v1775_v55 = vpop.permute.xlu1 %1774  ;;  %v1783_v59 = vpop.permute.xlu0 %1782 }
 0x422   : > { %2064 = vrot.lane.b32.xlu1 %v4596_v43, %s3216_s22  ;;  %s2343_s22 = sshll.u32 %s5004_s12, 4  ;;  %s3069_s12 = scalar_lea.vmem %s3068_s6, 256  ;;  %s4835_s22 = int_to_ptr.vmem [resolvable:$true] %s2343_s22 }
 0x423   : > { %p3071_p11 = scmp.lt.s32.totalorder %s3069_s12, %s3063_s26 }
 0x424   : > { %v1777_v7 = vpop.permute.xlu1 %1776  ;;  %v1817_v13 = vpop.permute.xlu0 %1816 }
 0x425   : > { %p3072_p2 = por %p3071_p11, %p3070_p9 }
 0x426   : > { %2159 = vperm.xlu1 %2784, %v2156_v9  }
 0x427   : > { %p3073_p8 = pnand %p3072_p2, %p3066_p12 }
 0x428   : > { %v1785_v45 = vpop.permute.xlu1 %1784  ;;  %v1823_v21 = vpop.permute.xlu0 %1822 }
 0x429   : > { %v1787_v40 = vsel %vm1073_vm5, %v1785_v45, %v1777_v7  ;;  %v1793_v39 = vsel %vm1073_vm5, %v1777_v7, %v1785_v45  ;;  %v1826_v47 = vsel %vm1161_vm6, %v1823_v21, %v1817_v13  ;;  %v1832_v17 = vsel %vm1161_vm6, %v1817_v13, %v1823_v21 }
 0x42a   : > { %2184 = vperm.xlu1 %2784, %v2790_v0   ;;  %v1786_v45 = vsel %vm1073_vm5, %v1783_v59, %v1775_v55  ;;  %v1792_v0 = vsel %vm1073_vm5, %v1775_v55, %v1783_v59 }
 0x42e   : > { %2188 = vperm.xlu1 %2784, %v2792_v14  }
 0x439   : > { %v1802_v32 = vpop.permute.xlu1 %1801  ;;  %v1836_v61 = vpop.permute.xlu0 %1835 }
 0x43a   : > { %v1806_v1 = vmul.f32 %v1802_v32, %v1793_v39  ;;  %v1807_v57 = vmul.f32 %v1802_v32, %v1787_v40  ;;  %v1842_v9 = vmul.f32 %v1836_v61, %v1832_v17  ;;  %v1843_v7 = vmul.f32 %v1836_v61, %v1826_v47 }
 0x43c   : > { %v1810_v22 = vmul.f32 %v1806_v1, %v4148_v18  ;;  %v1811_v25 = vmul.f32 %v1807_v57, %v4152_v19  ;;  %v1846_v55 = vmul.f32 %v1842_v9, %v4462_v23  ;;  %v1847_v59 = vmul.f32 %v1843_v7, %v4466_v46 }
 0x43d   : > { %v1819_v5 = vpop.permute.xlu1 %1818 }
 0x43e   : > { %v1878_v42 = vpop.permute.xlu0 %1877 }
 0x441   : > { %v1825_v24 = vpop.permute.xlu1 %1824 }
 0x442   : > { %v1827_v53 = vsel %vm1161_vm6, %v1825_v24, %v1819_v5  ;;  %v1833_v37 = vsel %vm1161_vm6, %v1819_v5, %v1825_v24  ;;  %v1855_v48 = vpop.permute.xlu0 %1854 }
 0x445   : > { %v1840_v4 = vpop.permute.xlu1 %1839 }
 0x446   : > { %v1844_v8 = vmul.f32 %v1840_v4, %v1833_v37  ;;  %v1845_v33 = vmul.f32 %v1840_v4, %v1827_v53  ;;  %v1861_v51 = vpop.permute.xlu0 %1860 }
 0x447   : > { %v1864_v32 = vsel %vm1242_vm7, %v1861_v51, %v1855_v48  ;;  %v1870_v1 = vsel %vm1242_vm7, %v1855_v48, %v1861_v51 }
 0x448   : > { %v1848_v62 = vmul.f32 %v1844_v8, %v4462_v23  ;;  %v1849_v38 = vmul.f32 %v1845_v33, %v4466_v46 }
 0x44a   : > { %v1852_v15 = vadd.f32 %v1848_v62, %v1810_v22  ;;  %v1853_v27 = vadd.f32 %v1849_v38, %v1811_v25  ;;  %v1874_v56 = vpop.permute.xlu1 %1873  ;;  %v4692_v44 = vpop.permute.xlu0 %1931 }
 0x44b   : > { %v1880_v21 = vmul.f32 %v1874_v56, %v1870_v1  ;;  %v1881_v61 = vmul.f32 %v1874_v56, %v1864_v32 }
 0x44d   : > { %v1884_v25 = vmul.f32 %v1880_v21, %v4159_v36  ;;  %v1885_v62 = vmul.f32 %v1881_v61, %v4167_v3 }
 0x44f   : > { %v1912_v34 = vpop.permute.xlu1 %1911  ;;  %v4694_v28 = vpop.permute.xlu0 %1969 }
 0x453   : > { %v1916_v49 = vpop.permute.xlu1 %1915  ;;  %v1899_v10 = vpop.permute.xlu0 %1898 }
 0x457   : > { %v1857_v12 = vpop.permute.xlu1 %1856  ;;  %v4696_v30 = vpop.permute.xlu0 %2003 }
 0x45b   : > { %v1863_v54 = vpop.permute.xlu1 %1862 }
 0x45c   : > { %v4698_v58 = vpop.permute.xlu0 %2045  ;;  %v1865_v40 = vsel %vm1242_vm7, %v1863_v54, %v1857_v12  ;;  %v1871_v39 = vsel %vm1242_vm7, %v1857_v12, %v1863_v54 }
 0x45d   : > { %v1882_v37 = vmul.f32 %v1878_v42, %v1871_v39  ;;  %v1883_v4 = vmul.f32 %v1878_v42, %v1865_v40 }
 0x45f   : > { %v4700_v6 = vpop.permute.xlu1 %1935  ;;  %v1887_v23 = vmul.f32 %v1883_v4, %v4167_v3 }
 0x460   : > { %v4702_v52 = vpop.permute.xlu0 %1950 }
 0x464   : > { %v4704_v35 = vpop.permute.xlu1 %1965  ;;  %v4706_v16 = vpop.permute.xlu0 %2079 }
 0x468   : > { %v1893_v14 = vpop.permute.xlu1 %1892 }
 0x469   : > { %v1902_v57 = vsel %vm1323_vm8, %v1899_v10, %v1893_v14  ;;  %v1908_v5 = vsel %vm1323_vm8, %v1893_v14, %v1899_v10  ;;  %v1797_v13 = vpop.permute.xlu0 %1796  ;;  %v1886_v10 = vmul.f32 %v1882_v37, %v4159_v36 }
 0x46a   : > { %v1804_v24 = vmul.f32 %v1797_v13, %v1792_v0  ;;  %v1805_v53 = vmul.f32 %v1797_v13, %v1786_v45  ;;  %v1918_v8 = vmul.f32 %v1912_v34, %v1908_v5  ;;  %v1919_v33 = vmul.f32 %v1912_v34, %v1902_v57 }
 0x46b   : > { %v1890_v45 = vadd.f32 %v1886_v10, %v1852_v15  ;;  %v1891_v0 = vadd.f32 %v1887_v23, %v1853_v27  ;;  %v5194_v10 = vld [vmem:[#allocation91_spill] sm:$0xff] }
 0x46c   : > { %v1808_v22 = vmul.f32 %v1804_v24, %v4148_v18  ;;  %v1809_v48 = vmul.f32 %v1805_v53, %v4152_v19  ;;  %v1895_v51 = vpop.permute.xlu1 %1894  ;;  %v1922_v46 = vmul.f32 %v1918_v8, %v4237_v11  ;;  %v1923_v42 = vmul.f32 %v1919_v33, %v4241_v41 }
 0x46d   : > { %v1987_v5 = vpop.permute.xlu0 %1986 }
 0x46e   : > { %v1850_v38 = vadd.f32 %v1846_v55, %v1808_v22  ;;  %v1851_v56 = vadd.f32 %v1847_v59, %v1809_v48  ;;  %v1938_v59 = vmul.f32 %v4692_v44, %v4579_v2  ;;  %v1939_v48 = vmul.f32 %v4692_v44, %v4581_v31  ;;  %v5195_v44 = vld [vmem:[#allocation92_spill] sm:$0xff] }
 0x470   : > { %v1888_v34 = vadd.f32 %v1884_v25, %v1850_v38  ;;  %v1889_v12 = vadd.f32 %v1885_v62, %v1851_v56  ;;  %v1901_v18 = vpop.permute.xlu1 %1900 }
 0x471   : > { %v1903_v19 = vsel %vm1323_vm8, %v1901_v18, %v1895_v51  ;;  %v1909_v54 = vsel %vm1323_vm8, %v1895_v51, %v1901_v18  ;;  %v1991_v21 = vpop.permute.xlu0 %1990  ;;  %v1940_v51 = vmul.f32 %v4700_v6, %v4596_v43 }
 0x472   : > { %v1926_v47 = vadd.f32 %v1922_v46, %v1888_v34  ;;  %v1927_v17 = vadd.f32 %v1923_v42, %v1889_v12  ;;  %v1920_v9 = vmul.f32 %v1916_v49, %v1909_v54  ;;  %v1921_v7 = vmul.f32 %v1916_v49, %v1903_v19 }
 0x474   : > { %v1924_v36 = vmul.f32 %v1920_v9, %v4237_v11  ;;  %v1925_v3 = vmul.f32 %v1921_v7, %v4241_v41  ;;  %v2008_v40 = vpop.permute.xlu1 %2007  ;;  %v1942_v56 = vadd.f32 %v1938_v59, %v1926_v47  ;;  %v5196_v9 = vld [vmem:[#allocation52_spill] sm:$0xff] }
 0x475   : > { %v2025_v53 = vpop.permute.xlu0 %2024 }
 0x476   : > { %v1928_v39 = vadd.f32 %v1924_v36, %v1890_v45  ;;  %v1929_v14 = vadd.f32 %v1925_v3, %v1891_v0 }
 0x478   : > { %v1944_v18 = vadd.f32 %v1940_v51, %v1928_v39 }
 0x479   : > { %v2042_v32 = vpop.permute.xlu1 %2041  ;;  %v2029_v37 = vpop.permute.xlu0 %2028 }
 0x47d   : > { %v1947_v1 = vpop.permute.xlu1 %1946  ;;  %v2063_v54 = vpop.permute.xlu0 %2062 }
 0x481   : > { %v1949_v57 = vpop.permute.xlu1 %1948  ;;  %v2067_v59 = vpop.permute.xlu0 %2066 }
 0x482   : > { %v1954_v15 = vsel %vm1440_vm2, %v1947_v1, %v1949_v57  ;;  %v1962_v11 = vsel %vm1440_vm2, %v1949_v57, %v1947_v1 }
 0x483   : > { %v1972_v41 = vmul.f32 %v4704_v35, %v1954_v15  ;;  %v1973_v4 = vmul.f32 %v4704_v35, %v1962_v11  ;;  %v1941_v35 = vmul.f32 %v4700_v6, %v4589_v29  ;;  %v1943_v6 = vadd.f32 %v1939_v48, %v1927_v17 }
 0x485   : > { %v1953_v13 = vpop.permute.xlu1 %1952  ;;  %v1976_v23 = vmul.f32 %v1972_v41, %v5194_v10  ;;  %v1977_v46 = vmul.f32 %v1973_v4, %v5195_v44  ;;  %v1945_v47 = vadd.f32 %v1941_v35, %v1929_v14 }
 0x486   : > { %v1955_v8 = vsel %vm1440_vm2, %v4702_v52, %v1953_v13  ;;  %v1963_v33 = vsel %vm1440_vm2, %v1953_v13, %v4702_v52 }
 0x487   : > { %v1974_v31 = vmul.f32 %v4694_v28, %v1955_v8  ;;  %v1975_v43 = vmul.f32 %v4694_v28, %v1963_v33  ;;  %v1980_v17 = vadd.f32 %v1976_v23, %v1942_v56  ;;  %v1981_v39 = vadd.f32 %v1977_v46, %v1943_v6 }
 0x489   : > { %v4732_v61 = vpop.permute.xlu1 %2083  ;;  %v1978_v0 = vmul.f32 %v1974_v31, %v5194_v10  ;;  %v1979_v36 = vmul.f32 %v1975_v43, %v5195_v44 }
 0x48b   : > { %v1982_v11 = vadd.f32 %v1978_v0, %v1944_v18  ;;  %v1983_v41 = vadd.f32 %v1979_v36, %v1945_v47 }
 0x48d   : > { %v1985_v24 = vpop.permute.xlu1 %1984 }
 0x48e   : > { %v1992_v49 = vsel %vm1521_vm3, %v1985_v24, %v1987_v5  ;;  %v2000_v55 = vsel %vm1521_vm3, %v1987_v5, %v1985_v24 }
 0x48f   : > { %v2010_v62 = vmul.f32 %v4696_v30, %v1992_v49  ;;  %v2011_v38 = vmul.f32 %v4696_v30, %v2000_v55 }
 0x491   : > { %v1989_v27 = vpop.permute.xlu1 %1988  ;;  %v2014_v7 = vmul.f32 %v2010_v62, %v5196_v9  ;;  %v2015_v45 = vmul.f32 %v2011_v38, %v4433_v20 }
 0x492   : > { %v1993_v52 = vsel %vm1521_vm3, %v1989_v27, %v1991_v21  ;;  %v2001_v42 = vsel %vm1521_vm3, %v1991_v21, %v1989_v27 }
 0x493   : > { %v2012_v19 = vmul.f32 %v2008_v40, %v1993_v52  ;;  %v2013_v3 = vmul.f32 %v2008_v40, %v2001_v42  ;;  %v2019_v15 = vadd.f32 %v2015_v45, %v1981_v39 }
 0x495   : > { %v2023_v22 = vpop.permute.xlu1 %2022  ;;  %v2016_v5 = vmul.f32 %v2012_v19, %v5196_v9  ;;  %v2017_v49 = vmul.f32 %v2013_v3, %v4433_v20 }
 0x496   : > { %v2030_v25 = vsel %vm1602_vm4, %v2023_v22, %v2025_v53  ;;  %v2038_v2 = vsel %vm1602_vm4, %v2025_v53, %v2023_v22  ;;  %v2018_v53 = vadd.f32 %v2014_v7, %v1980_v17 }
 0x497   : > { %v2048_v34 = vmul.f32 %v2042_v32, %v2030_v25  ;;  %v2049_v12 = vmul.f32 %v2042_v32, %v2038_v2  ;;  %v2020_v22 = vadd.f32 %v2016_v5, %v1982_v11  ;;  %v2021_v35 = vadd.f32 %v2017_v49, %v1983_v41 }
 0x499   : > { %v2027_v29 = vpop.permute.xlu1 %2026  ;;  %v2052_v1 = vmul.f32 %v2048_v34, %v4458_v26  ;;  %v2053_v57 = vmul.f32 %v2049_v12, %v4476_v60 }
 0x49a   : > { %v2031_v30 = vsel %vm1602_vm4, %v2027_v29, %v2029_v37  ;;  %v2039_v28 = vsel %vm1602_vm4, %v2029_v37, %v2027_v29 }
 0x49b   : > { %v2050_v32 = vmul.f32 %v4698_v58, %v2031_v30  ;;  %v2051_v13 = vmul.f32 %v4698_v58, %v2039_v28  ;;  %v2056_v37 = vadd.f32 %v2052_v1, %v2018_v53  ;;  %v2057_v4 = vadd.f32 %v2053_v57, %v2019_v15 }
 0x49d   : > { %v2061_v14 = vpop.permute.xlu1 %2060  ;;  %v2054_v55 = vmul.f32 %v2050_v32, %v4458_v26  ;;  %v2055_v48 = vmul.f32 %v2051_v13, %v4476_v60 }
 0x49e   : > { %v2068_v21 = vsel %vm1683_vm9, %v2061_v14, %v2063_v54  ;;  %v2076_v24 = vsel %vm1683_vm9, %v2063_v54, %v2061_v14 }
 0x49f   : > { %v2086_v40 = vmul.f32 %v4706_v16, %v2068_v21  ;;  %v2087_v27 = vmul.f32 %v4706_v16, %v2076_v24  ;;  %v2058_v62 = vadd.f32 %v2054_v55, %v2020_v22  ;;  %v2059_v23 = vadd.f32 %v2055_v48, %v2021_v35 }
 0x4a1   : > { %v2090_v58 = vmul.f32 %v4567_v63, %v2086_v40  ;;  %v2091_v8 = vmul.f32 %v4572_v50, %v2087_v27  ;;  %v2065_v33 = vpop.permute.xlu1 %2064 }
 0x4a2   : > { %v2069_v51 = vsel %vm1683_vm9, %v2065_v33, %v2067_v59  ;;  %v2077_v16 = vsel %vm1683_vm9, %v2067_v59, %v2065_v33 }
 0x4a3   : > { %v2094_v25 = vadd.f32 %v2090_v58, %v2056_v37  ;;  %v2095_v2 = vadd.f32 %v2091_v8, %v2057_v4  ;;  %v2088_v20 = vmul.f32 %v4732_v61, %v2069_v51  ;;  %v2089_v26 = vmul.f32 %v4732_v61, %v2077_v16 }
 0x4a5   : > { %v2102_v38 = vcombine.low %v2094_v25, %v2095_v2  ;;  %v2103_v52 = vcombine.high %v2094_v25, %v2095_v2  ;;  %v2580_v56 = vcombine.high %v2095_v2, %v2095_v2  ;;  %v2092_v10 = vmul.f32 %v4567_v63, %v2088_v20  ;;  %v2160_v14 = vpop.permute.xlu1 %2159 }
 0x4a6   : > { %v2093_v60 = vmul.f32 %v4572_v50, %v2089_v26  ;;  %v2579_v31 = vcombine.low %v2095_v2, %v2095_v2  ;;  %v2161_v53 = vrot.slane %v2160_v14, 1  ;;  %v2162_v58 = vrot.slane %v2160_v14, 2 }
 0x4a7   : > { %v2114_v43 = vsel %vm696_vm0, %v2102_v38, 0.0  ;;  %v2128_v44 = vsel %vm696_vm0, %v2103_v52, 0.0  ;;  %v2096_v46 = vadd.f32 %v2092_v10, %v2058_v62  ;;  %v2135_v42 = vsel %vm696_vm0, %v2580_v56, 0.0  ;;  %v2181_v62 = vpop.permute.xlu0 %2180  ;;  %v2805_v38 = vld [vmem:[#allocation7] sm:$0xff]  ;;  %v5197_v52 = vld [vmem:[#allocation82_spill] sm:$0xff] }
 0x4a8   : > { %v2115_v34 = vrot.slane %v2114_v43, 4  ;;  %v2129_v61 = vrot.slane %v2128_v44, 4  ;;  %v2097_v12 = vadd.f32 %v2093_v60, %v2059_v23  ;;  %v2121_v29 = vsel %vm696_vm0, %v2579_v31, 0.0  ;;  %v5198_v23 = vld [vmem:[#allocation39_spill] sm:$0xff]  ;;  %v5199_v31 = vld [vmem:[#allocation50_spill] sm:$0xff] }
 0x4a9   : > { %v2122_v6 = vrot.slane %v2121_v29, 4  ;;  %v2136_v18 = vrot.slane %v2135_v42, 4  ;;  %v2185_v35 = vpop.permute.xlu1 %2184  ;;  %v2260_v56 = vrot.slane %v2805_v38, %v5197_v52  ;;  %v2196_v60 = vrot.slane %v2181_v62, %v5198_v23 }
 0x4aa   : > { %v2130_v19 = vadd.f32 %v2129_v61, %v2128_v44  ;;  %v2104_v63 = vcombine.low %v2096_v46, %v2097_v12  ;;  %v2581_v30 = vcombine.low %v2097_v12, %v2097_v12  ;;  %v2116_v54 = vadd.f32 %v2115_v34, %v2114_v43  ;;  %v5200_v46 = vld [vmem:[#allocation28_spill] sm:$0xff] }
 0x4ab   : > { %v2123_v50 = vadd.f32 %v2122_v6, %v2121_v29  ;;  %v2137_v47 = vadd.f32 %v2136_v18, %v2135_v42  ;;  %v2264_v43 = vrot.slane %v2805_v38, %v5199_v31  ;;  %v2203_v61 = vrot.slane %v2185_v35, %v5198_v23 }
 0x4ac   : > { %v2142_v9 = vsel %vm696_vm0, %v2104_v63, 0.0  ;;  %v2149_v7 = vsel %vm696_vm0, %v2581_v30, 0.0  ;;  %v2117_v45 = vrot.slane %v2116_v54, 2  ;;  %v2131_v28 = vrot.slane %v2130_v19, 2  ;;  %v5201_v63 = vld [vmem:[#allocation84_spill] sm:$0xff] }
 0x4ad   : > { %v2143_v0 = vrot.slane %v2142_v9, 4  ;;  %v2150_v36 = vrot.slane %v2149_v7, 4  ;;  %v2124_v3 = vrot.slane %v2123_v50, 2  ;;  %v2138_v32 = vrot.slane %v2137_v47, 2  ;;  %v2189_v29 = vpop.permute.xlu1 %2188 }
 0x4ae   : > { %v2118_v17 = vadd.f32 %v2117_v45, %v2116_v54  ;;  %v2132_v39 = vadd.f32 %v2131_v28, %v2130_v19  ;;  %v2270_v18 = vrot.slane %v2260_v56, %v5197_v52  ;;  %v2287_v30 = vrot.slane %v2805_v38, %v5201_v63  ;;  %v5202_v54 = vld [vmem:[#allocation51_spill] sm:$0xff] }
 0x4af   : > { %v2144_v1 = vadd.f32 %v2143_v0, %v2142_v9  ;;  %v2151_v57 = vadd.f32 %v2150_v36, %v2149_v7  ;;  %v2125_v5 = vadd.f32 %v2124_v3, %v2123_v50  ;;  %v2139_v13 = vadd.f32 %v2138_v32, %v2137_v47  ;;  %v5203_v47 = vld [vmem:[#allocation31_spill] sm:$0xff]  ;;  %v5204_v32 = vld [vmem:[#allocation32_spill] sm:$0xff] }
 0x4b0   : > { %v2119_v21 = vrot.slane %v2118_v17, 1  ;;  %v2133_v24 = vrot.slane %v2132_v39, 1  ;;  %v2291_v50 = vrot.slane %v2805_v38, %v5202_v54  ;;  %v2214_v9 = vmul.f32 %v2196_v60, %v5203_v47 }
 0x4b1   : > { %v2126_v15 = vrot.slane %v2125_v5, 1  ;;  %v2140_v40 = vrot.slane %v2139_v13, 1  ;;  %v2145_v27 = vrot.slane %v2144_v1, 2  ;;  %v2152_v11 = vrot.slane %v2151_v57, 2 }
 0x4b2   : > { %v2120_v41 = vadd.f32 %v2119_v21, %v2118_v17  ;;  %v2134_v49 = vadd.f32 %v2133_v24, %v2132_v39  ;;  %v2274_v7 = vrot.slane %v2264_v43, %v5197_v52  ;;  %v2210_v36 = vrot.slane %v2189_v29, %v5198_v23 }
 0x4b3   : > { %v2127_v55 = vadd.f32 %v2126_v15, %v2125_v5  ;;  %v2141_v59 = vadd.f32 %v2140_v40, %v2139_v13  ;;  %v2146_v37 = vadd.f32 %v2145_v27, %v2144_v1  ;;  %v2153_v4 = vadd.f32 %v2152_v11, %v2151_v57 }
 0x4b4   : > { %v2166_v8 = vadd.f32 %v2160_v14, %v2120_v41  ;;  %v2168_v33 = vadd.f32 %v2161_v53, %v2134_v49  ;;  %v2215_v17 = vmul.f32 %v2203_v61, %v5204_v32  ;;  %v2301_v5 = vrot.slane %v2291_v50, %v5201_v63 }
 0x4b5   : > { %v2147_v22 = vrot.slane %v2146_v37, 1  ;;  %v2154_v48 = vrot.slane %v2153_v4, 1  ;;  %v2167_v51 = vadd.f32 %v2160_v14, %v2127_v55  ;;  %v2169_v16 = vadd.f32 %v2161_v53, %v2141_v59  ;;  %v5205_v53 = vld [vmem:[#allocation30_spill] sm:$0xff]  ;;  %v2806_v59 = vld [vmem:[%s540_s13] sm:$0xff]  ;;  %s2310_s13 = scalar_lea.sflag [#allocation4], %s3607_s5 }
 0x4b6   : > { %2793 = vtanh.f32 %v2166_v8  ;;  %v2297_v14 = vrot.slane %v2287_v30, %v5201_v63  ;;  %v2277_v21 = vcombine.low %v2270_v18, %v2274_v7  ;;  %v2216_v15 = vmul.f32 %v2210_v36, %v5205_v53 }
 0x4b7   : > { %v2148_v25 = vadd.f32 %v2147_v22, %v2146_v37  ;;  %v2155_v2 = vadd.f32 %v2154_v48, %v2153_v4  ;;  %2795 = vtanh.f32 %v2167_v51  ;;  %v2282_v4 = vld [vmem:[%s549_s18] sm:$0xff] }
 0x4b8   : > { %2797 = vtanh.f32 %v2168_v33  ;;  %v2304_v11 = vcombine.low %v2297_v14, %v2301_v5 }
 0x4b9   : > { %v2170_v20 = vadd.f32 %v2162_v58, %v2148_v25  ;;  %v2171_v26 = vadd.f32 %v2162_v58, %v2155_v2  ;;  %2799 = vtanh.f32 %v2169_v16 }
 0x4bb   : > { %2801 = vtanh.f32 %v2170_v20 }
 0x4bc   : > { %2803 = vtanh.f32 %v2171_v26 }
 0x4c0   : > { %v2794_v10 = vpop.eup %2793 }
 0x4c1   : > { %v2796_v44 = vpop.eup %2795  ;;  %v2220_v42 = vrot.slane %v2794_v10, %v5200_v46 }
 0x4c2   : > { %v2798_v34 = vpop.eup %2797  ;;  %v2224_v12 = vrot.slane %v2796_v44, %v5200_v46 }
 0x4c3   : > { %v2800_v6 = vpop.eup %2799  ;;  %v2228_v19 = vrot.slane %v2798_v34, %v5200_v46 }
 0x4c4   : > { %v2232_v45 = vrot.slane %v2800_v6, %v5200_v46  ;;  %v2247_v28 = vcombine.low %v2220_v42, %v2224_v12 }
 0x4c5   : > { %v2802_v0 = vpop.eup %2801 }
 0x4c6   : > { %v2804_v3 = vpop.eup %2803  ;;  %v2248_v39 = vcombine.low %v2228_v19, %v2232_v45  ;;  %v2253_v1 = vmul.f32 %v2247_v28, %v2214_v9  ;;  %v2236_v57 = vrot.slane %v2802_v0, %v5200_v46 }
 0x4c7   : > { %v2240_v13 = vrot.slane %v2804_v3, %v5200_v46 }
 0x4c8   : > { %v2254_v24 = vmul.f32 %v2248_v39, %v2215_v17 }
 0x4c9   : > { %v2249_v40 = vcombine.low %v2236_v57, %v2240_v13 }
 0x4ca   : > { %v2256_v27 = vadd.f32 %v2254_v24, %v2253_v1 }
 0x4cb   : > { %v2255_v41 = vmul.f32 %v2249_v40, %v2216_v15 }
 0x4cc   : > { %v2279_v49 = vmul.f32 %v2277_v21, %v2256_v27 }
 0x4cd   : > { %v2283_v55 = vadd.f32 %v2255_v41, %v2253_v1 }
 0x4ce   : > { %v2280_v37 = vadd.f32 %v2806_v59, %v2279_v49 }
 0x4cf   : > { %v2306_v58 = vmul.f32 %v2304_v11, %v2283_v55 }
 0x4d0   : > { %2281 = vst [vmem:[%s624_s27] sm:$0xff] %v2280_v37 }
 0x4d1   : > { %3076 = shalt.err (!%p3073_p8)
}
 0x4d2   : > { %s3077_s18 = scalar_lea.hbm %s4824_s17, 128  ;;  %s3081_s19 = scalar_lea.hbm %s5206_s9, 256 }
 0x4d3   : > { %p3078_p13 = scmp.ne.s32.totalorder %s4824_s17, %s3077_s18  ;;  %p3082_p4 = scmp.lt.u32.totalorder %s4824_s17, %s5206_s9 }
 0x4d4   : > { %p3083_p1 = scmp.lt.u32.totalorder %s3081_s19, %s3077_s18  ;;  %p3085_p6 = scmp.lt.u32.totalorder %s3077_s18, %s4824_s17 }
 0x4d5   : > { %p3079_p5 = pnand %p3078_p13, %p5208_p0 }
 0x4d6   : > { %p3084_p3 = por %p3083_p1, %p3082_p4 }
 0x4d7   : > { %p3080_p7 = pneg %p3079_p5 }
 0x4d8   : > { %p3086_p10 = por %p3085_p6, %p3084_p3 }
 0x4da   : > { %p3087_p12 = pnand %p3086_p10, %p3080_p7 }
 0x4dc   : > { %3090 = shalt.err (!%p3087_p12)
}
 0x4dd   : > { %2626 = dma.vmem_to_hbm [thread:$0]  (%p5208_p0), %s4826_s28, 128, %s4824_s17, %s2310_s13   ;;  %v2307_v8 = vadd.f32 %v2306_v58, %v2282_v4 }
 0x4de   : > { %s5209_s12 = scalar_lea.vmem [#allocation18], %s3610_s7  ;;  %s2315_s26 = scalar_lea.sflag [#allocation19], %s3607_s5 }
 0x4df   : > { %2308 = vst [vmem:[%s5209_s12] sm:$0xff] %v2307_v8  ;;  %s3091_s6 = scalar_lea.vmem %s4835_s22, 128  ;;  %s3218_s18 = smov [#allocation18]  }
 0x4e0   : > { %p3092_p9 = scmp.ne.s32.totalorder %s4835_s22, %s3091_s6  ;;  %s3095_s2 = sshll.u32 %s3218_s18, 4  ;;  %s3096_s2 = int_to_ptr.vmem [resolvable:$false] %s3095_s2 }
 0x4e1   : > { %s3097_s27 = scalar_lea.vmem %s3096_s2, 256  ;;  %p3098_p8 = scmp.lt.s32.totalorder %s4835_s22, %s3096_s2 }
 0x4e2   : > { %p3093_p11 = pnand %p3092_p9, %p5208_p0  ;;  %p3099_p13 = scmp.lt.s32.totalorder %s3097_s27, %s3091_s6 }
 0x4e4   : > { %p3094_p2 = pneg %p3093_p11  ;;  %p3100_p5 = por %p3099_p13, %p3098_p8 }
 0x4e6   : > { %p3101_p7 = pnand %p3100_p5, %p3094_p2 }
 0x4e8   : > { %3104 = shalt.err (!%p3101_p7)
}
 0x4e9   : > { %s3105_s5 = scalar_lea.hbm %s4833_s11, 128  ;;  %s3109_s17 = scalar_lea.hbm %s5207_s4, 256 }
 0x4ea   : > { %p3106_p4 = scmp.ne.s32.totalorder %s4833_s11, %s3105_s5  ;;  %p3110_p6 = scmp.lt.u32.totalorder %s4833_s11, %s5207_s4 }
 0x4eb   : > { %p3111_p10 = scmp.lt.u32.totalorder %s3109_s17, %s3105_s5  ;;  %p3113_p9 = scmp.lt.u32.totalorder %s3105_s5, %s4833_s11 }
 0x4ec   : > { %p3107_p1 = pnand %p3106_p4, %p5208_p0 }
 0x4ed   : > { %p3112_p12 = por %p3111_p10, %p3110_p6 }
 0x4ee   : > { %p3108_p3 = pneg %p3107_p1 }
 0x4ef   : > { %p3114_p11 = por %p3113_p9, %p3112_p12 }
 0x4f1   : > { %p3115_p2 = pnand %p3114_p11, %p3108_p3 }
 0x4f3   : > { %3118 = shalt.err (!%p3115_p2)
}
 0x4f4   : > { %2627 = dma.vmem_to_hbm [thread:$0]  (%p5208_p0), %s4835_s22, 128, %s4833_s11, %s2315_s26  }
 0x4f5 PF: > { %s2355_s23 = sand.u32 1, %s3169_s29   ;;  %p5210_p8 = scmp.ne.s32.totalorder %s5035_s3, 0 }
 0x4f6   : > { %p5211_p13 = scmp.ge.s32.totalorder %s3181_s16, 2  ;;  %s2356_s24 = scalar_lea.sflag [#allocation4], %s2355_s23 }
 0x4f8   : > { %p2660_p5 = pnand %p5211_p13, %p5210_p8 }
 0x4fa   : > { %3160 = dma.done.wait (!%p2660_p5), %s2356_s24, 128  }
 0x4fb   : > { %3162 = vsyncadd (!%p2660_p5), %s2356_s24, 4294967168  ;;  %s2365_s12 = scalar_lea.sflag [#allocation19], %s2355_s23 }
 0x4fc   : > { %3164 = dma.done.wait (!%p2660_p5), %s2365_s12, 128  }
 0x4fd   : > { %3166 = vsyncadd (!%p2660_p5), %s2365_s12, 4294967168  ;;  %p37_p0 = scmp.ge.s32.totalorder %s3508_s21, 4   ;;  %s5212_s29 = smov %s3173_s30 }
 0x4fe   : > { %s5213_s30 = smov %s3177_s15  ;;  %s5214_s15 = smov %s3520_s25 }
 0x4ff   : > { %s5215_s16 = smov %s3508_s21  ;;  %39 = sbr.rel (!%p37_p0) target bundleno = 24 (0x18), region = 175 }
 0x506   :  { %2370 = vsyncpa [#allocation3], 1 }
 0x507   :  { %2372 = vsyncpa [#allocation3 + $0x1], 1 }
 0x508   :  { %2373 = vsyncpa [#allocation6], 1 }
 0x509   :  { %2375 = vsyncpa [#allocation6 + $0x1], 1 }
 0x50a   :  { %2376 = vsyncpa [#allocation9], 1 }
 0x50b   :  { %2377 = vsyncpa [#allocation12], 1 }
 0x50c   :  { %2378 = vsyncpa [#allocation15], 1 }
 0x50d   :  { %2379 = vsyncpa [#allocation4], 1 }
 0x50e   :  { %2381 = vsyncpa [#allocation4 + $0x1], 1 }
 0x50f   :  { %2382 = vsyncpa [#allocation19], 1 }
 0x510   :  { %2384 = vsyncpa [#allocation19 + $0x1], 1 }

</bundles_post_ra>
